<compile_context>
chip_gen: v5e
topology: v5e:2x2
jax: 0.10.0
libtpu: 0.0.40
codegen_flags: <defaults>
</compile_context>

<pallas_src>
import functools

import jax
import jax.numpy as jnp
from jax.experimental import pallas as pl
from jax.experimental.pallas import tpu as pltpu

BN_EPS = 1e-5
_H1, _H2 = 1000, 640
_MAX_TB = 512          # max batch tile (rows)


def _round_up(n, m):
    return ((n + m - 1) // m) * m


# ---------------------------------------------------------------------------
# Kernel: x @ W1 + b1 -> ReLU -> @ W2 + b2 -> ReLU -> @ W3 + b3
# (BN already folded into W/b; weights & activations bf16, accumulation f32)
# ---------------------------------------------------------------------------
def _fcn_classifier_kernel(x_ref, w1_ref, b1_ref, w2_ref, b2_ref,
                           w3_ref, b3_ref, out_ref):
    x = x_ref[...]                                                    # (TB, IN) bf16

    h = jnp.dot(x, w1_ref[...], preferred_element_type=jnp.float32)  # f32 acc
    h = jnp.maximum(h + b1_ref[...], 0.0).astype(jnp.bfloat16)       # bias+ReLU in f32

    h = jnp.dot(h, w2_ref[...], preferred_element_type=jnp.float32)
    h = jnp.maximum(h + b2_ref[...], 0.0).astype(jnp.bfloat16)

    y = jnp.dot(h, w3_ref[...], preferred_element_type=jnp.float32) + b3_ref[...]
    out_ref[...] = y.astype(out_ref.dtype)                            # bf16 store


# ---------------------------------------------------------------------------
# Param preparation: fold BN into Linear, zero-pad to tile-friendly shapes,
# cast weights to bf16 (biases stay f32).
# ---------------------------------------------------------------------------
def prepare_params(params, in_dim, out_dim):
    in_pad = _round_up(in_dim, 128)      # 144  -> 256
    h1_pad = _round_up(_H1, 128)         # 1000 -> 1024
    h2_pad = _round_up(_H2, 128)         # 640  -> 640
    out_pad = _round_up(out_dim, 128)    # 16   -> 128

    # Fold BN into Linear:  y = ((xW+b) - rm)*g*rsqrt(rv+eps) + beta
    s1 = params["g1"] * jax.lax.rsqrt(params["rv1"] + BN_EPS)        # (1, h1)
    w1 = params["w1"] * s1                                           # (in, h1)
    b1 = (params["b1"] - params["rm1"]) * s1 + params["beta1"]       # (1, h1)

    s2 = params["g2"] * jax.lax.rsqrt(params["rv2"] + BN_EPS)
    w2 = params["w2"] * s2
    b2 = (params["b2"] - params["rm2"]) * s2 + params["beta2"]

    w3, b3 = params["w3"], params["b3"]

    def pad_w(w, r, c):
        return jnp.pad(w, ((0, r - w.shape[0]), (0, c - w.shape[1]))).astype(jnp.bfloat16)

    def pad_b(b, c):
        return jnp.pad(b, ((0, 0), (0, c - b.shape[1]))).astype(jnp.float32)

    return {
        "w1": pad_w(w1, in_pad, h1_pad), "b1": pad_b(b1, h1_pad),
        "w2": pad_w(w2, h1_pad, h2_pad), "b2": pad_b(b2, h2_pad),
        "w3": pad_w(w3, h2_pad, out_pad), "b3": pad_b(b3, out_pad),
        "dims": (in_dim, in_pad, h1_pad, h2_pad, out_dim, out_pad),
    }


# ---------------------------------------------------------------------------
# Batch tiling policy: multiple of 16 (bf16 sublanes), up to 512 rows/tile,
# >=2 grid steps whenever the padded batch exceeds one max tile (v7x megacore).
# ---------------------------------------------------------------------------
def _choose_batch_tiling(batch):
    b16 = _round_up(max(batch, 1), 16)
    if b16 <= _MAX_TB:
        return b16, b16, 1                              # single tile, grid=(1,)
    n_tiles = -(-b16 // _MAX_TB)                        # ceil div
    tb = _round_up(-(-b16 // n_tiles), 16)
    return tb, n_tiles * tb, n_tiles


# ---------------------------------------------------------------------------
# Forward (matches LearnModuleFCN.forward, feed_forward branch, eval mode)
# ---------------------------------------------------------------------------
@functools.partial(jax.jit, static_argnames=("dims",))
def _forward_impl(th, features, w1, b1, w2, b2, w3, b3, *, dims):
    in_dim, in_pad, h1_pad, h2_pad, out_dim, out_pad = dims
    B = th.shape[0]

    # Glue: index_select(0), index_select(1), cat(dim=-1), view, cat(dim=1)
    thx = th[..., 0:1]
    thy = th[..., 1:2]
    th_pos = jnp.concatenate([thx, thy], axis=-1)                      # (B, T, 2)
    conc = jnp.concatenate([features, th_pos.reshape(B, -1)], axis=1)  # (B, in_dim)

    TB, B_pad, n_tiles = _choose_batch_tiling(B)
    conc_p = jnp.pad(conc, ((0, B_pad - B), (0, in_pad - in_dim))).astype(jnp.bfloat16)

    const2 = lambda i: (0, 0)
    out = pl.pallas_call(
        _fcn_classifier_kernel,
        out_shape=jax.ShapeDtypeStruct((B_pad, out_pad), jnp.bfloat16),
        grid=(n_tiles,),
        in_specs=[
            pl.BlockSpec((TB, in_pad), lambda i: (i, 0)),      # activation tile
            pl.BlockSpec((in_pad, h1_pad), const2),            # resident weights
            pl.BlockSpec((1, h1_pad), const2),
            pl.BlockSpec((h1_pad, h2_pad), const2),
            pl.BlockSpec((1, h2_pad), const2),
            pl.BlockSpec((h2_pad, out_pad), const2),
            pl.BlockSpec((1, out_pad), const2),
        ],
        out_specs=pl.BlockSpec((TB, out_pad), lambda i: (i, 0)),   # lane-dense store
        compiler_params=pltpu.CompilerParams(
            dimension_semantics=("parallel",),
            vmem_limit_bytes=32 * 1024 * 1024,
            # Let XLA fuse the concat/pad/bf16-cast glue into the kernel's
            # activation operand instead of round-tripping it through HBM.
            allow_input_fusion=[True, False, False, False, False, False, False],
        ),
    )(conc_p, w1, b1, w2, b2, w3, b3)

    # out.view(batch_size, 1, -1)
    return out[:B, :out_dim].astype(jnp.float32).reshape(B, 1, out_dim)


def learn_module_fcn_forward(th, features, prep):
    """th: (B, num_traj_states, state_dim), features: (B, 32*(im_size/16)^2).
    Returns (B, 1, out_dim) float32."""
    return _forward_impl(th, features,
                         prep["w1"], prep["b1"], prep["w2"], prep["b2"],
                         prep["w3"], prep["b3"], dims=prep["dims"])


# ---------------------------------------------------------------------------
# Parameter init matching the module's __init__ (xavier_uniform linear weights,
# PyTorch-default uniform biases, BN weight=1 / bias=0 / running stats 0,1).
# ---------------------------------------------------------------------------
def init_params(key, in_dim, out_dim):
    dims = [(in_dim, _H1), (_H1, _H2), (_H2, out_dim)]
    keys = jax.random.split(key, 2 * len(dims))
    params = {}
    for i, (fan_in, fan_out) in enumerate(dims, start=1):
        wkey, bkey = keys[2 * (i - 1)], keys[2 * (i - 1) + 1]
        limit = (6.0 / (fan_in + fan_out)) ** 0.5
        params[f"w{i}"] = jax.random.uniform(
            wkey, (fan_in, fan_out), jnp.float32, minval=-limit, maxval=limit)
        bbound = 1.0 / (fan_in ** 0.5)
        params[f"b{i}"] = jax.random.uniform(
            bkey, (1, fan_out), jnp.float32, minval=-bbound, maxval=bbound)
    for i, n in ((1, _H1), (2, _H2)):
        params[f"g{i}"] = jnp.ones((1, n), jnp.float32)       # BN weight
        params[f"beta{i}"] = jnp.zeros((1, n), jnp.float32)   # BN bias
        params[f"rm{i}"] = jnp.zeros((1, n), jnp.float32)     # running mean
        params[f"rv{i}"] = jnp.ones((1, n), jnp.float32)      # running var
    return params


# Pure-JAX f32 reference of the eval-mode forward (for tolerance checking).
def _reference_forward(th, features, params):
    B = th.shape[0]
    th_pos = jnp.concatenate([th[..., 0:1], th[..., 1:2]], axis=-1).reshape(B, -1)
    x = jnp.concatenate([features, th_pos], axis=1)

    def bn(h, i):
        inv = jax.lax.rsqrt(params[f"rv{i}"] + BN_EPS)
        return (h - params[f"rm{i}"]) * params[f"g{i}"] * inv + params[f"beta{i}"]

    h = jnp.maximum(bn(x @ params["w1"] + params["b1"], 1), 0.0)
    h = jnp.maximum(bn(h @ params["w2"] + params["b2"], 2), 0.0)
    y = h @ params["w3"] + params["b3"]
    return y.reshape(B, 1, -1)


# TODO(synk): rnn_gru / rnn_lstm branch of forward() references an undefined
# variable (`conc_flat`) in the original PyTorch code and is not implemented.

if __name__ == "__main__":
    key = jax.random.PRNGKey(0)

    # Shapes consistent with the module: im_size=32 -> feature_len = 32*(32/16)^2 = 128,
    # num_traj_states=8, state_dim=4 -> th_pos contributes 8*4/2 = 16 features.
    B, T, S = 2, 8, 4
    im_size = 32
    feat_dim = 32 * (im_size // 16) * (im_size // 16)   # 128
    in_dim = feat_dim + (T * S) // 2                    # 144
    out_dim = 16

    k_th, k_feat, k_par = jax.random.split(key, 3)
    th = jax.random.normal(k_th, (B, T, S), jnp.float32)
    features = jax.random.normal(k_feat, (B, feat_dim), jnp.float32)

    params = init_params(k_par, in_dim, out_dim)
    prep = prepare_params(params, in_dim, out_dim)      # BN folding + padding + bf16

    # --- small-batch run (grid=(1,), TB=16) ---
    out = learn_module_fcn_forward(th, features, prep)
    jax.block_until_ready(out)
    assert out.shape == (B, 1, out_dim)
    assert bool(jnp.all(jnp.isfinite(out)))
    ref = _reference_forward(th, features, params)
    err = float(jnp.max(jnp.abs(out - ref)))
    scale = float(jnp.max(jnp.abs(ref)))
    assert err <= 5e-2 * scale + 5e-2, f"small-batch mismatch: err={err}, scale={scale}"

    # --- multi-tile run exercising the large-batch path (grid=(2,), TB=304) ---
    B2 = 600
    k_th2, k_feat2 = jax.random.split(jax.random.PRNGKey(1))
    th2 = jax.random.normal(k_th2, (B2, T, S), jnp.float32)
    features2 = jax.random.normal(k_feat2, (B2, feat_dim), jnp.float32)
    out2 = learn_module_fcn_forward(th2, features2, prep)
    jax.block_until_ready(out2)
    assert out2.shape == (B2, 1, out_dim)
    ref2 = _reference_forward(th2, features2, params)
    err2 = float(jnp.max(jnp.abs(out2 - ref2)))
    scale2 = float(jnp.max(jnp.abs(ref2)))
    assert err2 <= 5e-2 * scale2 + 5e-2, f"large-batch mismatch: err={err2}, scale={scale2}"

    print("KERNEL_OK")
</pallas_src>

<mosaic_0001>
module attributes {stable_mosaic.version = 11 : i64} {
  func.func @_fcn_classifier_kernel(%arg0: i32, %arg1: memref<16x256xbf16, #tpu.memory_space<vmem>>, %arg2: memref<256x1024xbf16, #tpu.memory_space<vmem>>, %arg3: memref<1x1024xf32, #tpu.memory_space<vmem>>, %arg4: memref<1024x640xbf16, #tpu.memory_space<vmem>>, %arg5: memref<1x640xf32, #tpu.memory_space<vmem>>, %arg6: memref<640x128xbf16, #tpu.memory_space<vmem>>, %arg7: memref<1x128xf32, #tpu.memory_space<vmem>>, %arg8: memref<16x128xbf16, #tpu.memory_space<vmem>>) attributes {dimension_semantics = [#tpu.dimension_semantics<parallel>], iteration_bounds = array<i64: 1>, scalar_prefetch = 0 : i64, scratch_operands = 0 : i64, tpu.core_type = #tpu.core_type<tc>, window_params = [{transform_indices = @transform_0, window_bounds = array<i64: 16, 256>}, {pipeline_mode = #tpu.pipeline_mode<synchronous>, transform_indices = @transform_1, window_bounds = array<i64: 256, 1024>}, {pipeline_mode = #tpu.pipeline_mode<synchronous>, transform_indices = @transform_2, window_bounds = array<i64: 1, 1024>}, {pipeline_mode = #tpu.pipeline_mode<synchronous>, transform_indices = @transform_3, window_bounds = array<i64: 1024, 640>}, {pipeline_mode = #tpu.pipeline_mode<synchronous>, transform_indices = @transform_4, window_bounds = array<i64: 1, 640>}, {pipeline_mode = #tpu.pipeline_mode<synchronous>, transform_indices = @transform_5, window_bounds = array<i64: 640, 128>}, {pipeline_mode = #tpu.pipeline_mode<synchronous>, transform_indices = @transform_6, window_bounds = array<i64: 1, 128>}, {transform_indices = @transform_7, window_bounds = array<i64: 16, 128>}]} {
    %c0 = arith.constant 0 : index
    %c0_0 = arith.constant 0 : index
    %0 = vector.load %arg1[%c0, %c0_0] : memref<16x256xbf16, #tpu.memory_space<vmem>>, vector<16x256xbf16>
    %c0_1 = arith.constant 0 : index
    %c0_2 = arith.constant 0 : index
    %1 = vector.load %arg2[%c0_1, %c0_2] : memref<256x1024xbf16, #tpu.memory_space<vmem>>, vector<256x1024xbf16>
    %cst = arith.constant dense<0.000000e+00> : vector<16x1024xf32>
    %2 = tpu.matmul %0, %1, %cst {dimension_numbers = #tpu.dot_dimension_numbers<[1], [0], [0], [1], [0, 0, 1, 1], [], []>} : vector<16x256xbf16>, vector<256x1024xbf16>, vector<16x1024xf32> -> vector<16x1024xf32>
    %c0_3 = arith.constant 0 : index
    %c0_4 = arith.constant 0 : index
    %3 = vector.load %arg3[%c0_3, %c0_4] : memref<1x1024xf32, #tpu.memory_space<vmem>>, vector<1x1024xf32>
    %4 = vector.broadcast %3 : vector<1x1024xf32> to vector<16x1024xf32>
    %5 = arith.addf %2, %4 : vector<16x1024xf32>
    %cst_5 = arith.constant 0.000000e+00 : f32
    %6 = vector.broadcast %cst_5 : f32 to vector<16x1024xf32>
    %7 = arith.maximumf %5, %6 : vector<16x1024xf32>
    %8 = arith.truncf %7 : vector<16x1024xf32> to vector<16x1024xbf16>
    %c0_6 = arith.constant 0 : index
    %c0_7 = arith.constant 0 : index
    %9 = vector.load %arg4[%c0_6, %c0_7] : memref<1024x640xbf16, #tpu.memory_space<vmem>>, vector<1024x640xbf16>
    %cst_8 = arith.constant dense<0.000000e+00> : vector<16x640xf32>
    %10 = tpu.matmul %8, %9, %cst_8 {dimension_numbers = #tpu.dot_dimension_numbers<[1], [0], [0], [1], [0, 0, 1, 1], [], []>} : vector<16x1024xbf16>, vector<1024x640xbf16>, vector<16x640xf32> -> vector<16x640xf32>
    %c0_9 = arith.constant 0 : index
    %c0_10 = arith.constant 0 : index
    %11 = vector.load %arg5[%c0_9, %c0_10] : memref<1x640xf32, #tpu.memory_space<vmem>>, vector<1x640xf32>
    %12 = vector.broadcast %11 : vector<1x640xf32> to vector<16x640xf32>
    %13 = arith.addf %10, %12 : vector<16x640xf32>
    %cst_11 = arith.constant 0.000000e+00 : f32
    %14 = vector.broadcast %cst_11 : f32 to vector<16x640xf32>
    %15 = arith.maximumf %13, %14 : vector<16x640xf32>
    %16 = arith.truncf %15 : vector<16x640xf32> to vector<16x640xbf16>
    %c0_12 = arith.constant 0 : index
    %c0_13 = arith.constant 0 : index
    %17 = vector.load %arg6[%c0_12, %c0_13] : memref<640x128xbf16, #tpu.memory_space<vmem>>, vector<640x128xbf16>
    %cst_14 = arith.constant dense<0.000000e+00> : vector<16x128xf32>
    %18 = tpu.matmul %16, %17, %cst_14 {dimension_numbers = #tpu.dot_dimension_numbers<[1], [0], [0], [1], [0, 0, 1, 1], [], []>} : vector<16x640xbf16>, vector<640x128xbf16>, vector<16x128xf32> -> vector<16x128xf32>
    %c0_15 = arith.constant 0 : index
    %c0_16 = arith.constant 0 : index
    %19 = vector.load %arg7[%c0_15, %c0_16] : memref<1x128xf32, #tpu.memory_space<vmem>>, vector<1x128xf32>
    %20 = vector.broadcast %19 : vector<1x128xf32> to vector<16x128xf32>
    %21 = arith.addf %18, %20 : vector<16x128xf32>
    %22 = arith.truncf %21 : vector<16x128xf32> to vector<16x128xbf16>
    %c0_17 = arith.constant 0 : index
    %c0_18 = arith.constant 0 : index
    %23 = vector.load %arg8[%c0_17, %c0_18] : memref<16x128xbf16, #tpu.memory_space<vmem>>, vector<16x128xbf16>
    tpu.vector_store %arg8[%c0_17, %c0_18], %22 {strides = array<i32>} : memref<16x128xbf16, #tpu.memory_space<vmem>>, vector<16x128xbf16>,
    return
  }
  func.func @transform_0(%arg0: i32) -> (i32, i32) {
    %c0_i32 = arith.constant 0 : i32
    %c0_i32_0 = arith.constant 0 : i32
    return %arg0, %c0_i32 : i32, i32
  }
  func.func @transform_1(%arg0: i32) -> (i32, i32) {
    %c0_i32 = arith.constant 0 : i32
    %c0_i32_0 = arith.constant 0 : i32
    %c0_i32_1 = arith.constant 0 : i32
    return %c0_i32, %c0_i32_0 : i32, i32
  }
  func.func @transform_2(%arg0: i32) -> (i32, i32) {
    %c0_i32 = arith.constant 0 : i32
    %c0_i32_0 = arith.constant 0 : i32
    %c0_i32_1 = arith.constant 0 : i32
    return %c0_i32, %c0_i32_0 : i32, i32
  }
  func.func @transform_3(%arg0: i32) -> (i32, i32) {
    %c0_i32 = arith.constant 0 : i32
    %c0_i32_0 = arith.constant 0 : i32
    %c0_i32_1 = arith.constant 0 : i32
    return %c0_i32, %c0_i32_0 : i32, i32
  }
  func.func @transform_4(%arg0: i32) -> (i32, i32) {
    %c0_i32 = arith.constant 0 : i32
    %c0_i32_0 = arith.constant 0 : i32
    %c0_i32_1 = arith.constant 0 : i32
    return %c0_i32, %c0_i32_0 : i32, i32
  }
  func.func @transform_5(%arg0: i32) -> (i32, i32) {
    %c0_i32 = arith.constant 0 : i32
    %c0_i32_0 = arith.constant 0 : i32
    %c0_i32_1 = arith.constant 0 : i32
    return %c0_i32, %c0_i32_0 : i32, i32
  }
  func.func @transform_6(%arg0: i32) -> (i32, i32) {
    %c0_i32 = arith.constant 0 : i32
    %c0_i32_0 = arith.constant 0 : i32
    %c0_i32_1 = arith.constant 0 : i32
    return %c0_i32, %c0_i32_0 : i32, i32
  }
  func.func @transform_7(%arg0: i32) -> (i32, i32) {
    %c0_i32 = arith.constant 0 : i32
    %c0_i32_0 = arith.constant 0 : i32
    return %arg0, %c0_i32 : i32, i32
  }
}

</mosaic_0001>

<bundles_post_ra>
// kernel: _forward_impl.2
= control target key start
LH: loop header
LB: loop body
LE: loop exit
PB: predicated region body
PF: predicated region fallthrough
CT: control target
= control target key end

     0   :  { %s7472_s0 = inlined_call_operand.hbm [shape: bf16[256,1024], index: 0, kind: input, shape index: {}]   ;;  %s7473_s1 = inlined_call_operand.hbm [shape: f32[1,1024], index: 1, kind: input, shape index: {}]   ;;  %s7474_s2 = inlined_call_operand.hbm [shape: bf16[1024,640], index: 2, kind: input, shape index: {}]   ;;  %s7475_s3 = inlined_call_operand.hbm [shape: f32[1,640], index: 3, kind: input, shape index: {}]   ;;  %s7476_s4 = inlined_call_operand.hbm [shape: bf16[640,128], index: 4, kind: input, shape index: {}]   ;;  %s7477_s5 = inlined_call_operand.hbm [shape: f32[1,128], index: 5, kind: input, shape index: {}]   ;;  %s7478_s6 = inlined_call_operand.vmem [shape: bf16[2,16], index: 6, kind: input, shape index: {}]   ;;  %s7479_s7 = inlined_call_operand.<no memory space> [shape: bf16[], index: 7, kind: input, shape index: {}]   ;;  %s7480_s8 = inlined_call_operand.<no memory space> [shape: s32[], index: 8, kind: input, shape index: {}]   ;;  %s7481_s9 = inlined_call_operand.<no memory space> [shape: s32[], index: 9, kind: input, shape index: {}]   ;;  %s7482_s10 = inlined_call_operand.vmem [shape: bf16[2,128], index: 10, kind: input, shape index: {}]   ;;  %s7483_s11 = inlined_call_operand.<no memory space> [shape: bf16[], index: 11, kind: input, shape index: {}]   ;;  %s7484_s12 = inlined_call_operand.vmem [shape: bf16[16,128], index: 12, kind: output, shape index: {}]  }
   0x1   :  { %v17_v0 = vstv %s7479_s7  ;;  %v22_v1 = vstv %s7480_s8  ;;  %v23_v2 = vstv %s7481_s9  ;;  %v29_v3 = vstv %s7483_s11 }
   0x2   :  { %v7178_v4 = vunpack.i.l.bf16 %v17_v0  ;;  %v7180_v5 = vunpack.i.l.bf16 %v29_v3 }
   0x3   :  { %34 = vsyncpa [#allocation13], 0 }
   0x4   :  { %35 = vsyncpa [#allocation15], 0 }
   0x5   :  { %36 = vsyncpa [#allocation18], 0  ;;  %s67_s30 = sshll.u32 %s7473_s1, 4  ;;  %s68_s30 = int_to_ptr.hbm [resolvable:$true] %s67_s30 }
   0x6   :  { %37 = vsyncpa [#allocation21], 0  ;;  %s7089_s13 = smov [#allocation14]   ;;  %s91_s11 = sshll.u32 %s7475_s3, 4  ;;  %s92_s11 = int_to_ptr.hbm [resolvable:$true] %s91_s11 }
   0x7   :  { %s69_s14 = sshll.u32 %s7089_s13, 4  ;;  %s7090_s17 = smov [#allocation17]   ;;  %s70_s14 = int_to_ptr.vmem [resolvable:$true] %s69_s14 }
   0x8   :  { %72 = dma.hbm_to_vmem [thread:$0]  %s68_s30, 128, %s70_s14, [#allocation15]  }
   0x9   :  { %s93_s18 = sshll.u32 %s7090_s17, 4  ;;  %s53_s21 = sshll.u32 %s7472_s0, 4  ;;  %s94_s18 = int_to_ptr.vmem [resolvable:$true] %s93_s18  ;;  %s54_s21 = int_to_ptr.hbm [resolvable:$true] %s53_s21 }
   0xa   :  { %96 = dma.hbm_to_vmem [thread:$0]  %s92_s11, 80, %s94_s18, [#allocation18]  }
   0xb   :  { %s7091_s1 = smov [#allocation12]   ;;  %s77_s25 = sshll.u32 %s7474_s2, 4  ;;  %s78_s25 = int_to_ptr.hbm [resolvable:$true] %s77_s25 }
   0xc   :  { %s55_s22 = sshll.u32 %s7091_s1, 4  ;;  %s7092_s26 = smov 512   ;;  %s56_s22 = int_to_ptr.vmem [resolvable:$true] %s55_s22 }
   0xd   :  { %s7093_s3 = smov 32   ;;  %s7094_s27 = smov [#allocation16]  }
   0xe   :  { %61 = dma.hbm_to_vmem [thread:$0]  %s54_s21, 16384, %s56_s22, [#allocation13], %s7092_s26, %s7092_s26, %s7093_s3  }
   0xf   :  { %s79_s28 = sshll.u32 %s7094_s27, 4  ;;  %s7095_s7 = smov 320   ;;  %s80_s28 = int_to_ptr.vmem [resolvable:$true] %s79_s28 }
  0x10   :  { %s7096_s29 = smov 20   ;;  %s101_s13 = sshll.u32 %s7476_s4, 4  ;;  %s102_s13 = int_to_ptr.hbm [resolvable:$true] %s101_s13 }
  0x11   :  { %85 = dma.hbm_to_vmem [thread:$0]  %s78_s25, 40960, %s80_s28, [#allocation15], %s7095_s7, %s7095_s7, %s7096_s29  }
  0x12   :  { %s7097_s14 = smov [#allocation19]   ;;  %s115_s11 = sshll.u32 %s7477_s5, 4  ;;  %s116_s11 = int_to_ptr.hbm [resolvable:$true] %s115_s11 }
  0x13   :  { %s103_s15 = sshll.u32 %s7097_s14, 4  ;;  %s7098_s17 = smov 64   ;;  %s104_s15 = int_to_ptr.vmem [resolvable:$true] %s103_s15 }
  0x14   :  { %s7099_s18 = smov 4   ;;  %s7100_s19 = smov [#allocation20]  }
  0x15   :  { %109 = dma.hbm_to_vmem [thread:$0]  %s102_s13, 5120, %s104_s15, [#allocation18], %s7098_s17, %s7098_s17, %s7099_s18  }
  0x16   :  { %s117_s20 = sshll.u32 %s7100_s19, 4  ;;  %s118_s20 = int_to_ptr.vmem [resolvable:$true] %s117_s20 }
  0x17   :  { %120 = dma.hbm_to_vmem [thread:$0]  %s116_s11, 16, %s118_s20, [#allocation21]  }
  0x18   :  { %7081 = dma.done.wait [#allocation13], 16384  }
  0x19   :  { %7082 = vsyncadd [#allocation13], 4294950912 }
  0x1a   :  { %7083 = dma.done.wait [#allocation15], 41088  }
  0x1b   :  { %7084 = vsyncadd [#allocation15], 4294926208 }
  0x1c   :  { %7085 = dma.done.wait [#allocation18], 5200  }
  0x1d   :  { %7086 = vsyncadd [#allocation18], 4294962096 }
  0x1e   :  { %7087 = dma.done.wait [#allocation21], 16  }
  0x1f   :  { %7088 = vsyncadd [#allocation21], 4294967280  ;;  %v4703_v6 = vld [vmem:[#allocation12 + $0x1c0] sm:$0xf]  ;;  %v6487_v11 = vld [vmem:[#allocation12 + $0x1c4] sm:$0xf] }
  0x20   :  { %v6491_v7 = vld [vmem:[#allocation12 + $0x1dc] sm:$0xf0]  ;;  %v4705_v12 = vld [vmem:[#allocation12 + $0x1e0] sm:$0xf0] }
  0x21   :  { %v4959_v8 = vld [vmem:[#allocation12 + $0x3c0] sm:$0xf]  ;;  %v4704_v9 = vor.u32 %v6491_v7, %v4703_v6  ;;  %v4708_v14 = vor.u32 %v6487_v11, %v4705_v12  ;;  %v6551_v15 = vld [vmem:[#allocation12 + $0x3c4] sm:$0xf] }
  0x22   :  { %v6555_v10 = vld [vmem:[#allocation12 + $0x3dc] sm:$0xf0]  ;;  %v4961_v16 = vld [vmem:[#allocation12 + $0x3e0] sm:$0xf0] }
  0x23   :  { %v4960_v13 = vor.u32 %v6555_v10, %v4959_v8  ;;  %v4671_v17 = vld [vmem:[#allocation12 + $0x180] sm:$0xf]  ;;  %1169 = vmatpush.bf16.msra.mxu0 %v4704_v9  ;;  %v4964_v18 = vor.u32 %v6551_v15, %v4961_v16  ;;  %1197 = vmatpush.bf16.msra.mxu2 %v4708_v14  ;;  %v6479_v24 = vld [vmem:[#allocation12 + $0x184] sm:$0xf] }
  0x24   :  { %v6483_v19 = vld [vmem:[#allocation12 + $0x19c] sm:$0xf0]  ;;  %v4673_v25 = vld [vmem:[#allocation12 + $0x1a0] sm:$0xf0] }
  0x25   :  { %v4927_v20 = vld [vmem:[#allocation12 + $0x380] sm:$0xf]  ;;  %1183 = vmatpush.bf16.msra.mxu1 %v4960_v13  ;;  %v4672_v22 = vor.u32 %v6483_v19, %v4671_v17  ;;  %v6543_v26 = vld [vmem:[#allocation12 + $0x384] sm:$0xf]  ;;  %1211 = vmatpush.bf16.msra.mxu3 %v4964_v18  ;;  %v4676_v27 = vor.u32 %v6479_v24, %v4673_v25 }
  0x26   :  { %v6547_v21 = vld [vmem:[#allocation12 + $0x39c] sm:$0xf0]  ;;  %v4929_v28 = vld [vmem:[#allocation12 + $0x3a0] sm:$0xf0] }
  0x27   :  { %v4928_v23 = vor.u32 %v6547_v21, %v4927_v20  ;;  %v4639_v29 = vld [vmem:[#allocation12 + $0x140] sm:$0xf]  ;;  %v4932_v31 = vor.u32 %v6543_v26, %v4929_v28  ;;  %v6471_v34 = vld [vmem:[#allocation12 + $0x144] sm:$0xf]  ;;  %1170 = vmatpush.bf16.msra.mxu0 %v4672_v22  ;;  %1198 = vmatpush.bf16.msra.mxu2 %v4676_v27 }
  0x28   :  { %v6475_v30 = vld [vmem:[#allocation12 + $0x15c] sm:$0xf0]  ;;  %v4641_v36 = vld [vmem:[#allocation12 + $0x160] sm:$0xf0] }
  0x29   :  { %v4895_v32 = vld [vmem:[#allocation12 + $0x340] sm:$0xf]  ;;  %v4640_v35 = vor.u32 %v6475_v30, %v4639_v29  ;;  %v6535_v37 = vld [vmem:[#allocation12 + $0x344] sm:$0xf]  ;;  %1184 = vmatpush.bf16.msra.mxu1 %v4928_v23  ;;  %v4644_v40 = vor.u32 %v6471_v34, %v4641_v36  ;;  %1212 = vmatpush.bf16.msra.mxu3 %v4932_v31 }
  0x2a   :  { %v6539_v33 = vld [vmem:[#allocation12 + $0x35c] sm:$0xf0]  ;;  %v4897_v38 = vld [vmem:[#allocation12 + $0x360] sm:$0xf0] }
  0x2b   :  { %v4896_v39 = vor.u32 %v6539_v33, %v4895_v32  ;;  %v4607_v41 = vld [vmem:[#allocation12 + $0x100] sm:$0xf]  ;;  %v4900_v44 = vor.u32 %v6535_v37, %v4897_v38  ;;  %v6463_v46 = vld [vmem:[#allocation12 + $0x104] sm:$0xf]  ;;  %1171 = vmatpush.bf16.msra.mxu0 %v4640_v35  ;;  %1199 = vmatpush.bf16.msra.mxu2 %v4644_v40  ;;  %v4711_v37 = vld [vmem:[#allocation12 + $0x1c8] sm:$0xf] }
  0x2c   :  { %v6467_v42 = vld [vmem:[#allocation12 + $0x11c] sm:$0xf0]  ;;  %v4609_v47 = vld [vmem:[#allocation12 + $0x120] sm:$0xf0]  ;;  %v6492_v38 = vld [vmem:[#allocation12 + $0x1e4] sm:$0xf0] }
  0x2d   :  { %v4863_v43 = vld [vmem:[#allocation12 + $0x300] sm:$0xf]  ;;  %v6527_v48 = vld [vmem:[#allocation12 + $0x304] sm:$0xf]  ;;  %v4608_v50 = vor.u32 %v6467_v42, %v4607_v41  ;;  %1185 = vmatpush.bf16.msra.mxu1 %v4896_v39  ;;  %v4612_v52 = vor.u32 %v6463_v46, %v4609_v47  ;;  %1213 = vmatpush.bf16.msra.mxu3 %v4900_v44  ;;  %v4967_v40 = vld [vmem:[#allocation12 + $0x3c8] sm:$0xf] }
  0x2e   :  { %v6531_v45 = vld [vmem:[#allocation12 + $0x31c] sm:$0xf0]  ;;  %v4865_v49 = vld [vmem:[#allocation12 + $0x320] sm:$0xf0]  ;;  %v6556_v41 = vld [vmem:[#allocation12 + $0x3e4] sm:$0xf0] }
  0x2f   :  { %v4864_v51 = vor.u32 %v6531_v45, %v4863_v43  ;;  %v4575_v53 = vld [vmem:[#allocation12 + $0xc0] sm:$0xf]  ;;  %v4868_v56 = vor.u32 %v6527_v48, %v4865_v49  ;;  %v6455_v58 = vld [vmem:[#allocation12 + $0xc4] sm:$0xf]  ;;  %1172 = vmatpush.bf16.msra.mxu0 %v4608_v50  ;;  %1200 = vmatpush.bf16.msra.mxu2 %v4612_v52  ;;  %v6488_v42 = vld [vmem:[#allocation12 + $0x1cc] sm:$0xf] }
  0x30   :  { %v6459_v54 = vld [vmem:[#allocation12 + $0xdc] sm:$0xf0]  ;;  %v4577_v59 = vld [vmem:[#allocation12 + $0xe0] sm:$0xf0]  ;;  %v4713_v43 = vld [vmem:[#allocation12 + $0x1e8] sm:$0xf0] }
  0x31   :  { %v4831_v55 = vld [vmem:[#allocation12 + $0x2c0] sm:$0xf]  ;;  %v6519_v60 = vld [vmem:[#allocation12 + $0x2c4] sm:$0xf]  ;;  %v4576_v62 = vor.u32 %v6459_v54, %v4575_v53  ;;  %1186 = vmatpush.bf16.msra.mxu1 %v4864_v51  ;;  %v4580_v0 = vor.u32 %v6455_v58, %v4577_v59  ;;  %1214 = vmatpush.bf16.msra.mxu3 %v4868_v56  ;;  %v6552_v44 = vld [vmem:[#allocation12 + $0x3cc] sm:$0xf] }
  0x32   :  { %v6523_v57 = vld [vmem:[#allocation12 + $0x2dc] sm:$0xf0]  ;;  %v4833_v61 = vld [vmem:[#allocation12 + $0x2e0] sm:$0xf0]  ;;  %v4969_v45 = vld [vmem:[#allocation12 + $0x3e8] sm:$0xf0] }
  0x33   :  { %v4832_v63 = vor.u32 %v6523_v57, %v4831_v55  ;;  %v4543_v3 = vld [vmem:[#allocation12 + $0x80] sm:$0xf]  ;;  %v4836_v8 = vor.u32 %v6519_v60, %v4833_v61  ;;  %v6447_v10 = vld [vmem:[#allocation12 + $0x84] sm:$0xf]  ;;  %1173 = vmatpush.bf16.msra.mxu0 %v4576_v62  ;;  %1201 = vmatpush.bf16.msra.mxu2 %v4580_v0  ;;  %v4679_v47 = vld [vmem:[#allocation12 + $0x188] sm:$0xf]  ;;  %v173_v55 = vlaneseq  ;;  %v4712_v57 = vor.u32 %v6492_v38, %v4711_v37 }
  0x34   :  { %v6451_v6 = vld [vmem:[#allocation12 + $0x9c] sm:$0xf0]  ;;  %v4545_v11 = vld [vmem:[#allocation12 + $0xa0] sm:$0xf0]  ;;  %v6484_v48 = vld [vmem:[#allocation12 + $0x1a4] sm:$0xf0]  ;;  %v4968_v61 = vor.u32 %v6556_v41, %v4967_v40  ;;  %v4716_v62 = vor.u32 %v6488_v42, %v4713_v43 }
  0x35   :  { %v4799_v7 = vld [vmem:[#allocation12 + $0x280] sm:$0xf]  ;;  %v6511_v12 = vld [vmem:[#allocation12 + $0x284] sm:$0xf]  ;;  %v4544_v14 = vor.u32 %v6451_v6, %v4543_v3  ;;  %1187 = vmatpush.bf16.msra.mxu1 %v4832_v63  ;;  %v4548_v17 = vor.u32 %v6447_v10, %v4545_v11  ;;  %1215 = vmatpush.bf16.msra.mxu3 %v4836_v8  ;;  %v7200_v49 = vld [vmem:[#allocation12 + $0x388] sm:$0xf]  ;;  %v4972_v6 = vor.u32 %v6552_v44, %v4969_v45 }
  0x36   :  { %v6515_v9 = vld [vmem:[#allocation12 + $0x29c] sm:$0xf0]  ;;  %v4801_v13 = vld [vmem:[#allocation12 + $0x2a0] sm:$0xf0]  ;;  %v7202_v52 = vld [vmem:[#allocation12 + $0x3a4] sm:$0xf0] }
  0x37   :  { %v4511_v15 = vld [vmem:[#allocation12 + $0x40] sm:$0xf]  ;;  %v4800_v16 = vor.u32 %v6515_v9, %v4799_v7  ;;  %v4804_v21 = vor.u32 %v6511_v12, %v4801_v13  ;;  %v6439_v22 = vld [vmem:[#allocation12 + $0x44] sm:$0xf]  ;;  %1174 = vmatpush.bf16.msra.mxu0 %v4544_v14  ;;  %1202 = vmatpush.bf16.msra.mxu2 %v4548_v17  ;;  %v7204_v53 = vld [vmem:[#allocation12 + $0x18c] sm:$0xf]  ;;  %v4680_v7 = vor.u32 %v6484_v48, %v4679_v47 }
  0x38   :  { %v6443_v18 = vld [vmem:[#allocation12 + $0x5c] sm:$0xf0]  ;;  %v4513_v23 = vld [vmem:[#allocation12 + $0x60] sm:$0xf0]  ;;  %v4681_v54 = vld [vmem:[#allocation12 + $0x1a8] sm:$0xf0]  ;;  %v4936_v8 = vor.u32 %v7202_v52, %v7200_v49 }
  0x39   :  { %v4767_v19 = vld [vmem:[#allocation12 + $0x240] sm:$0xf]  ;;  %v6503_v24 = vld [vmem:[#allocation12 + $0x244] sm:$0xf]  ;;  %v4512_v28 = vor.u32 %v6443_v18, %v4511_v15  ;;  %1188 = vmatpush.bf16.msra.mxu1 %v4800_v16  ;;  %v4516_v34 = vor.u32 %v6439_v22, %v4513_v23  ;;  %1216 = vmatpush.bf16.msra.mxu3 %v4804_v21  ;;  %v7206_v58 = vld [vmem:[#allocation12 + $0x38c] sm:$0xf]  ;;  %v4684_v9 = vor.u32 %v7204_v53, %v4681_v54 }
  0x3a   :  { %v6507_v20 = vld [vmem:[#allocation12 + $0x25c] sm:$0xf0]  ;;  %v4769_v25 = vld [vmem:[#allocation12 + $0x260] sm:$0xf0]  ;;  %v7208_v59 = vld [vmem:[#allocation12 + $0x3a8] sm:$0xf0] }
  0x3b   :  { %v4479_v26 = vld [vmem:[#allocation12] sm:$0xf]  ;;  %v6431_v31 = vld [vmem:[#allocation12 + $0x4] sm:$0xf]  ;;  %v4768_v33 = vor.u32 %v6507_v20, %v4767_v19  ;;  %v4772_v39 = vor.u32 %v6503_v24, %v4769_v25  ;;  %1175 = vmatpush.bf16.msra.mxu0 %v4512_v28  ;;  %1203 = vmatpush.bf16.msra.mxu2 %v4516_v34  ;;  %v7210_v60 = vld [vmem:[#allocation12 + $0x148] sm:$0xf]  ;;  %v4940_v10 = vor.u32 %v7206_v58, %v7208_v59 }
  0x3c   :  { %v6435_v27 = vld [vmem:[#allocation12 + $0x1c] sm:$0xf0]  ;;  %v4481_v32 = vld [vmem:[#allocation12 + $0x20] sm:$0xf0]  ;;  %v7212_v63 = vld [vmem:[#allocation12 + $0x164] sm:$0xf0] }
  0x3d   :  { %v4735_v29 = vld [vmem:[#allocation12 + $0x200] sm:$0xf]  ;;  %v6495_v35 = vld [vmem:[#allocation12 + $0x204] sm:$0xf]  ;;  %v4480_v46 = vor.u32 %v6435_v27, %v4479_v26  ;;  %1189 = vmatpush.bf16.msra.mxu1 %v4768_v33  ;;  %v4484_v51 = vor.u32 %v6431_v31, %v4481_v32  ;;  %1217 = vmatpush.bf16.msra.mxu3 %v4772_v39  ;;  %v7214_v0 = vld [vmem:[#allocation12 + $0x348] sm:$0xf]  ;;  %v4648_v15 = vor.u32 %v7212_v63, %v7210_v60 }
  0x3e   :  { %v6499_v30 = vld [vmem:[#allocation12 + $0x21c] sm:$0xf0]  ;;  %v4737_v36 = vld [vmem:[#allocation12 + $0x220] sm:$0xf0]  ;;  %v7216_v3 = vld [vmem:[#allocation12 + $0x364] sm:$0xf0] }
  0x3f   :  { %v4736_v50 = vor.u32 %v6499_v30, %v4735_v29  ;;  %v4740_v56 = vor.u32 %v6495_v35, %v4737_v36  ;;  %1176 = vmatpush.bf16.msra.mxu0 %v4480_v46  ;;  %1204 = vmatpush.bf16.msra.mxu2 %v4484_v51  ;;  %v170_v11 = vld [vmem:[%s7482_s10] sm:$0x1]  ;;  %v174_v12 = vshrl.u32 %v173_v55, 7  ;;  %v188_v13 = vand.u32 127, %v173_v55  ;;  %v6472_v17 = vld [vmem:[#allocation12 + $0x14c] sm:$0xf] }
  0x40   :  { %v164_v14 = vld [vmem:[%s7478_s6] sm:$0x1]  ;;  %v4904_v16 = vor.u32 %v7216_v3, %v7214_v0  ;;  %v4649_v18 = vld [vmem:[#allocation12 + $0x168] sm:$0xf0]  ;;  %v171_v19 = vunpack.c.l.bf16 %v170_v11  ;;  %v4615_v31 = vld [vmem:[#allocation12 + $0x108] sm:$0xf] }
  0x41   :  { %1190 = vmatpush.bf16.msra.mxu1 %v4736_v50  ;;  %1218 = vmatpush.bf16.msra.mxu3 %v4740_v56  ;;  %v165_v20 = vunpack.c.l.bf16 %v164_v14  ;;  %vm176_vm0 = vcmp.lt.s32.totalorder %v174_v12, 2  ;;  %vm7237_vm1 = vcmp.lt.s32.totalorder %v174_v12, %v23_v2  ;;  %vm7245_vm2 = vcmp.lt.s32.totalorder %v188_v13, %v22_v1  ;;  %v6536_v24 = vld [vmem:[#allocation12 + $0x34c] sm:$0xf]  ;;  %v6468_v32 = vld [vmem:[#allocation12 + $0x124] sm:$0xf0] }
  0x42   :  { %v282_v23 = vadd.s32 8, %v174_v12  ;;  %v177_v25 = vsel %vm176_vm0, %v171_v19, %v7178_v4  ;;  %vm4461_vm3 = vmand %vm7237_vm1, %vm7245_vm2  ;;  %v208_v26 = vsel %vm7237_vm1, %v7178_v4, %v7180_v5  ;;  %v230_v28 = vadd.s32 128, %v188_v13  ;;  %v4905_v30 = vld [vmem:[#allocation12 + $0x368] sm:$0xf0]  ;;  %v4871_v36 = vld [vmem:[#allocation12 + $0x308] sm:$0xf] }
  0x43   :  { %1225 = vmatpush.bf16.msrb.mxu0 %v4712_v57  ;;  %1253 = vmatpush.bf16.msrb.mxu2 %v4716_v62  ;;  %v227_v27 = vsel %vm176_vm0, %v165_v20, %v7178_v4  ;;  %v4652_v29 = vor.u32 %v6472_v17, %v4649_v18  ;;  %v199_v33 = vsel %vm7237_vm1, %v177_v25, %v7180_v5  ;;  %v6532_v37 = vld [vmem:[#allocation12 + $0x324] sm:$0xf0]  ;;  %v6464_v40 = vld [vmem:[#allocation12 + $0x10c] sm:$0xf] }
  0x44   :  { %v213_v34 = vsel %vm4461_vm3, %v208_v26, %v7180_v5  ;;  %vm7267_vm4 = vcmp.lt.s32.totalorder %v282_v23, %v23_v2  ;;  %v204_v38 = vsel %vm4461_vm3, %v199_v33, %v7180_v5  ;;  %vm231_vm6 = vcmp.lt.s32.totalorder %v230_v28, 144  ;;  %v4617_v41 = vld [vmem:[#allocation12 + $0x128] sm:$0xf0]  ;;  %v4583_v52 = vld [vmem:[#allocation12 + $0xc8] sm:$0xf] }
  0x45   :  { %1239 = vmatpush.bf16.msrb.mxu1 %v4968_v61  ;;  %1267 = vmatpush.bf16.msrb.mxu3 %v4972_v6  ;;  %vm4465_vm5 = vmand %vm7267_vm4, %vm7245_vm2  ;;  %v300_v39 = vsel %vm7267_vm4, %v7178_v4, %v7180_v5  ;;  %vm7284_vm7 = vcmp.lt.s32.totalorder %v230_v28, %v22_v1  ;;  %v217_v42 = vmax.f32 %v204_v38, %v213_v34  ;;  %v6528_v1 = vld [vmem:[#allocation12 + $0x30c] sm:$0xf]  ;;  %v6460_v53 = vld [vmem:[#allocation12 + $0xe4] sm:$0xf0] }
  0x46   :  { %v305_v43 = vsel %vm4465_vm5, %v300_v39, %v7180_v5  ;;  %v232_v44 = vsel %vm231_vm6, %v227_v27, %v7178_v4  ;;  %vm4463_vm8 = vmand %vm7237_vm1, %vm7284_vm7  ;;  %v4908_v45 = vor.u32 %v6536_v24, %v4905_v30  ;;  %v4873_v46 = vld [vmem:[#allocation12 + $0x328] sm:$0xf0]  ;;  %v4616_v54 = vor.u32 %v6468_v32, %v4615_v31  ;;  %v4839_v57 = vld [vmem:[#allocation12 + $0x2c8] sm:$0xf] }
  0x47   :  { %1226 = vmatpush.bf16.msrb.mxu0 %v4680_v7  ;;  %1254 = vmatpush.bf16.msrb.mxu2 %v4684_v9  ;;  %v321_v47 = vpack.c.bf16 0.0, %v305_v43  ;;  %v259_v48 = vsel %vm4463_vm8, %v208_v26, %v7180_v5  ;;  %v263_v49 = vsel %vm7237_vm1, %v232_v44, %v7180_v5  ;;  %vm4467_vm9 = vmand %vm7267_vm4, %vm7284_vm7  ;;  %v219_v4 = vpack.c.bf16 0.0, %v217_v42  ;;  %v6524_v60 = vld [vmem:[#allocation12 + $0x2e4] sm:$0xf0]  ;;  %v6456_v61 = vld [vmem:[#allocation12 + $0xcc] sm:$0xf] }
  0x48   :  { %v268_v50 = vsel %vm4463_vm8, %v263_v49, %v7180_v5  ;;  %v351_v51 = vsel %vm4467_vm9, %v300_v39, %v7180_v5  ;;  %v4872_v58 = vor.u32 %v6532_v37, %v4871_v36  ;;  %v4620_v59 = vor.u32 %v6464_v40, %v4617_v41  ;;  %v4585_v5 = vld [vmem:[#allocation12 + $0xe8] sm:$0xf0]  ;;  %v4551_v9 = vld [vmem:[#allocation12 + $0x88] sm:$0xf] }
  0x49   :  { %1240 = vmatpush.bf16.msrb.mxu1 %v4936_v8  ;;  %1268 = vmatpush.bf16.msrb.mxu3 %v4940_v10  ;;  %324 = vst [vmem:[#allocation22 + $0x8] sm:$0xf] %v321_v47  ;;  %v272_v55 = vmax.f32 %v259_v48, %v268_v50  ;;  %v367_v56 = vpack.c.bf16 0.0, %v351_v51  ;;  %v4876_v62 = vor.u32 %v6528_v1, %v4873_v46  ;;  %v6520_v0 = vld [vmem:[#allocation12 + $0x2cc] sm:$0xf] }
  0x4a   :  { %222 = vst [vmem:[#allocation22] sm:$0xf] %v219_v4  ;;  %v4841_v3 = vld [vmem:[#allocation12 + $0x2e8] sm:$0xf0]  ;;  %v4584_v6 = vor.u32 %v6460_v53, %v4583_v52  ;;  %v4840_v7 = vor.u32 %v6524_v60, %v4839_v57  ;;  %v4588_v8 = vor.u32 %v6456_v61, %v4585_v5  ;;  %v6452_v10 = vld [vmem:[#allocation12 + $0xa4] sm:$0xf0] }
  0x4b   :  { %1227 = vmatpush.bf16.msrb.mxu0 %v4648_v15  ;;  %1255 = vmatpush.bf16.msrb.mxu2 %v4652_v29  ;;  %v275_v63 = vpack.c.bf16 0.0, %v272_v55  ;;  %370 = vst [vmem:[#allocation22 + $0xc] sm:$0xf] %v367_v56  ;;  %v4807_v11 = vld [vmem:[#allocation12 + $0x288] sm:$0xf]  ;;  %v4844_v12 = vor.u32 %v6520_v0, %v4841_v3  ;;  %v4552_v19 = vor.u32 %v6452_v10, %v4551_v9 }
  0x4c   :  { %v6516_v13 = vld [vmem:[#allocation12 + $0x2a4] sm:$0xf0]  ;;  %v6448_v14 = vld [vmem:[#allocation12 + $0x8c] sm:$0xf]  ;;  %v6493_v46 = vld [vmem:[#allocation12 + $0x1ec] sm:$0xf0] }
  0x4d   :  { %1241 = vmatpush.bf16.msrb.mxu1 %v4904_v16  ;;  %1269 = vmatpush.bf16.msrb.mxu3 %v4908_v45  ;;  %278 = vst [vmem:[#allocation22 + $0x4] sm:$0xf] %v275_v63  ;;  %v4553_v15 = vld [vmem:[#allocation12 + $0xa8] sm:$0xf0]  ;;  %v4519_v21 = vld [vmem:[#allocation12 + $0x48] sm:$0xf]  ;;  %v4808_v24 = vor.u32 %v6516_v13, %v4807_v11 }
  0x4e   :  { %v6512_v17 = vld [vmem:[#allocation12 + $0x28c] sm:$0xf]  ;;  %v4556_v25 = vor.u32 %v6448_v14, %v4553_v15  ;;  %v6444_v26 = vld [vmem:[#allocation12 + $0x64] sm:$0xf0]  ;;  %v4719_v45 = vld [vmem:[#allocation12 + $0x1d0] sm:$0xf] }
  0x4f   :  { %1228 = vmatpush.bf16.msrb.mxu0 %v4616_v54  ;;  %1256 = vmatpush.bf16.msrb.mxu2 %v4620_v59  ;;  %v4809_v20 = vld [vmem:[#allocation12 + $0x2a8] sm:$0xf0]  ;;  %v4775_v27 = vld [vmem:[#allocation12 + $0x248] sm:$0xf]  ;;  %v4520_v35 = vor.u32 %v6444_v26, %v4519_v21  ;;  %v4975_v47 = vld [vmem:[#allocation12 + $0x3d0] sm:$0xf]  ;;  %v4720_v56 = vor.u32 %v6493_v46, %v4719_v45 }
  0x50   :  { %v6430_v16 = vld [vmem:[#allocation22 + $0x4] sm:$0xf0]  ;;  %v6508_v28 = vld [vmem:[#allocation12 + $0x264] sm:$0xf0]  ;;  %v6440_v29 = vld [vmem:[#allocation12 + $0x4c] sm:$0xf]  ;;  %v4812_v32 = vor.u32 %v6512_v17, %v4809_v20 }
  0x51   :  { %1242 = vmatpush.bf16.msrb.mxu1 %v4872_v58  ;;  %1270 = vmatpush.bf16.msrb.mxu3 %v4876_v62  ;;  %v4471_v18 = vld [vmem:[#allocation22] sm:$0xf]  ;;  %v4521_v30 = vld [vmem:[#allocation12 + $0x68] sm:$0xf0]  ;;  %v4487_v37 = vld [vmem:[#allocation12 + $0x8] sm:$0xf]  ;;  %v4776_v39 = vor.u32 %v6508_v28, %v4775_v27 }
  0x52   :  { %v7304_v22 = vor.u32 %v6430_v16, %v4471_v18  ;;  %v4473_v23 = vld [vmem:[#allocation22 + $0x8] sm:$0xf0]  ;;  %v6504_v33 = vld [vmem:[#allocation12 + $0x24c] sm:$0xf]  ;;  %v6436_v38 = vld [vmem:[#allocation12 + $0x24] sm:$0xf0]  ;;  %v4524_v2 = vor.u32 %v6440_v29, %v4521_v30 }
  0x53   :  { %1229 = vmatpush.bf16.msrb.mxu0 %v4584_v6  ;;  %1257 = vmatpush.bf16.msrb.mxu2 %v4588_v8  ;;  %v4777_v36 = vld [vmem:[#allocation12 + $0x268] sm:$0xf0]  ;;  %v4743_v40 = vld [vmem:[#allocation12 + $0x208] sm:$0xf]  ;;  %v6557_v48 = vld [vmem:[#allocation12 + $0x3ec] sm:$0xf0]  ;;  %v4488_v49 = vor.u32 %v6436_v38, %v4487_v37 }
  0x54   :  { %1205 = vmatmul.bf16.vlgmr.msra.gmra.mxu2 %v7304_v22  ;;  %1177 = vmatmul.bf16.vlgmr.msra.gmra.mxu0 %v7304_v22  ;;  %v6429_v31 = vld [vmem:[#allocation22 + $0x4] sm:$0xf]  ;;  %v6500_v41 = vld [vmem:[#allocation12 + $0x224] sm:$0xf0]  ;;  %v6432_v42 = vld [vmem:[#allocation12 + $0xc] sm:$0xf]  ;;  %v4780_v1 = vor.u32 %v6504_v33, %v4777_v36  ;;  %v4976_v57 = vor.u32 %v6557_v48, %v4975_v47 }
  0x55   :  { %1243 = vmatpush.bf16.msrb.mxu1 %v4840_v7  ;;  %1271 = vmatpush.bf16.msrb.mxu3 %v4844_v12  ;;  %v7308_v34 = vor.u32 %v6429_v31, %v4473_v23  ;;  %v4489_v43 = vld [vmem:[#allocation12 + $0x28] sm:$0xf0]  ;;  %v6489_v50 = vld [vmem:[#allocation12 + $0x1d4] sm:$0xf]  ;;  %v4744_v52 = vor.u32 %v6500_v41, %v4743_v40  ;;  %v4687_v58 = vld [vmem:[#allocation12 + $0x190] sm:$0xf] }
  0x56   :  { %v6496_v44 = vld [vmem:[#allocation12 + $0x20c] sm:$0xf]  ;;  %v4721_v51 = vld [vmem:[#allocation12 + $0x1f0] sm:$0xf0]  ;;  %v4492_v53 = vor.u32 %v6432_v42, %v4489_v43  ;;  %v6485_v61 = vld [vmem:[#allocation12 + $0x1ac] sm:$0xf0] }
  0x57   :  { %1230 = vmatpush.bf16.msrb.mxu0 %v4552_v19  ;;  %1258 = vmatpush.bf16.msrb.mxu2 %v4556_v25  ;;  %v4745_v4 = vld [vmem:[#allocation12 + $0x228] sm:$0xf0]  ;;  %v6553_v54 = vld [vmem:[#allocation12 + $0x3d4] sm:$0xf]  ;;  %v4724_v60 = vor.u32 %v6489_v50, %v4721_v51  ;;  %v4943_v62 = vld [vmem:[#allocation12 + $0x390] sm:$0xf]  ;;  %v4688_v8 = vor.u32 %v6485_v61, %v4687_v58 }
  0x58   :  { %1219 = vmatmul.bf16.vlgmr.msra.gmra.mxu3 %v7308_v34  ;;  %1191 = vmatmul.bf16.vlgmr.msra.gmra.mxu1 %v7308_v34  ;;  %v4977_v55 = vld [vmem:[#allocation12 + $0x3f0] sm:$0xf0]  ;;  %v4748_v59 = vor.u32 %v6496_v44, %v4745_v4  ;;  %v6549_v63 = vld [vmem:[#allocation12 + $0x3ac] sm:$0xf0] }
  0x59   :  { %1244 = vmatpush.bf16.msrb.mxu1 %v4808_v24  ;;  %1272 = vmatpush.bf16.msrb.mxu3 %v4812_v32  ;;  %v4980_v5 = vor.u32 %v6553_v54, %v4977_v55  ;;  %v6481_v0 = vld [vmem:[#allocation12 + $0x194] sm:$0xf]  ;;  %v4944_v9 = vor.u32 %v6549_v63, %v4943_v62  ;;  %v4655_v10 = vld [vmem:[#allocation12 + $0x150] sm:$0xf] }
  0x5a   :  { %v4689_v3 = vld [vmem:[#allocation12 + $0x1b0] sm:$0xf0]  ;;  %v6477_v11 = vld [vmem:[#allocation12 + $0x16c] sm:$0xf0] }
  0x5b   :  { %1231 = vmatpush.bf16.msrb.mxu0 %v4520_v35  ;;  %1259 = vmatpush.bf16.msrb.mxu2 %v4524_v2  ;;  %v6545_v6 = vld [vmem:[#allocation12 + $0x394] sm:$0xf]  ;;  %v4692_v12 = vor.u32 %v6481_v0, %v4689_v3  ;;  %v4911_v14 = vld [vmem:[#allocation12 + $0x350] sm:$0xf]  ;;  %v4656_v20 = vor.u32 %v6477_v11, %v4655_v10 }
  0x5c   :  { %v4945_v7 = vld [vmem:[#allocation12 + $0x3b0] sm:$0xf0]  ;;  %v6541_v15 = vld [vmem:[#allocation12 + $0x36c] sm:$0xf0] }
  0x5d   :  { %1245 = vmatpush.bf16.msrb.mxu1 %v4776_v39  ;;  %1273 = vmatpush.bf16.msrb.mxu3 %v4780_v1  ;;  %v4948_v13 = vor.u32 %v6545_v6, %v4945_v7  ;;  %v6473_v16 = vld [vmem:[#allocation12 + $0x154] sm:$0xf]  ;;  %v4912_v21 = vor.u32 %v6541_v15, %v4911_v14  ;;  %v4623_v23 = vld [vmem:[#allocation12 + $0x110] sm:$0xf] }
  0x5e   :  { %v4657_v17 = vld [vmem:[#allocation12 + $0x170] sm:$0xf0]  ;;  %v6469_v24 = vld [vmem:[#allocation12 + $0x12c] sm:$0xf0] }
  0x5f   :  { %1232 = vmatpush.bf16.msrb.mxu0 %v4488_v49  ;;  %1260 = vmatpush.bf16.msrb.mxu2 %v4492_v53  ;;  %v6537_v18 = vld [vmem:[#allocation12 + $0x354] sm:$0xf]  ;;  %v4660_v25 = vor.u32 %v6473_v16, %v4657_v17  ;;  %v4879_v27 = vld [vmem:[#allocation12 + $0x310] sm:$0xf]  ;;  %v4624_v33 = vor.u32 %v6469_v24, %v4623_v23  ;;  %v6490_v23 = vld [vmem:[#allocation12 + $0x1dc] sm:$0xf] }
  0x60   :  { %v4913_v19 = vld [vmem:[#allocation12 + $0x370] sm:$0xf0]  ;;  %v6533_v28 = vld [vmem:[#allocation12 + $0x32c] sm:$0xf0] }
  0x61   :  { %1246 = vmatpush.bf16.msrb.mxu1 %v4744_v52  ;;  %1274 = vmatpush.bf16.msrb.mxu3 %v4748_v59  ;;  %v4916_v26 = vor.u32 %v6537_v18, %v4913_v19  ;;  %v6465_v29 = vld [vmem:[#allocation12 + $0x114] sm:$0xf]  ;;  %v4880_v35 = vor.u32 %v6533_v28, %v4879_v27  ;;  %v4591_v36 = vld [vmem:[#allocation12 + $0xd0] sm:$0xf]  ;;  %v4727_v18 = vld [vmem:[#allocation12 + $0x1d8] sm:$0xf] }
  0x62   :  { %v4625_v30 = vld [vmem:[#allocation12 + $0x130] sm:$0xf0]  ;;  %v6461_v37 = vld [vmem:[#allocation12 + $0xec] sm:$0xf0]  ;;  %v6494_v19 = vld [vmem:[#allocation12 + $0x1f4] sm:$0xf0] }
  0x63   :  { %1281 = vmatpush.bf16.msra.mxu0 %v4720_v56  ;;  %1309 = vmatpush.bf16.msra.mxu2 %v4724_v60  ;;  %v6529_v31 = vld [vmem:[#allocation12 + $0x314] sm:$0xf]  ;;  %v4628_v38 = vor.u32 %v6465_v29, %v4625_v30  ;;  %v4847_v2 = vld [vmem:[#allocation12 + $0x2d0] sm:$0xf]  ;;  %v4592_v45 = vor.u32 %v6461_v37, %v4591_v36  ;;  %v6554_v27 = vld [vmem:[#allocation12 + $0x3dc] sm:$0xf] }
  0x64   :  { %1233 = vmatmul.bf16.vlgmr.msrb.gmra.mxu0 %v7304_v22  ;;  %1261 = vmatmul.bf16.vlgmr.msrb.gmra.mxu2 %v7304_v22  ;;  %v4881_v32 = vld [vmem:[#allocation12 + $0x330] sm:$0xf0]  ;;  %v6525_v40 = vld [vmem:[#allocation12 + $0x2ec] sm:$0xf0]  ;;  %v4985_v28 = vld [vmem:[#allocation12 + $0x3f8] sm:$0xf0] }
  0x65   :  { %1295 = vmatpush.bf16.msra.mxu1 %v4976_v57  ;;  %1323 = vmatpush.bf16.msra.mxu3 %v4980_v5  ;;  %v4884_v39 = vor.u32 %v6529_v31, %v4881_v32  ;;  %v6457_v41 = vld [vmem:[#allocation12 + $0xd4] sm:$0xf]  ;;  %v4848_v1 = vor.u32 %v6525_v40, %v4847_v2  ;;  %v4559_v46 = vld [vmem:[#allocation12 + $0x90] sm:$0xf]  ;;  %v4728_v31 = vor.u32 %v6494_v19, %v4727_v18  ;;  %v6482_v2 = vld [vmem:[#allocation12 + $0x19c] sm:$0xf] }
  0x66   :  { %v4593_v42 = vld [vmem:[#allocation12 + $0xf0] sm:$0xf0]  ;;  %v6453_v47 = vld [vmem:[#allocation12 + $0xac] sm:$0xf0]  ;;  %v4988_v37 = vor.u32 %v6554_v27, %v4985_v28  ;;  %v4697_v40 = vld [vmem:[#allocation12 + $0x1b8] sm:$0xf0] }
  0x67   :  { %1282 = vmatpush.bf16.msra.mxu0 %v4688_v8  ;;  %1310 = vmatpush.bf16.msra.mxu2 %v4692_v12  ;;  %v6521_v43 = vld [vmem:[#allocation12 + $0x2d4] sm:$0xf]  ;;  %v4596_v48 = vor.u32 %v6457_v41, %v4593_v42  ;;  %v4815_v4 = vld [vmem:[#allocation12 + $0x290] sm:$0xf]  ;;  %v4560_v55 = vor.u32 %v6453_v47, %v4559_v46  ;;  %v6546_v41 = vld [vmem:[#allocation12 + $0x39c] sm:$0xf]  ;;  %v4700_v46 = vor.u32 %v6482_v2, %v4697_v40 }
  0x68   :  { %1247 = vmatmul.bf16.vlgmr.msrb.gmra.mxu1 %v7308_v34  ;;  %1275 = vmatmul.bf16.vlgmr.msrb.gmra.mxu3 %v7308_v34  ;;  %v4849_v44 = vld [vmem:[#allocation12 + $0x2f0] sm:$0xf0]  ;;  %v6517_v50 = vld [vmem:[#allocation12 + $0x2ac] sm:$0xf0]  ;;  %v4953_v42 = vld [vmem:[#allocation12 + $0x3b8] sm:$0xf0] }
  0x69   :  { %1296 = vmatpush.bf16.msra.mxu1 %v4944_v9  ;;  %1324 = vmatpush.bf16.msra.mxu3 %v4948_v13  ;;  %v4852_v49 = vor.u32 %v6521_v43, %v4849_v44  ;;  %v6449_v51 = vld [vmem:[#allocation12 + $0x94] sm:$0xf]  ;;  %v4816_v56 = vor.u32 %v6517_v50, %v4815_v4  ;;  %v4527_v57 = vld [vmem:[#allocation12 + $0x50] sm:$0xf]  ;;  %v4956_v47 = vor.u32 %v6546_v41, %v4953_v42  ;;  %v6474_v4 = vld [vmem:[#allocation12 + $0x15c] sm:$0xf] }
  0x6a   :  { %v4561_v52 = vld [vmem:[#allocation12 + $0xb0] sm:$0xf0]  ;;  %v6445_v58 = vld [vmem:[#allocation12 + $0x6c] sm:$0xf0]  ;;  %v4665_v50 = vld [vmem:[#allocation12 + $0x178] sm:$0xf0] }
  0x6b   :  { %1283 = vmatpush.bf16.msra.mxu0 %v4656_v20  ;;  %1311 = vmatpush.bf16.msra.mxu2 %v4660_v25  ;;  %v6513_v53 = vld [vmem:[#allocation12 + $0x294] sm:$0xf]  ;;  %v4564_v59 = vor.u32 %v6449_v51, %v4561_v52  ;;  %v4783_v61 = vld [vmem:[#allocation12 + $0x250] sm:$0xf]  ;;  %v4528_v7 = vor.u32 %v6445_v58, %v4527_v57  ;;  %v4983_v20 = vld [vmem:[#allocation12 + $0x3d8] sm:$0xf]  ;;  %v4668_v57 = vor.u32 %v6474_v4, %v4665_v50 }
  0x6c   :  { %v4817_v54 = vld [vmem:[#allocation12 + $0x2b0] sm:$0xf0]  ;;  %v6509_v62 = vld [vmem:[#allocation12 + $0x26c] sm:$0xf0]  ;;  %v6538_v51 = vld [vmem:[#allocation12 + $0x35c] sm:$0xf] }
  0x6d   :  { %1297 = vmatpush.bf16.msra.mxu1 %v4912_v21  ;;  %1325 = vmatpush.bf16.msra.mxu3 %v4916_v26  ;;  %v4820_v60 = vor.u32 %v6513_v53, %v4817_v54  ;;  %v6441_v63 = vld [vmem:[#allocation12 + $0x54] sm:$0xf]  ;;  %v4495_v6 = vld [vmem:[#allocation12 + $0x10] sm:$0xf]  ;;  %v4784_v8 = vor.u32 %v6509_v62, %v4783_v61  ;;  %v6558_v21 = vld [vmem:[#allocation12 + $0x3f4] sm:$0xf0] }
  0x6e   :  { %v4529_v5 = vld [vmem:[#allocation12 + $0x70] sm:$0xf0]  ;;  %v6437_v9 = vld [vmem:[#allocation12 + $0x2c] sm:$0xf0]  ;;  %v4729_v26 = vld [vmem:[#allocation12 + $0x1f8] sm:$0xf0]  ;;  %v4984_v32 = vor.u32 %v6558_v21, %v4983_v20 }
  0x6f   :  { %1284 = vmatpush.bf16.msra.mxu0 %v4624_v33  ;;  %1312 = vmatpush.bf16.msra.mxu2 %v4628_v38  ;;  %v6505_v0 = vld [vmem:[#allocation12 + $0x254] sm:$0xf]  ;;  %v4751_v10 = vld [vmem:[#allocation12 + $0x210] sm:$0xf]  ;;  %v4532_v12 = vor.u32 %v6441_v63, %v4529_v5  ;;  %v4496_v24 = vor.u32 %v6437_v9, %v4495_v6  ;;  %v4695_v33 = vld [vmem:[#allocation12 + $0x198] sm:$0xf]  ;;  %v4732_v36 = vor.u32 %v6490_v23, %v4729_v26 }
  0x70   :  { %v4785_v3 = vld [vmem:[#allocation12 + $0x270] sm:$0xf0]  ;;  %v6501_v11 = vld [vmem:[#allocation12 + $0x22c] sm:$0xf0]  ;;  %v4951_v38 = vld [vmem:[#allocation12 + $0x398] sm:$0xf] }
  0x71   :  { %1298 = vmatpush.bf16.msra.mxu1 %v4880_v35  ;;  %1326 = vmatpush.bf16.msra.mxu3 %v4884_v39  ;;  %v4788_v13 = vor.u32 %v6505_v0, %v4785_v3  ;;  %v6433_v14 = vld [vmem:[#allocation12 + $0x14] sm:$0xf]  ;;  %v4752_v25 = vor.u32 %v6501_v11, %v4751_v10  ;;  %v6486_v35 = vld [vmem:[#allocation12 + $0x1b4] sm:$0xf0]  ;;  %v4921_v52 = vld [vmem:[#allocation12 + $0x378] sm:$0xf0] }
  0x72   :  { %v4497_v15 = vld [vmem:[#allocation12 + $0x30] sm:$0xf0]  ;;  %v6550_v39 = vld [vmem:[#allocation12 + $0x3b4] sm:$0xf0]  ;;  %v4696_v43 = vor.u32 %v6486_v35, %v4695_v33  ;;  %v4924_v58 = vor.u32 %v6538_v51, %v4921_v52  ;;  %v6466_v61 = vld [vmem:[#allocation12 + $0x11c] sm:$0xf] }
  0x73   :  { %1285 = vmatpush.bf16.msra.mxu0 %v4592_v45  ;;  %1313 = vmatpush.bf16.msra.mxu2 %v4596_v48  ;;  %v6497_v16 = vld [vmem:[#allocation12 + $0x214] sm:$0xf]  ;;  %v4500_v29 = vor.u32 %v6433_v14, %v4497_v15  ;;  %v4952_v44 = vor.u32 %v6550_v39, %v4951_v38  ;;  %v4663_v45 = vld [vmem:[#allocation12 + $0x158] sm:$0xf]  ;;  %v4633_v62 = vld [vmem:[#allocation12 + $0x138] sm:$0xf0] }
  0x74   :  { %v4753_v17 = vld [vmem:[#allocation12 + $0x230] sm:$0xf0]  ;;  %v4919_v48 = vld [vmem:[#allocation12 + $0x358] sm:$0xf]  ;;  %v6530_v63 = vld [vmem:[#allocation12 + $0x31c] sm:$0xf] }
  0x75   :  { %1299 = vmatpush.bf16.msra.mxu1 %v4848_v1  ;;  %1327 = vmatpush.bf16.msra.mxu3 %v4852_v49  ;;  %v4756_v30 = vor.u32 %v6497_v16, %v4753_v17  ;;  %v6478_v1 = vld [vmem:[#allocation12 + $0x174] sm:$0xf0]  ;;  %v4889_v5 = vld [vmem:[#allocation12 + $0x338] sm:$0xf0]  ;;  %v5131_v51 = vld [vmem:[#allocation16 + $0x118] sm:$0xf] }
  0x76   :  { %v6542_v49 = vld [vmem:[#allocation12 + $0x374] sm:$0xf0]  ;;  %v4664_v53 = vor.u32 %v6478_v1, %v4663_v45  ;;  %v4892_v9 = vor.u32 %v6530_v63, %v4889_v5  ;;  %v6522_v14 = vld [vmem:[#allocation12 + $0x2dc] sm:$0xf]  ;;  %v6596_v52 = vld [vmem:[#allocation16 + $0x128] sm:$0xf0] }
  0x77   :  { %1286 = vmatpush.bf16.msra.mxu0 %v4560_v55  ;;  %1314 = vmatpush.bf16.msra.mxu2 %v4564_v59  ;;  %v4920_v54 = vor.u32 %v6542_v49, %v4919_v48  ;;  %v4631_v55 = vld [vmem:[#allocation12 + $0x118] sm:$0xf]  ;;  %v4857_v15 = vld [vmem:[#allocation12 + $0x2f8] sm:$0xf0]  ;;  %v6631_v5 = vld [vmem:[#allocation16 + $0x240] sm:$0xf0] }
  0x78   :  { %v4887_v59 = vld [vmem:[#allocation12 + $0x318] sm:$0xf]  ;;  %v4860_v21 = vor.u32 %v6522_v14, %v4857_v15  ;;  %v4569_v26 = vld [vmem:[#allocation12 + $0xb8] sm:$0xf0]  ;;  %v5231_v14 = vld [vmem:[#allocation16 + $0x1e0] sm:$0xf] }
  0x79   :  { %1300 = vmatpush.bf16.msra.mxu1 %v4816_v56  ;;  %1328 = vmatpush.bf16.msra.mxu3 %v4820_v60  ;;  %v6470_v56 = vld [vmem:[#allocation12 + $0x134] sm:$0xf0]  ;;  %v6514_v27 = vld [vmem:[#allocation12 + $0x29c] sm:$0xf] }
  0x7a   :  { %v6534_v60 = vld [vmem:[#allocation12 + $0x334] sm:$0xf0]  ;;  %v4632_v0 = vor.u32 %v6470_v56, %v4631_v55  ;;  %v4825_v28 = vld [vmem:[#allocation12 + $0x2b8] sm:$0xf0] }
  0x7b   :  { %1287 = vmatpush.bf16.msra.mxu0 %v4528_v7  ;;  %1315 = vmatpush.bf16.msra.mxu2 %v4532_v12  ;;  %v4888_v3 = vor.u32 %v6534_v60, %v4887_v59  ;;  %v4599_v6 = vld [vmem:[#allocation12 + $0xd8] sm:$0xf]  ;;  %v6458_v12 = vld [vmem:[#allocation12 + $0xdc] sm:$0xf]  ;;  %v4828_v35 = vor.u32 %v6514_v27, %v4825_v28  ;;  %v5132_v59 = vor.u32 %v6596_v52, %v5131_v51  ;;  %v6566_v27 = vld [vmem:[#allocation16 + $0x38] sm:$0xf0] }
  0x7c   :  { %v6462_v7 = vld [vmem:[#allocation12 + $0xf4] sm:$0xf0]  ;;  %v6442_v38 = vld [vmem:[#allocation12 + $0x5c] sm:$0xf] }
  0x7d   :  { %1301 = vmatpush.bf16.msra.mxu1 %v4784_v8  ;;  %1329 = vmatpush.bf16.msra.mxu3 %v4788_v13  ;;  %v4636_v8 = vor.u32 %v6466_v61, %v4633_v62  ;;  %v4855_v10 = vld [vmem:[#allocation12 + $0x2d8] sm:$0xf]  ;;  %v4601_v13 = vld [vmem:[#allocation12 + $0xf8] sm:$0xf0]  ;;  %v4600_v16 = vor.u32 %v6462_v7, %v4599_v6  ;;  %v6591_v62 = vld [vmem:[#allocation16 + $0x100] sm:$0xf0] }
  0x7e   :  { %v6526_v11 = vld [vmem:[#allocation12 + $0x2f4] sm:$0xf0]  ;;  %v4604_v20 = vor.u32 %v6458_v12, %v4601_v13  ;;  %v4537_v39 = vld [vmem:[#allocation12 + $0x78] sm:$0xf0]  ;;  %v6586_v7 = vld [vmem:[#allocation16 + $0xd8] sm:$0xf0] }
  0x7f   :  { %1288 = vmatpush.bf16.msra.mxu0 %v4496_v24  ;;  %1316 = vmatpush.bf16.msra.mxu2 %v4500_v29  ;;  %v4856_v17 = vor.u32 %v6526_v11, %v4855_v10  ;;  %v4567_v18 = vld [vmem:[#allocation12 + $0x98] sm:$0xf]  ;;  %v6506_v2 = vld [vmem:[#allocation12 + $0x25c] sm:$0xf]  ;;  %v4540_v1 = vor.u32 %v6442_v38, %v4537_v39  ;;  %v5071_v11 = vld [vmem:[#allocation16 + $0xa0] sm:$0xf] }
  0x80   :  { %v6454_v19 = vld [vmem:[#allocation12 + $0xb4] sm:$0xf0]  ;;  %v4793_v40 = vld [vmem:[#allocation12 + $0x278] sm:$0xf0]  ;;  %v5771_v39 = vld [vmem:[#allocation16 + $0x618] sm:$0xf] }
  0x81   :  { %1302 = vmatpush.bf16.msra.mxu1 %v4752_v25  ;;  %1330 = vmatpush.bf16.msra.mxu3 %v4756_v30  ;;  %v4823_v23 = vld [vmem:[#allocation12 + $0x298] sm:$0xf]  ;;  %v6450_v25 = vld [vmem:[#allocation12 + $0x9c] sm:$0xf]  ;;  %v4568_v29 = vor.u32 %v6454_v19, %v4567_v18  ;;  %v6576_v19 = vld [vmem:[#allocation16 + $0x88] sm:$0xf0] }
  0x82   :  { %1289 = vmatmul.bf16.vlgmr.msra.gmra.mxu0 %v7304_v22  ;;  %1317 = vmatmul.bf16.vlgmr.msra.gmra.mxu2 %v7304_v22  ;;  %v6518_v24 = vld [vmem:[#allocation12 + $0x2b4] sm:$0xf0]  ;;  %v4572_v33 = vor.u32 %v6450_v25, %v4569_v26  ;;  %v6434_v48 = vld [vmem:[#allocation12 + $0x1c] sm:$0xf]  ;;  %v5011_v26 = vld [vmem:[#allocation16 + $0x28] sm:$0xf] }
  0x83   :  { %1337 = vmatpush.bf16.msrb.mxu0 %v4728_v31  ;;  %1365 = vmatpush.bf16.msrb.mxu2 %v4732_v36  ;;  %v4824_v30 = vor.u32 %v6518_v24, %v4823_v23  ;;  %v4535_v31 = vld [vmem:[#allocation12 + $0x58] sm:$0xf]  ;;  %v4505_v49 = vld [vmem:[#allocation12 + $0x38] sm:$0xf0]  ;;  %v6571_v24 = vld [vmem:[#allocation16 + $0x60] sm:$0xf0]  ;;  %v5012_v28 = vor.u32 %v6566_v27, %v5011_v26 }
  0x84   :  { %1303 = vmatmul.bf16.vlgmr.msra.gmra.mxu1 %v7308_v34  ;;  %1331 = vmatmul.bf16.vlgmr.msra.gmra.mxu3 %v7308_v34  ;;  %v4791_v36 = vld [vmem:[#allocation12 + $0x258] sm:$0xf]  ;;  %v6498_v4 = vld [vmem:[#allocation12 + $0x21c] sm:$0xf]  ;;  %v6736_v26 = vld [vmem:[#allocation16 + $0x588] sm:$0xf0] }
  0x85   :  { %1351 = vmatpush.bf16.msrb.mxu1 %v4984_v32  ;;  %1379 = vmatpush.bf16.msrb.mxu3 %v4988_v37  ;;  %v6446_v32 = vld [vmem:[#allocation12 + $0x74] sm:$0xf0]  ;;  %v4761_v50 = vld [vmem:[#allocation12 + $0x238] sm:$0xf0] }
  0x86   :  { %v6510_v37 = vld [vmem:[#allocation12 + $0x274] sm:$0xf0]  ;;  %v4536_v41 = vor.u32 %v6446_v32, %v4535_v31  ;;  %v6581_v13 = vld [vmem:[#allocation16 + $0xb0] sm:$0xf0]  ;;  %v5451_v32 = vld [vmem:[#allocation16 + $0x398] sm:$0xf] }
  0x87   :  { %1338 = vmatpush.bf16.msrb.mxu0 %v4696_v43  ;;  %1366 = vmatpush.bf16.msrb.mxu2 %v4700_v46  ;;  %v4792_v42 = vor.u32 %v6510_v37, %v4791_v36  ;;  %v4503_v43 = vld [vmem:[#allocation12 + $0x18] sm:$0xf]  ;;  %v4796_v46 = vor.u32 %v6506_v2, %v4793_v40  ;;  %v6621_v15 = vld [vmem:[#allocation16 + $0x1f0] sm:$0xf0]  ;;  %v4991_v36 = vld [vmem:[#allocation16] sm:$0xf] }
  0x88   :  { %v4759_v45 = vld [vmem:[#allocation12 + $0x218] sm:$0xf]  ;;  %v5232_v18 = vor.u32 %v6621_v15, %v5231_v14  ;;  %v6561_v37 = vld [vmem:[#allocation16 + $0x10] sm:$0xf0]  ;;  %v6756_v2 = vld [vmem:[#allocation16 + $0x628] sm:$0xf0] }
  0x89   :  { %1352 = vmatpush.bf16.msrb.mxu1 %v4952_v44  ;;  %1380 = vmatpush.bf16.msrb.mxu3 %v4956_v47  ;;  %v6438_v44 = vld [vmem:[#allocation12 + $0x34] sm:$0xf0]  ;;  %v4992_v38 = vor.u32 %v6561_v37, %v4991_v36  ;;  %v5772_v40 = vor.u32 %v6756_v2, %v5771_v39  ;;  %v6601_v51 = vld [vmem:[#allocation16 + $0x150] sm:$0xf0]  ;;  %v6696_v36 = vld [vmem:[#allocation16 + $0x448] sm:$0xf0] }
  0x8a   :  { %v6502_v47 = vld [vmem:[#allocation12 + $0x234] sm:$0xf0]  ;;  %v4504_v55 = vor.u32 %v6438_v44, %v4503_v43  ;;  %v6741_v15 = vld [vmem:[#allocation16 + $0x5b0] sm:$0xf0]  ;;  %v6731_v39 = vld [vmem:[#allocation16 + $0x560] sm:$0xf0] }
  0x8b   :  { %1339 = vmatpush.bf16.msrb.mxu0 %v4664_v53  ;;  %1367 = vmatpush.bf16.msrb.mxu2 %v4668_v57  ;;  %v5291_v53 = vld [vmem:[#allocation16 + $0x258] sm:$0xf]  ;;  %v4760_v56 = vor.u32 %v6502_v47, %v4759_v45  ;;  %v4508_v57 = vor.u32 %v6434_v48, %v4505_v49  ;;  %v5111_v60 = vld [vmem:[#allocation16 + $0xf0] sm:$0xf]  ;;  %v6671_v45 = vld [vmem:[#allocation16 + $0x380] sm:$0xf0] }
  0x8c   :  { %v5271_v63 = vld [vmem:[#allocation16 + $0x230] sm:$0xf]  ;;  %v6716_v47 = vld [vmem:[#allocation16 + $0x4e8] sm:$0xf0] }
  0x8d   :  { %1353 = vmatpush.bf16.msrb.mxu1 %v4920_v54  ;;  %1381 = vmatpush.bf16.msrb.mxu3 %v4924_v58  ;;  %v6636_v54 = vld [vmem:[#allocation16 + $0x268] sm:$0xf0]  ;;  %v4764_v58 = vor.u32 %v6498_v4, %v4761_v50  ;;  %v5272_v6 = vor.u32 %v6631_v5, %v5271_v63  ;;  %v5031_v23 = vld [vmem:[#allocation16 + $0x50] sm:$0xf]  ;;  %v6751_v4 = vld [vmem:[#allocation16 + $0x600] sm:$0xf0] }
  0x8e   :  { %v5292_v61 = vor.u32 %v6636_v54, %v5291_v53  ;;  %v5032_v25 = vor.u32 %v6571_v24, %v5031_v23  ;;  %v5431_v44 = vld [vmem:[#allocation16 + $0x370] sm:$0xf]  ;;  %v5151_v50 = vld [vmem:[#allocation16 + $0x140] sm:$0xf]  ;;  %v5411_v54 = vld [vmem:[#allocation16 + $0x348] sm:$0xf] }
  0x8f   :  { %1340 = vmatpush.bf16.msrb.mxu0 %v4632_v0  ;;  %1368 = vmatpush.bf16.msrb.mxu2 %v4636_v8  ;;  %v5112_v0 = vor.u32 %v6591_v62, %v5111_v60  ;;  %v5251_v8 = vld [vmem:[#allocation16 + $0x208] sm:$0xf]  ;;  %v5751_v48 = vld [vmem:[#allocation16 + $0x5f0] sm:$0xf]  ;;  %v5152_v53 = vor.u32 %v6601_v51, %v5151_v50  ;;  %v6746_v5 = vld [vmem:[#allocation16 + $0x5d8] sm:$0xf0] }
  0x90   :  { %v5752_v52 = vor.u32 %v6751_v4, %v5751_v48  ;;  %v5591_v60 = vld [vmem:[#allocation16 + $0x4b0] sm:$0xf]  ;;  %v5731_v62 = vld [vmem:[#allocation16 + $0x5c8] sm:$0xf]  ;;  %v6701_v23 = vld [vmem:[#allocation16 + $0x470] sm:$0xf0] }
  0x91   :  { %1354 = vmatpush.bf16.msrb.mxu1 %v4888_v3  ;;  %1382 = vmatpush.bf16.msrb.mxu3 %v4892_v9  ;;  %v5091_v3 = vld [vmem:[#allocation16 + $0xc8] sm:$0xf]  ;;  %v6626_v9 = vld [vmem:[#allocation16 + $0x218] sm:$0xf0]  ;;  %v5691_v24 = vld [vmem:[#allocation16 + $0x578] sm:$0xf] }
  0x92   :  { %v5092_v10 = vor.u32 %v6586_v7, %v5091_v3  ;;  %v5252_v12 = vor.u32 %v6626_v9, %v5251_v8  ;;  %v5391_v3 = vld [vmem:[#allocation16 + $0x320] sm:$0xf]  ;;  %v5911_v7 = vld [vmem:[#allocation16 + $0x730] sm:$0xf]  ;;  %v6791_v9 = vld [vmem:[#allocation16 + $0x740] sm:$0xf0]  ;;  %v5692_v27 = vor.u32 %v6736_v26, %v5691_v24 }
  0x93   :  { %1341 = vmatpush.bf16.msrb.mxu0 %v4600_v16  ;;  %1369 = vmatpush.bf16.msrb.mxu2 %v4604_v20  ;;  %v5072_v16 = vor.u32 %v6581_v13, %v5071_v11  ;;  %v5211_v20 = vld [vmem:[#allocation16 + $0x1b8] sm:$0xf]  ;;  %v5571_v11 = vld [vmem:[#allocation16 + $0x488] sm:$0xf]  ;;  %v5711_v13 = vld [vmem:[#allocation16 + $0x5a0] sm:$0xf] }
  0x94   :  { %v5651_v48 = vld [vmem:[#allocation16 + $0x528] sm:$0xf]  ;;  %v6726_v4 = vld [vmem:[#allocation16 + $0x538] sm:$0xf0]  ;;  %v5311_v51 = vld [vmem:[#allocation16 + $0x280] sm:$0xf] }
  0x95   :  { %1355 = vmatpush.bf16.msrb.mxu1 %v4856_v17  ;;  %1383 = vmatpush.bf16.msrb.mxu3 %v4860_v21  ;;  %v5051_v17 = vld [vmem:[#allocation16 + $0x78] sm:$0xf]  ;;  %v6616_v21 = vld [vmem:[#allocation16 + $0x1c8] sm:$0xf0]  ;;  %v5652_v50 = vor.u32 %v6726_v4, %v5651_v48  ;;  %v6866_v4 = vld [vmem:[#allocation16 + $0x998] sm:$0xf0] }
  0x97   :  { %1342 = vmatpush.bf16.msrb.mxu0 %v4568_v29  ;;  %1370 = vmatpush.bf16.msrb.mxu2 %v4572_v33  ;;  %v5191_v29 = vld [vmem:[#allocation16 + $0x190] sm:$0xf]  ;;  %v6676_v33 = vld [vmem:[#allocation16 + $0x3a8] sm:$0xf0] }
  0x99   :  { %1356 = vmatpush.bf16.msrb.mxu1 %v4824_v30  ;;  %1384 = vmatpush.bf16.msrb.mxu3 %v4828_v35  ;;  %v6611_v30 = vld [vmem:[#allocation16 + $0x1a0] sm:$0xf0]  ;;  %v5452_v35 = vor.u32 %v6676_v33, %v5451_v32  ;;  %v6781_v32 = vld [vmem:[#allocation16 + $0x6f0] sm:$0xf0] }
  0x9a   :  { %v5192_v31 = vor.u32 %v6611_v30, %v5191_v29  ;;  %v6651_v29 = vld [vmem:[#allocation16 + $0x2e0] sm:$0xf0] }
  0x9b   :  { %1343 = vmatpush.bf16.msrb.mxu0 %v4536_v41  ;;  %1371 = vmatpush.bf16.msrb.mxu2 %v4540_v1  ;;  %v5171_v41 = vld [vmem:[#allocation16 + $0x168] sm:$0xf]  ;;  %v5432_v1 = vor.u32 %v6671_v45, %v5431_v44  ;;  %v6776_v45 = vld [vmem:[#allocation16 + $0x6c8] sm:$0xf0] }
  0x9d   :  { %1357 = vmatpush.bf16.msrb.mxu1 %v4792_v42  ;;  %1385 = vmatpush.bf16.msrb.mxu3 %v4796_v46  ;;  %v6606_v42 = vld [vmem:[#allocation16 + $0x178] sm:$0xf0]  ;;  %v5611_v46 = vld [vmem:[#allocation16 + $0x4d8] sm:$0xf] }
  0x9e   :  { %v5172_v43 = vor.u32 %v6606_v42, %v5171_v41  ;;  %v5612_v49 = vor.u32 %v6716_v47, %v5611_v46  ;;  %v6646_v41 = vld [vmem:[#allocation16 + $0x2b8] sm:$0xf0]  ;;  %v5851_v42 = vld [vmem:[#allocation16 + $0x6b8] sm:$0xf]  ;;  %v5511_v46 = vld [vmem:[#allocation16 + $0x410] sm:$0xf] }
  0x9f   :  { %1344 = vmatpush.bf16.msrb.mxu0 %v4504_v55  ;;  %1372 = vmatpush.bf16.msrb.mxu2 %v4508_v57  ;;  %v6666_v55 = vld [vmem:[#allocation16 + $0x358] sm:$0xf0]  ;;  %v6691_v47 = vld [vmem:[#allocation16 + $0x420] sm:$0xf0] }
  0xa0   :  { %v5412_v57 = vor.u32 %v6666_v55, %v5411_v54 }
  0xa1   :  { %1358 = vmatpush.bf16.msrb.mxu1 %v4760_v56  ;;  %1386 = vmatpush.bf16.msrb.mxu3 %v4764_v58  ;;  %v5931_v56 = vld [vmem:[#allocation16 + $0x758] sm:$0xf]  ;;  %v6796_v58 = vld [vmem:[#allocation16 + $0x768] sm:$0xf0] }
  0xa2   :  { %1345 = vmatmul.bf16.vlgmr.msrb.gmra.mxu0 %v7304_v22  ;;  %1373 = vmatmul.bf16.vlgmr.msrb.gmra.mxu2 %v7304_v22  ;;  %v5052_v22 = vor.u32 %v6576_v19, %v5051_v17  ;;  %v5371_v17 = vld [vmem:[#allocation16 + $0x2f8] sm:$0xf]  ;;  %v5891_v19 = vld [vmem:[#allocation16 + $0x708] sm:$0xf] }
  0xa3   :  { %3477 = vmatpush.bf16.msra.mxu0 %v5132_v59  ;;  %3505 = vmatpush.bf16.msra.mxu2 %v5452_v35  ;;  %v5932_v59 = vor.u32 %v6796_v58, %v5931_v56  ;;  %v5531_v35 = vld [vmem:[#allocation16 + $0x438] sm:$0xf]  ;;  %v6771_v56 = vld [vmem:[#allocation16 + $0x6a0] sm:$0xf0] }
  0xa4   :  { %1359 = vmatmul.bf16.vlgmr.msrb.gmra.mxu1 %v7308_v34  ;;  %1387 = vmatmul.bf16.vlgmr.msrb.gmra.mxu3 %v7308_v34  ;;  %v5212_v34 = vor.u32 %v6616_v21, %v5211_v20  ;;  %v6786_v21 = vld [vmem:[#allocation16 + $0x718] sm:$0xf0]  ;;  %v5532_v37 = vor.u32 %v6696_v36, %v5531_v35  ;;  %v6871_v35 = vld [vmem:[#allocation16 + $0x9c0] sm:$0xf0] }
  0xa5   :  { %3491 = vmatpush.bf16.msra.mxu1 %v5292_v61  ;;  %3519 = vmatpush.bf16.msra.mxu3 %v5612_v49  ;;  %v6711_v61 = vld [vmem:[#allocation16 + $0x4c0] sm:$0xf0]  ;;  %v5512_v49 = vor.u32 %v6691_v47, %v5511_v46 }
  0xa6   :  { %v5592_v63 = vor.u32 %v6711_v61, %v5591_v60  ;;  %v6686_v60 = vld [vmem:[#allocation16 + $0x3f8] sm:$0xf0]  ;;  %v5631_v61 = vld [vmem:[#allocation16 + $0x500] sm:$0xf] }
  0xa7   :  { %3478 = vmatpush.bf16.msra.mxu0 %v5112_v0  ;;  %3506 = vmatpush.bf16.msra.mxu2 %v5432_v1  ;;  %v5732_v0 = vor.u32 %v6746_v5, %v5731_v62  ;;  %v5852_v1 = vor.u32 %v6776_v45, %v5851_v42  ;;  %v6091_v5 = vld [vmem:[#allocation16 + $0x898] sm:$0xf]  ;;  %v6821_v42 = vld [vmem:[#allocation16 + $0x830] sm:$0xf0] }
  0xa9   :  { %3492 = vmatpush.bf16.msra.mxu1 %v5272_v6  ;;  %v6661_v6 = vld [vmem:[#allocation16 + $0x330] sm:$0xf0]  ;;  %3520 = vmatpush.bf16.msra.mxu3 %v5592_v63 }
  0xaa   :  { %v5392_v8 = vor.u32 %v6661_v6, %v5391_v3  ;;  %v6721_v63 = vld [vmem:[#allocation16 + $0x510] sm:$0xf0] }
  0xab   :  { %3479 = vmatpush.bf16.msra.mxu0 %v5092_v10  ;;  %3507 = vmatpush.bf16.msra.mxu2 %v5412_v57  ;;  %v5912_v10 = vor.u32 %v6791_v9, %v5911_v7  ;;  %v5632_v3 = vor.u32 %v6721_v63, %v5631_v61  ;;  %v5811_v7 = vld [vmem:[#allocation16 + $0x668] sm:$0xf]  ;;  %v6766_v9 = vld [vmem:[#allocation16 + $0x678] sm:$0xf0] }
  0xac   :  { %v6634_v61 = vld [vmem:[#allocation16 + $0x25c] sm:$0xf] }
  0xad   :  { %3493 = vmatpush.bf16.msra.mxu1 %v5252_v12  ;;  %v6706_v12 = vld [vmem:[#allocation16 + $0x498] sm:$0xf0] }
  0xae   :  { %v5572_v14 = vor.u32 %v6706_v12, %v5571_v11  ;;  %v5812_v11 = vor.u32 %v6766_v9, %v5811_v7  ;;  %v5471_v12 = vld [vmem:[#allocation16 + $0x3c0] sm:$0xf]  ;;  %v6584_v9 = vld [vmem:[#allocation16 + $0xcc] sm:$0xf] }
  0xaf   :  { %3480 = vmatpush.bf16.msra.mxu0 %v5072_v16  ;;  %3508 = vmatpush.bf16.msra.mxu2 %v5392_v8  ;;  %v5712_v16 = vor.u32 %v6741_v15, %v5711_v13  ;;  %v6681_v13 = vld [vmem:[#allocation16 + $0x3d0] sm:$0xf0]  ;;  %v6071_v15 = vld [vmem:[#allocation16 + $0x870] sm:$0xf] }
  0xb0   :  { %3521 = vmatpush.bf16.msra.mxu3 %v5572_v14  ;;  %v5472_v14 = vor.u32 %v6681_v13, %v5471_v12  ;;  %v5991_v13 = vld [vmem:[#allocation16 + $0x7d0] sm:$0xf] }
  0xb1   :  { %3494 = vmatpush.bf16.msra.mxu1 %v5232_v18  ;;  %v6656_v18 = vld [vmem:[#allocation16 + $0x308] sm:$0xf0] }
  0xb2   :  { %v5372_v20 = vor.u32 %v6656_v18, %v5371_v17 }
  0xb3   :  { %3481 = vmatpush.bf16.msra.mxu0 %v5052_v22  ;;  %v5892_v22 = vor.u32 %v6786_v21, %v5891_v19  ;;  %v6761_v21 = vld [vmem:[#allocation16 + $0x650] sm:$0xf0] }
  0xb4   :  { %3509 = vmatpush.bf16.msra.mxu2 %v5372_v20  ;;  %v5791_v20 = vld [vmem:[#allocation16 + $0x640] sm:$0xf] }
  0xb5   :  { %3495 = vmatpush.bf16.msra.mxu1 %v5212_v34  ;;  %v5551_v34 = vld [vmem:[#allocation16 + $0x460] sm:$0xf] }
  0xb7   :  { %3482 = vmatpush.bf16.msra.mxu0 %v5032_v25  ;;  %v5552_v25 = vor.u32 %v6701_v23, %v5551_v34  ;;  %v6876_v34 = vld [vmem:[#allocation16 + $0x9e8] sm:$0xf0] }
  0xb9   :  { %3496 = vmatpush.bf16.msra.mxu1 %v5192_v31  ;;  %3522 = vmatpush.bf16.msra.mxu3 %v5552_v25  ;;  %v5871_v31 = vld [vmem:[#allocation16 + $0x6e0] sm:$0xf]  ;;  %v5792_v25 = vor.u32 %v6761_v21, %v5791_v20 }
  0xba   :  { %v5872_v33 = vor.u32 %v6781_v32, %v5871_v31 }
  0xbb   :  { %3483 = vmatpush.bf16.msra.mxu0 %v5012_v28  ;;  %v5351_v28 = vld [vmem:[#allocation16 + $0x2d0] sm:$0xf] }
  0xbc   :  { %v5352_v30 = vor.u32 %v6651_v29, %v5351_v28 }
  0xbd   :  { %3497 = vmatpush.bf16.msra.mxu1 %v5172_v43  ;;  %v7324_v43 = vld [vmem:[#allocation14] sm:$0xff]  ;;  %3523 = vmatpush.bf16.msra.mxu3 %v5532_v37 }
  0xbe   :  { %3510 = vmatpush.bf16.msra.mxu2 %v5352_v30  ;;  %v503_v54 = vperm.slane %v7324_v43, 0  ;;  %v504_v17 = vperm.slane %v7324_v43, 1  ;;  %v6826_v30 = vld [vmem:[#allocation16 + $0x858] sm:$0xf0] }
  0xbf   :  { %3484 = vmatpush.bf16.msra.mxu0 %v4992_v38  ;;  %v5671_v38 = vld [vmem:[#allocation16 + $0x550] sm:$0xf] }
  0xc0   :  { %v5672_v2 = vor.u32 %v6731_v39, %v5671_v38 }
  0xc1   :  { %3498 = vmatpush.bf16.msra.mxu1 %v5152_v53  ;;  %v5831_v53 = vld [vmem:[#allocation16 + $0x690] sm:$0xf]  ;;  %3524 = vmatpush.bf16.msra.mxu3 %v5512_v49  ;;  %v6211_v49 = vld [vmem:[#allocation16 + $0x988] sm:$0xf] }
  0xc2   :  { %v5832_v58 = vor.u32 %v6771_v56, %v5831_v53  ;;  %v6589_v53 = vld [vmem:[#allocation16 + $0xf4] sm:$0xf] }
  0xc3   :  { %3533 = vmatpush.bf16.msrb.mxu0 %v5772_v40  ;;  %v5331_v40 = vld [vmem:[#allocation16 + $0x2a8] sm:$0xf] }
  0xc4   :  { %v5332_v44 = vor.u32 %v6646_v41, %v5331_v40  ;;  %v5133_v40 = vld [vmem:[#allocation16 + $0x12c] sm:$0xf0]  ;;  %v6031_v41 = vld [vmem:[#allocation16 + $0x820] sm:$0xf] }
  0xc5   :  { %3547 = vmatpush.bf16.msrb.mxu1 %v5932_v59  ;;  %v5491_v59 = vld [vmem:[#allocation16 + $0x3e8] sm:$0xf]  ;;  %v6032_v46 = vor.u32 %v6821_v42, %v6031_v41 }
  0xc6   :  { %3511 = vmatpush.bf16.msra.mxu2 %v5332_v44  ;;  %v5492_v62 = vor.u32 %v6686_v60, %v5491_v59 }
  0xc7   :  { %3534 = vmatpush.bf16.msrb.mxu0 %v5752_v52  ;;  %v6641_v52 = vld [vmem:[#allocation16 + $0x290] sm:$0xf0] }
  0xc8   :  { %v5312_v55 = vor.u32 %v6641_v52, %v5311_v51  ;;  %3525 = vmatpush.bf16.msra.mxu3 %v5492_v62  ;;  %v505_v51 = vperm.slane %v7324_v43, 2  ;;  %v5293_v62 = vld [vmem:[#allocation16 + $0x26c] sm:$0xf0] }
  0xc9   :  { %3548 = vmatpush.bf16.msrb.mxu1 %v5912_v10  ;;  %v5296_v12 = vor.u32 %v6634_v61, %v5293_v62  ;;  %v5033_v61 = vld [vmem:[#allocation16 + $0x64] sm:$0xf0] }
  0xca   :  { %3512 = vmatpush.bf16.msra.mxu2 %v5312_v55  ;;  %v6212_v55 = vor.u32 %v6866_v4, %v6211_v49  ;;  %v6801_v49 = vld [vmem:[#allocation16 + $0x790] sm:$0xf0] }
  0xcb   :  { %3535 = vmatpush.bf16.msrb.mxu0 %v5732_v0  ;;  %v6836_v0 = vld [vmem:[#allocation16 + $0x8a8] sm:$0xf0] }
  0xcc   :  { %v6092_v6 = vor.u32 %v6836_v0, %v6091_v5  ;;  %3526 = vmatpush.bf16.msra.mxu3 %v5472_v14  ;;  %v6811_v14 = vld [vmem:[#allocation16 + $0x7e0] sm:$0xf0] }
  0xcd   :  { %3549 = vmatpush.bf16.msrb.mxu1 %v5892_v22  ;;  %v6251_v22 = vld [vmem:[#allocation16 + $0x9d8] sm:$0xf]  ;;  %v5992_v20 = vor.u32 %v6811_v14, %v5991_v13  ;;  %v6111_v13 = vld [vmem:[#allocation16 + $0x8c0] sm:$0xf] }
  0xce   :  { %3561 = vmatpush.bf16.msrb.mxu2 %v6092_v6  ;;  %v6252_v26 = vor.u32 %v6876_v34, %v6251_v22  ;;  %v6861_v6 = vld [vmem:[#allocation16 + $0x970] sm:$0xf0]  ;;  %v6171_v22 = vld [vmem:[#allocation16 + $0x938] sm:$0xf]  ;;  %v6856_v34 = vld [vmem:[#allocation16 + $0x948] sm:$0xf0] }
  0xcf   :  { %3536 = vmatpush.bf16.msrb.mxu0 %v5712_v16  ;;  %v6831_v16 = vld [vmem:[#allocation16 + $0x880] sm:$0xf0] }
  0xd0   :  { %v6072_v19 = vor.u32 %v6831_v16, %v6071_v15  ;;  %3575 = vmatpush.bf16.msrb.mxu3 %v6252_v26  ;;  %v506_v16 = vperm.slane %v7324_v43, 3  ;;  %v5073_v26 = vld [vmem:[#allocation16 + $0xb4] sm:$0xf0] }
  0xd1   :  { %3550 = vmatpush.bf16.msrb.mxu1 %v5872_v33  ;;  %v1178_v57 = vpop.f32.mrf.mxu0  ;;  %v6231_v33 = vld [vmem:[#allocation16 + $0x9b0] sm:$0xf] }
  0xd2   :  { %v1179_v10 = vadd.f32 %v1178_v57, %v503_v54  ;;  %3562 = vmatpush.bf16.msrb.mxu2 %v6072_v19  ;;  %v6232_v37 = vor.u32 %v6871_v35, %v6231_v33  ;;  %v6011_v57 = vld [vmem:[#allocation16 + $0x7f8] sm:$0xf]  ;;  %v5273_v19 = vld [vmem:[#allocation16 + $0x244] sm:$0xf0]  ;;  %v6624_v35 = vld [vmem:[#allocation16 + $0x20c] sm:$0xf] }
  0xd3   :  { %3537 = vmatpush.bf16.msrb.mxu0 %v5692_v27  ;;  %v6051_v27 = vld [vmem:[#allocation16 + $0x848] sm:$0xf] }
  0xd4   :  { %v6052_v32 = vor.u32 %v6826_v30, %v6051_v27  ;;  %3576 = vmatpush.bf16.msrb.mxu3 %v6232_v37  ;;  %v6172_v27 = vor.u32 %v6856_v34, %v6171_v22  ;;  %v5613_v22 = vld [vmem:[#allocation16 + $0x4ec] sm:$0xf0] }
  0xd5   :  { %3551 = vmatpush.bf16.msrb.mxu1 %v5852_v1  ;;  %v1192_v8 = vpop.f32.mrf.mxu1 }
  0xd6   :  { %v1193_v23 = vadd.f32 %v1192_v8, %v1179_v10  ;;  %3563 = vmatpush.bf16.msrb.mxu2 %v6052_v32  ;;  %v5093_v10 = vld [vmem:[#allocation16 + $0xdc] sm:$0xf0]  ;;  %v6806_v32 = vld [vmem:[#allocation16 + $0x7b8] sm:$0xf0] }
  0xd7   :  { %3538 = vmatpush.bf16.msrb.mxu0 %v5672_v2  ;;  %v1206_v18 = vpop.f32.mrf.mxu2  ;;  %v6594_v2 = vld [vmem:[#allocation16 + $0x11c] sm:$0xf]  ;;  %v5096_v21 = vor.u32 %v6584_v9, %v5093_v10  ;;  %v5433_v9 = vld [vmem:[#allocation16 + $0x384] sm:$0xf0] }
  0xd8   :  { %v1207_v31 = vadd.f32 %v1206_v18, %v504_v17  ;;  %v1393_v38 = vmax.f32 %v1193_v23, 0.0  ;;  %v5136_v48 = vor.u32 %v6594_v2, %v5133_v40  ;;  %3577 = vmatpush.bf16.msrb.mxu3 %v6212_v55  ;;  %v6629_v18 = vld [vmem:[#allocation16 + $0x234] sm:$0xf]  ;;  %v6151_v2 = vld [vmem:[#allocation16 + $0x910] sm:$0xf] }
  0xd9   :  { %3552 = vmatpush.bf16.msrb.mxu1 %v5832_v58  ;;  %v1180_v24 = vpop.f32.mrf.mxu0  ;;  %v6816_v58 = vld [vmem:[#allocation16 + $0x808] sm:$0xf0]  ;;  %v5276_v30 = vor.u32 %v6629_v18, %v5273_v19  ;;  %v6851_v40 = vld [vmem:[#allocation16 + $0x920] sm:$0xf0]  ;;  %v6674_v55 = vld [vmem:[#allocation16 + $0x39c] sm:$0xf] }
  0xda   :  { %v1181_v29 = vadd.f32 %v1180_v24, %v503_v54  ;;  %v5113_v54 = vld [vmem:[#allocation16 + $0x104] sm:$0xf0]  ;;  %3564 = vmatpush.bf16.msrb.mxu2 %v6032_v46  ;;  %v6012_v63 = vor.u32 %v6816_v58, %v6011_v57  ;;  %v6569_v58 = vld [vmem:[#allocation16 + $0x54] sm:$0xf] }
  0xdb   :  { %3539 = vmatpush.bf16.msrb.mxu0 %v5652_v50  ;;  %v1220_v28 = vpop.f32.mrf.mxu3  ;;  %v5116_v0 = vor.u32 %v6589_v53, %v5113_v54  ;;  %v5233_v53 = vld [vmem:[#allocation16 + $0x1f4] sm:$0xf0]  ;;  %v5036_v14 = vor.u32 %v6569_v58, %v5033_v61  ;;  %v6841_v19 = vld [vmem:[#allocation16 + $0x8d0] sm:$0xf0] }
  0xdc   :  { %v1221_v44 = vadd.f32 %v1220_v28, %v1207_v31  ;;  %v5971_v31 = vld [vmem:[#allocation16 + $0x7a8] sm:$0xf]  ;;  %v5553_v58 = vld [vmem:[#allocation16 + $0x474] sm:$0xf0] }
  0xdd   :  { %3553 = vmatpush.bf16.msrb.mxu1 %v5812_v11  ;;  %v1194_v36 = vpop.f32.mrf.mxu1  ;;  %v5972_v37 = vor.u32 %v6806_v32, %v5971_v31  ;;  %v6709_v32 = vld [vmem:[#allocation16 + $0x4b4] sm:$0xf] }
  0xde   :  { %v1195_v39 = vadd.f32 %v1194_v36, %v1181_v29  ;;  %v1394_v59 = vmax.f32 %v1221_v44, 0.0  ;;  %3565 = vmatpush.bf16.msrb.mxu2 %v6012_v63  ;;  %v5253_v36 = vld [vmem:[#allocation16 + $0x21c] sm:$0xf0]  ;;  %v6574_v44 = vld [vmem:[#allocation16 + $0x7c] sm:$0xf] }
  0xdf   :  { %3540 = vmatpush.bf16.msrb.mxu0 %v5632_v3  ;;  %v1208_v1 = vpop.f32.mrf.mxu2  ;;  %v6191_v3 = vld [vmem:[#allocation16 + $0x960] sm:$0xf]  ;;  %v5256_v46 = vor.u32 %v6624_v35, %v5253_v36  ;;  %v6131_v63 = vld [vmem:[#allocation16 + $0x8e8] sm:$0xf]  ;;  %v6559_v35 = vld [vmem:[#allocation16 + $0x4] sm:$0xf] }
  0xe0   :  { %v1401_v45 = vmax.f32 %v1195_v39, 0.0  ;;  %v1209_v47 = vadd.f32 %v1208_v1, %v504_v17  ;;  %v6192_v11 = vor.u32 %v6861_v6, %v6191_v3  ;;  %v6152_v1 = vor.u32 %v6851_v40, %v6151_v2  ;;  %v6614_v6 = vld [vmem:[#allocation16 + $0x1bc] sm:$0xf]  ;;  %v4993_v36 = vld [vmem:[#allocation16 + $0x14] sm:$0xf0] }
  0xe1   :  { %3554 = vmatpush.bf16.msrb.mxu1 %v5792_v25  ;;  %v1234_v52 = vpop.f32.mrf.mxu0  ;;  %v6579_v25 = vld [vmem:[#allocation16 + $0xa4] sm:$0xf] }
  0xe2   :  { %v7328_v50 = vpack.c.bf16 %v1401_v45, %v1393_v38  ;;  %v1235_v8 = vadd.f32 %v1234_v52, %v505_v51  ;;  %3578 = vmatpush.bf16.msrb.mxu3 %v6192_v11  ;;  %3566 = vmatpush.bf16.msrb.mxu2 %v5992_v20  ;;  %v5076_v39 = vor.u32 %v6579_v25, %v5073_v26  ;;  %v5053_v45 = vld [vmem:[#allocation16 + $0x8c] sm:$0xf0]  ;;  %v6609_v26 = vld [vmem:[#allocation16 + $0x194] sm:$0xf]  ;;  %v6659_v40 = vld [vmem:[#allocation16 + $0x324] sm:$0xf] }
  0xe3   :  { %v1222_v56 = vpop.f32.mrf.mxu3  ;;  %v5056_v57 = vor.u32 %v6574_v44, %v5053_v45  ;;  %v4996_v44 = vor.u32 %v6559_v35, %v4993_v36  ;;  %v6749_v36 = vld [vmem:[#allocation16 + $0x5f4] sm:$0xf] }
  0xe4   :  { %v1223_v60 = vadd.f32 %v1222_v56, %v1209_v47  ;;  %3485 = vmatmul.bf16.vlgmr.msra.gmra.mxu0 %v7328_v50  ;;  %v6619_v47 = vld [vmem:[#allocation16 + $0x1e4] sm:$0xf] }
  0xe5   :  { %v1248_v5 = vpop.f32.mrf.mxu1  ;;  %3589 = vmatpush.bf16.msra.mxu0 %v5136_v48  ;;  %v5951_v48 = vld [vmem:[#allocation16 + $0x780] sm:$0xf]  ;;  %v5236_v3 = vor.u32 %v6619_v47, %v5233_v53  ;;  %v6654_v53 = vld [vmem:[#allocation16 + $0x2fc] sm:$0xf] }
  0xe6   :  { %v1402_v7 = vmax.f32 %v1223_v60, 0.0  ;;  %v1249_v23 = vadd.f32 %v1248_v5, %v1235_v8  ;;  %3579 = vmatpush.bf16.msrb.mxu3 %v6172_v27  ;;  %3567 = vmatpush.bf16.msrb.mxu2 %v5972_v37  ;;  %v5952_v54 = vor.u32 %v6801_v49, %v5951_v48  ;;  %v6846_v5 = vld [vmem:[#allocation16 + $0x8f8] sm:$0xf0]  ;;  %v6669_v8 = vld [vmem:[#allocation16 + $0x374] sm:$0xf] }
  0xe7   :  { %v1262_v17 = vpop.f32.mrf.mxu2  ;;  %v5436_v18 = vor.u32 %v6669_v8, %v5433_v9  ;;  %v5193_v27 = vld [vmem:[#allocation16 + $0x1a4] sm:$0xf0]  ;;  %v5573_v47 = vld [vmem:[#allocation16 + $0x49c] sm:$0xf0]  ;;  %v6694_v9 = vld [vmem:[#allocation16 + $0x43c] sm:$0xf] }
  0xe8   :  { %v7332_v15 = vpack.c.bf16 %v1402_v7, %v1394_v59  ;;  %v1263_v33 = vadd.f32 %v1262_v17, %v506_v16  ;;  %v1395_v41 = vmax.f32 %v1249_v23, 0.0  ;;  %v5453_v59 = vld [vmem:[#allocation16 + $0x3ac] sm:$0xf0]  ;;  %v6132_v7 = vor.u32 %v6846_v5, %v6131_v63  ;;  %v5013_v17 = vld [vmem:[#allocation16 + $0x3c] sm:$0xf0] }
  0xe9   :  { %3590 = vmatpush.bf16.msra.mxu0 %v5116_v0  ;;  %v1236_v24 = vpop.f32.mrf.mxu0  ;;  %v5456_v62 = vor.u32 %v6674_v55, %v5453_v59  ;;  %v6112_v23 = vor.u32 %v6841_v19, %v6111_v13  ;;  %v5196_v37 = vor.u32 %v6609_v26, %v5193_v27  ;;  %v508_v59 = vperm.slane %v7324_v43, 5  ;;  %v6649_v5 = vld [vmem:[#allocation16 + $0x2d4] sm:$0xf] }
  0xea   :  { %3499 = vmatmul.bf16.vlgmr.msra.gmra.mxu1 %v7332_v15  ;;  %v1237_v28 = vadd.f32 %v1236_v24, %v505_v51  ;;  %3580 = vmatpush.bf16.msrb.mxu3 %v6152_v1  ;;  %v6664_v24 = vld [vmem:[#allocation16 + $0x34c] sm:$0xf] }
  0xeb   :  { %v1276_v29 = vpop.f32.mrf.mxu3  ;;  %3603 = vmatpush.bf16.msra.mxu1 %v5296_v12  ;;  %3568 = vmatpush.bf16.msrb.mxu2 %v5952_v54  ;;  %v5213_v12 = vld [vmem:[#allocation16 + $0x1cc] sm:$0xf0] }
  0xec   :  { %v1277_v4 = vadd.f32 %v1276_v29, %v1263_v33  ;;  %v5216_v34 = vor.u32 %v6614_v6, %v5213_v12  ;;  %v5413_v29 = vld [vmem:[#allocation16 + $0x35c] sm:$0xf0]  ;;  %v5593_v33 = vld [vmem:[#allocation16 + $0x4c4] sm:$0xf0]  ;;  %v5373_v54 = vld [vmem:[#allocation16 + $0x30c] sm:$0xf0] }
  0xed   :  { %v1250_v38 = vpop.f32.mrf.mxu1  ;;  %3591 = vmatpush.bf16.msra.mxu0 %v5096_v21  ;;  %v6714_v21 = vld [vmem:[#allocation16 + $0x4dc] sm:$0xf]  ;;  %v5416_v31 = vor.u32 %v6664_v24, %v5413_v29  ;;  %v5596_v2 = vor.u32 %v6709_v32, %v5593_v33 }
  0xee   :  { %v1251_v42 = vadd.f32 %v1250_v38, %v1237_v28  ;;  %v1396_v10 = vmax.f32 %v1277_v4, 0.0  ;;  %3581 = vmatpush.bf16.msrb.mxu3 %v6132_v7  ;;  %v5616_v28 = vor.u32 %v6714_v21, %v5613_v22  ;;  %v6604_v38 = vld [vmem:[#allocation16 + $0x16c] sm:$0xf]  ;;  %v6599_v4 = vld [vmem:[#allocation16 + $0x144] sm:$0xf] }
  0xef   :  { %3604 = vmatpush.bf16.msra.mxu1 %v5276_v30  ;;  %v1264_v52 = vpop.f32.mrf.mxu2  ;;  %v5773_v21 = vld [vmem:[#allocation16 + $0x62c] sm:$0xf0] }
  0xf0   :  { %v1403_v51 = vmax.f32 %v1251_v42, 0.0  ;;  %v1265_v56 = vadd.f32 %v1264_v52, %v506_v16  ;;  %v6564_v16 = vld [vmem:[#allocation16 + $0x2c] sm:$0xf]  ;;  %v507_v42 = vperm.slane %v7324_v43, 4 }
  0xf1   :  { %3592 = vmatpush.bf16.msra.mxu0 %v5076_v39  ;;  %v5016_v30 = vor.u32 %v6564_v16, %v5013_v17  ;;  %v5173_v39 = vld [vmem:[#allocation16 + $0x17c] sm:$0xf0]  ;;  %v6644_v16 = vld [vmem:[#allocation16 + $0x2ac] sm:$0xf] }
  0xf2   :  { %v7336_v60 = vpack.c.bf16 %v1403_v51, %v1395_v41  ;;  %3582 = vmatpush.bf16.msrb.mxu3 %v6112_v23  ;;  %v5393_v41 = vld [vmem:[#allocation16 + $0x334] sm:$0xf0]  ;;  %v5176_v49 = vor.u32 %v6604_v38, %v5173_v39  ;;  %v5333_v17 = vld [vmem:[#allocation16 + $0x2bc] sm:$0xf0]  ;;  %v5513_v23 = vld [vmem:[#allocation16 + $0x424] sm:$0xf0] }
  0xf3   :  { %v1278_v0 = vpop.f32.mrf.mxu3  ;;  %3605 = vmatpush.bf16.msra.mxu1 %v5256_v46  ;;  %v5396_v45 = vor.u32 %v6659_v40, %v5393_v41  ;;  %v6704_v46 = vld [vmem:[#allocation16 + $0x48c] sm:$0xf]  ;;  %v5153_v51 = vld [vmem:[#allocation16 + $0x154] sm:$0xf0]  ;;  %v5336_v22 = vor.u32 %v6644_v16, %v5333_v17  ;;  %v6794_v39 = vld [vmem:[#allocation16 + $0x75c] sm:$0xf] }
  0xf4   :  { %v1279_v11 = vadd.f32 %v1278_v0, %v1265_v56  ;;  %3513 = vmatmul.bf16.vlgmr.msra.gmra.mxu2 %v7336_v60  ;;  %v5576_v52 = vor.u32 %v6704_v46, %v5573_v47  ;;  %v5376_v56 = vor.u32 %v6654_v53, %v5373_v54  ;;  %v5156_v61 = vor.u32 %v6599_v4, %v5153_v51  ;;  %v5353_v0 = vld [vmem:[#allocation16 + $0x2e4] sm:$0xf0]  ;;  %v6744_v47 = vld [vmem:[#allocation16 + $0x5cc] sm:$0xf]  ;;  %v6679_v4 = vld [vmem:[#allocation16 + $0x3c4] sm:$0xf] }
  0xf5   :  { %3593 = vmatpush.bf16.msra.mxu0 %v5056_v57  ;;  %3617 = vmatpush.bf16.msra.mxu2 %v5456_v62  ;;  %v6699_v57 = vld [vmem:[#allocation16 + $0x464] sm:$0xf]  ;;  %v5356_v7 = vor.u32 %v6649_v5, %v5353_v0  ;;  %v5913_v53 = vld [vmem:[#allocation16 + $0x744] sm:$0xf0]  ;;  %v5473_v54 = vld [vmem:[#allocation16 + $0x3d4] sm:$0xf0] }
  0xf6   :  { %v1404_v20 = vmax.f32 %v1279_v11, 0.0  ;;  %v5556_v63 = vor.u32 %v6699_v57, %v5553_v58  ;;  %v6739_v57 = vld [vmem:[#allocation16 + $0x5a4] sm:$0xf]  ;;  %v5713_v58 = vld [vmem:[#allocation16 + $0x5b4] sm:$0xf0] }
  0xf7   :  { %3606 = vmatpush.bf16.msra.mxu1 %v5236_v3  ;;  %v6734_v5 = vld [vmem:[#allocation16 + $0x57c] sm:$0xf]  ;;  %v5693_v0 = vld [vmem:[#allocation16 + $0x58c] sm:$0xf0] }
  0xf8   :  { %v7339_v25 = vpack.c.bf16 %v1404_v20, %v1396_v10  ;;  %v5533_v10 = vld [vmem:[#allocation16 + $0x44c] sm:$0xf0]  ;;  %v6754_v20 = vld [vmem:[#allocation16 + $0x61c] sm:$0xf] }
  0xf9   :  { %3594 = vmatpush.bf16.msra.mxu0 %v5036_v14  ;;  %3618 = vmatpush.bf16.msra.mxu2 %v5436_v18  ;;  %v5536_v14 = vor.u32 %v6694_v9, %v5533_v10  ;;  %v5873_v9 = vld [vmem:[#allocation16 + $0x6f4] sm:$0xf0]  ;;  %v509_v10 = vperm.slane %v7324_v43, 6  ;;  %v6774_v16 = vld [vmem:[#allocation16 + $0x6bc] sm:$0xf] }
  0xfa   :  { %3527 = vmatmul.bf16.vlgmr.msra.gmra.mxu3 %v7339_v25  ;;  %v5853_v17 = vld [vmem:[#allocation16 + $0x6cc] sm:$0xf0] }
  0xfb   :  { %3607 = vmatpush.bf16.msra.mxu1 %v5216_v34  ;;  %3631 = vmatpush.bf16.msra.mxu3 %v5616_v28  ;;  %v6689_v34 = vld [vmem:[#allocation16 + $0x414] sm:$0xf]  ;;  %v5776_v28 = vor.u32 %v6754_v20, %v5773_v21  ;;  %v6724_v20 = vld [vmem:[#allocation16 + $0x52c] sm:$0xf]  ;;  %v5653_v21 = vld [vmem:[#allocation16 + $0x53c] sm:$0xf0] }
  0xfc   :  { %v5516_v29 = vor.u32 %v6689_v34, %v5513_v23  ;;  %v5856_v23 = vor.u32 %v6774_v16, %v5853_v17 }
  0xfd   :  { %3595 = vmatpush.bf16.msra.mxu0 %v5016_v30  ;;  %3619 = vmatpush.bf16.msra.mxu2 %v5416_v31  ;;  %v6639_v30 = vld [vmem:[#allocation16 + $0x284] sm:$0xf]  ;;  %v5313_v31 = vld [vmem:[#allocation16 + $0x294] sm:$0xf0] }
  0xfe   :  { %v5316_v38 = vor.u32 %v6639_v30, %v5313_v31  ;;  %v5656_v31 = vor.u32 %v6724_v20, %v5653_v21  ;;  %v6632_v20 = vld [vmem:[#allocation16 + $0x248] sm:$0xf0] }
  0xff   :  { %v1290_v1 = vpop.f32.mrf.mxu0  ;;  %3608 = vmatpush.bf16.msra.mxu1 %v5196_v37  ;;  %3632 = vmatpush.bf16.msra.mxu3 %v5596_v2  ;;  %v5753_v37 = vld [vmem:[#allocation16 + $0x604] sm:$0xf0]  ;;  %v6684_v2 = vld [vmem:[#allocation16 + $0x3ec] sm:$0xf] }
 0x100   :  { %v1291_v55 = vadd.f32 %v1290_v1, %v507_v42 }
 0x101   :  { %v1304_v48 = vpop.f32.mrf.mxu1  ;;  %3596 = vmatpush.bf16.msra.mxu0 %v4996_v44  ;;  %3620 = vmatpush.bf16.msra.mxu2 %v5396_v45  ;;  %v5493_v44 = vld [vmem:[#allocation16 + $0x3fc] sm:$0xf0]  ;;  %v5756_v45 = vor.u32 %v6749_v36, %v5753_v37  ;;  %v5633_v36 = vld [vmem:[#allocation16 + $0x514] sm:$0xf0]  ;;  %v6834_v37 = vld [vmem:[#allocation16 + $0x89c] sm:$0xf] }
 0x102   :  { %v1305_v3 = vadd.f32 %v1304_v48, %v1291_v55  ;;  %v5496_v1 = vor.u32 %v6684_v2, %v5493_v44  ;;  %v5733_v48 = vld [vmem:[#allocation16 + $0x5dc] sm:$0xf0]  ;;  %v6093_v2 = vld [vmem:[#allocation16 + $0x8ac] sm:$0xf0] }
 0x103   :  { %3609 = vmatpush.bf16.msra.mxu1 %v5176_v49  ;;  %3633 = vmatpush.bf16.msra.mxu3 %v5576_v52  ;;  %v6789_v52 = vld [vmem:[#allocation16 + $0x734] sm:$0xf]  ;;  %v5736_v55 = vor.u32 %v6744_v47, %v5733_v48  ;;  %v5813_v44 = vld [vmem:[#allocation16 + $0x67c] sm:$0xf0]  ;;  %v6096_v47 = vor.u32 %v6834_v37, %v6093_v2  ;;  %v6814_v2 = vld [vmem:[#allocation16 + $0x7fc] sm:$0xf] }
 0x104   :  { %v1397_v18 = vmax.f32 %v1305_v3, 0.0 }
 0x105   :  { %v1318_v62 = vpop.f32.mrf.mxu2  ;;  %3621 = vmatpush.bf16.msra.mxu2 %v5376_v56  ;;  %v5476_v56 = vor.u32 %v6679_v4, %v5473_v54  ;;  %v6073_v54 = vld [vmem:[#allocation16 + $0x884] sm:$0xf0] }
 0x106   :  { %v1319_v11 = vadd.f32 %v1318_v62, %v508_v59  ;;  %v5893_v62 = vld [vmem:[#allocation16 + $0x71c] sm:$0xf0] }
 0x107   :  { %v1332_v6 = vpop.f32.mrf.mxu3  ;;  %v1292_v8 = vpop.f32.mrf.mxu0  ;;  %3610 = vmatpush.bf16.msra.mxu1 %v5156_v61  ;;  %3634 = vmatpush.bf16.msra.mxu3 %v5556_v63  ;;  %v6784_v61 = vld [vmem:[#allocation16 + $0x70c] sm:$0xf]  ;;  %v5716_v63 = vor.u32 %v6739_v57, %v5713_v58 }
 0x108   :  { %v1293_v12 = vadd.f32 %v1292_v8, %v507_v42  ;;  %v1333_v24 = vadd.f32 %v1332_v6, %v1319_v11  ;;  %v5933_v42 = vld [vmem:[#allocation16 + $0x76c] sm:$0xf0]  ;;  %v5896_v3 = vor.u32 %v6784_v61, %v5893_v62  ;;  %v6779_v8 = vld [vmem:[#allocation16 + $0x6e4] sm:$0xf]  ;;  %v5696_v11 = vor.u32 %v6734_v5, %v5693_v0  ;;  %v5793_v61 = vld [vmem:[#allocation16 + $0x654] sm:$0xf0] }
 0x109   :  { %v1306_v13 = vpop.f32.mrf.mxu1  ;;  %3622 = vmatpush.bf16.msra.mxu2 %v5356_v7  ;;  %v5936_v49 = vor.u32 %v6794_v39, %v5933_v42  ;;  %v6764_v42 = vld [vmem:[#allocation16 + $0x66c] sm:$0xf]  ;;  %v6637_v5 = vld [vmem:[#allocation16 + $0x270] sm:$0xf0] }
 0x10a   :  { %v1307_v19 = vadd.f32 %v1306_v13, %v1293_v12  ;;  %v1398_v40 = vmax.f32 %v1333_v24, 0.0  ;;  %v6729_v12 = vld [vmem:[#allocation16 + $0x554] sm:$0xf]  ;;  %v5673_v13 = vld [vmem:[#allocation16 + $0x564] sm:$0xf0]  ;;  %v510_v24 = vperm.slane %v7324_v43, 7 }
 0x10b   :  { %3635 = vmatpush.bf16.msra.mxu3 %v5536_v14  ;;  %v5876_v14 = vor.u32 %v6779_v8, %v5873_v9  ;;  %v6253_v8 = vld [vmem:[#allocation16 + $0x9ec] sm:$0xf0]  ;;  %v6824_v9 = vld [vmem:[#allocation16 + $0x84c] sm:$0xf] }
 0x10c   :  { %v1405_v26 = vmax.f32 %v1307_v19, 0.0  ;;  %v5676_v19 = vor.u32 %v6729_v12, %v5673_v13  ;;  %v5099_v12 = vld [vmem:[#allocation16 + $0xd0] sm:$0xf]  ;;  %v6587_v13 = vld [vmem:[#allocation16 + $0xe0] sm:$0xf0] }
 0x10d   :  { %v1320_v27 = vpop.f32.mrf.mxu2  ;;  %3623 = vmatpush.bf16.msra.mxu2 %v5336_v22 }
 0x10e   :  { %v7344_v32 = vpack.c.bf16 %v1405_v26, %v1397_v18  ;;  %v1321_v33 = vadd.f32 %v1320_v27, %v508_v59  ;;  %v5916_v59 = vor.u32 %v6789_v52, %v5913_v53  ;;  %v6769_v27 = vld [vmem:[#allocation16 + $0x694] sm:$0xf]  ;;  %v5816_v53 = vor.u32 %v6764_v42, %v5813_v44 }
 0x10f   :  { %v1334_v35 = vpop.f32.mrf.mxu3  ;;  %3636 = vmatpush.bf16.msra.mxu3 %v5516_v29 }
 0x110   :  { %v1335_v41 = vadd.f32 %v1334_v35, %v1321_v33  ;;  %3541 = vmatmul.bf16.vlgmr.msrb.gmra.mxu0 %v7344_v32  ;;  %v6719_v35 = vld [vmem:[#allocation16 + $0x504] sm:$0xf] }
 0x111   :  { %3645 = vmatpush.bf16.msrb.mxu0 %v5776_v28  ;;  %3624 = vmatpush.bf16.msra.mxu2 %v5316_v38  ;;  %v5833_v28 = vld [vmem:[#allocation16 + $0x6a4] sm:$0xf0] }
 0x112   :  { %v1406_v46 = vmax.f32 %v1335_v41, 0.0  ;;  %v5836_v39 = vor.u32 %v6769_v27, %v5833_v28  ;;  %v6597_v41 = vld [vmem:[#allocation16 + $0x130] sm:$0xf0]  ;;  %v6033_v27 = vld [vmem:[#allocation16 + $0x834] sm:$0xf0] }
 0x113   :  { %3637 = vmatpush.bf16.msra.mxu3 %v5496_v1  ;;  %v5079_v28 = vld [vmem:[#allocation16 + $0xa8] sm:$0xf] }
 0x114   :  { %v7347_v51 = vpack.c.bf16 %v1406_v46, %v1398_v40  ;;  %v5139_v40 = vld [vmem:[#allocation16 + $0x120] sm:$0xf]  ;;  %v5636_v46 = vor.u32 %v6719_v35, %v5633_v36  ;;  %v6627_v35 = vld [vmem:[#allocation16 + $0x220] sm:$0xf0] }
 0x115   :  { %3646 = vmatpush.bf16.msrb.mxu0 %v5756_v45  ;;  %v5140_v48 = vor.u32 %v6597_v41, %v5139_v40  ;;  %v6013_v40 = vld [vmem:[#allocation16 + $0x80c] sm:$0xf0]  ;;  %v5059_v41 = vld [vmem:[#allocation16 + $0x80] sm:$0xf] }
 0x116   :  { %3555 = vmatmul.bf16.vlgmr.msrb.gmra.mxu1 %v7347_v51 }
 0x117   :  { %3659 = vmatpush.bf16.msrb.mxu1 %v5936_v49  ;;  %3638 = vmatpush.bf16.msra.mxu3 %v5476_v56  ;;  %v6829_v49 = vld [vmem:[#allocation16 + $0x874] sm:$0xf]  ;;  %v6592_v56 = vld [vmem:[#allocation16 + $0x108] sm:$0xf0] }
 0x119   :  { %3647 = vmatpush.bf16.msrb.mxu0 %v5736_v55  ;;  %v5119_v55 = vld [vmem:[#allocation16 + $0xf8] sm:$0xf] }
 0x11b   :  { %3660 = vmatpush.bf16.msrb.mxu1 %v5916_v59  ;;  %v6759_v59 = vld [vmem:[#allocation16 + $0x644] sm:$0xf] }
 0x11d   :  { %3648 = vmatpush.bf16.msrb.mxu0 %v5716_v63  ;;  %v5299_v63 = vld [vmem:[#allocation16 + $0x260] sm:$0xf] }
 0x11e   :  { %v5300_v17 = vor.u32 %v6637_v5, %v5299_v63  ;;  %v6854_v63 = vld [vmem:[#allocation16 + $0x93c] sm:$0xf]  ;;  %v6173_v5 = vld [vmem:[#allocation16 + $0x94c] sm:$0xf0] }
 0x11f   :  { %v1346_v6 = vpop.f32.mrf.mxu0  ;;  %3661 = vmatpush.bf16.msrb.mxu1 %v5896_v3  ;;  %v6076_v3 = vor.u32 %v6829_v49, %v6073_v54  ;;  %v6193_v49 = vld [vmem:[#allocation16 + $0x974] sm:$0xf0] }
 0x120   :  { %3597 = vmatmul.bf16.vlgmr.msra.gmra.mxu0 %v7328_v50  ;;  %v1347_v18 = vadd.f32 %v1346_v6, %v509_v10  ;;  %v5120_v6 = vor.u32 %v6592_v56, %v5119_v55  ;;  %v5039_v54 = vld [vmem:[#allocation16 + $0x58] sm:$0xf]  ;;  %v6572_v55 = vld [vmem:[#allocation16 + $0x68] sm:$0xf0] }
 0x121   :  { %v1360_v7 = vpop.f32.mrf.mxu1  ;;  %3649 = vmatpush.bf16.msrb.mxu0 %v5696_v11  ;;  %v6053_v11 = vld [vmem:[#allocation16 + $0x85c] sm:$0xf0] }
 0x122   :  { %v1361_v29 = vadd.f32 %v1360_v7, %v1347_v18  ;;  %v6874_v7 = vld [vmem:[#allocation16 + $0x9dc] sm:$0xf] }
 0x123   :  { %3662 = vmatpush.bf16.msrb.mxu1 %v5876_v14  ;;  %v6256_v18 = vor.u32 %v6874_v7, %v6253_v8  ;;  %v6567_v7 = vld [vmem:[#allocation16 + $0x40] sm:$0xf0] }
 0x124   :  { %v1399_v45 = vmax.f32 %v1361_v29, 0.0  ;;  %v6582_v29 = vld [vmem:[#allocation16 + $0xb8] sm:$0xf0] }
 0x125   :  { %v1374_v22 = vpop.f32.mrf.mxu2  ;;  %3650 = vmatpush.bf16.msrb.mxu0 %v5676_v19  ;;  %v5279_v19 = vld [vmem:[#allocation16 + $0x238] sm:$0xf]  ;;  %v5080_v37 = vor.u32 %v6582_v29, %v5079_v28  ;;  %v5179_v28 = vld [vmem:[#allocation16 + $0x170] sm:$0xf]  ;;  %v6607_v29 = vld [vmem:[#allocation16 + $0x180] sm:$0xf0] }
 0x126   :  { %3611 = vmatmul.bf16.vlgmr.msra.gmra.mxu1 %v7332_v15  ;;  %v1375_v43 = vadd.f32 %v1374_v22, %v510_v24  ;;  %v6056_v22 = vor.u32 %v6824_v9, %v6053_v11  ;;  %v6176_v9 = vor.u32 %v6854_v63, %v6173_v5  ;;  %v5199_v11 = vld [vmem:[#allocation16 + $0x198] sm:$0xf]  ;;  %v6792_v5 = vld [vmem:[#allocation16 + $0x748] sm:$0xf0] }
 0x127   :  { %v1388_v34 = vpop.f32.mrf.mxu3  ;;  %v1348_v26 = vpop.f32.mrf.mxu0  ;;  %3663 = vmatpush.bf16.msrb.mxu1 %v5856_v23  ;;  %v6869_v23 = vld [vmem:[#allocation16 + $0x9b4] sm:$0xf]  ;;  %v5919_v63 = vld [vmem:[#allocation16 + $0x738] sm:$0xf] }
 0x128   :  { %v1349_v30 = vadd.f32 %v1348_v26, %v509_v10  ;;  %v1389_v57 = vadd.f32 %v1388_v34, %v1375_v43  ;;  %v5796_v10 = vor.u32 %v6759_v59, %v5793_v61  ;;  %v5100_v34 = vor.u32 %v6587_v13, %v5099_v12  ;;  %v6819_v26 = vld [vmem:[#allocation16 + $0x824] sm:$0xf]  ;;  %v6577_v43 = vld [vmem:[#allocation16 + $0x90] sm:$0xf0]  ;;  %v6612_v12 = vld [vmem:[#allocation16 + $0x1a8] sm:$0xf0] }
 0x129   :  { %v1362_v33 = vpop.f32.mrf.mxu1  ;;  %3651 = vmatpush.bf16.msrb.mxu0 %v5656_v31  ;;  %v6036_v36 = vor.u32 %v6819_v26, %v6033_v27  ;;  %v6617_v59 = vld [vmem:[#allocation16 + $0x1d0] sm:$0xf0] }
 0x12a   :  { %v1363_v38 = vadd.f32 %v1362_v33, %v1349_v30  ;;  %v1400_v14 = vmax.f32 %v1389_v57, 0.0  ;;  %v5280_v30 = vor.u32 %v6632_v20, %v5279_v19  ;;  %v5259_v33 = vld [vmem:[#allocation16 + $0x210] sm:$0xf]  ;;  %v4999_v19 = vld [vmem:[#allocation16 + $0x8] sm:$0xf] }
 0x12b   :  { %3664 = vmatpush.bf16.msrb.mxu1 %v5836_v39  ;;  %v6213_v39 = vld [vmem:[#allocation16 + $0x99c] sm:$0xf0]  ;;  %v5260_v42 = vor.u32 %v6627_v35, %v5259_v33  ;;  %v6562_v20 = vld [vmem:[#allocation16 + $0x18] sm:$0xf0]  ;;  %v6757_v26 = vld [vmem:[#allocation16 + $0x630] sm:$0xf0] }
 0x12c   :  { %v1407_v1 = vmax.f32 %v1363_v38, 0.0  ;;  %v6864_v38 = vld [vmem:[#allocation16 + $0x98c] sm:$0xf]  ;;  %v6133_v35 = vld [vmem:[#allocation16 + $0x8fc] sm:$0xf0] }
 0x12d   :  { %v1376_v52 = vpop.f32.mrf.mxu2  ;;  %3652 = vmatpush.bf16.msrb.mxu0 %v5636_v46  ;;  %v6216_v44 = vor.u32 %v6864_v38, %v6213_v39  ;;  %v6016_v46 = vor.u32 %v6814_v2, %v6013_v40  ;;  %v6844_v33 = vld [vmem:[#allocation16 + $0x8ec] sm:$0xf]  ;;  %v5439_v38 = vld [vmem:[#allocation16 + $0x378] sm:$0xf]  ;;  %v5180_v39 = vor.u32 %v6607_v29, %v5179_v28  ;;  %v5879_v28 = vld [vmem:[#allocation16 + $0x6e8] sm:$0xf] }
 0x12e   :  { %v7354_v4 = vpack.c.bf16 %v1407_v1, %v1399_v45  ;;  %v1377_v58 = vadd.f32 %v1376_v52, %v510_v24  ;;  %v6233_v24 = vld [vmem:[#allocation16 + $0x9c4] sm:$0xf0]  ;;  %v6622_v1 = vld [vmem:[#allocation16 + $0x1f8] sm:$0xf0]  ;;  %v6809_v52 = vld [vmem:[#allocation16 + $0x7d4] sm:$0xf] }
 0x12f   :  { %v1390_v62 = vpop.f32.mrf.mxu3  ;;  %3665 = vmatpush.bf16.msrb.mxu1 %v5816_v53  ;;  %v6236_v31 = vor.u32 %v6869_v23, %v6233_v24  ;;  %v5239_v45 = vld [vmem:[#allocation16 + $0x1e8] sm:$0xf]  ;;  %v6677_v23 = vld [vmem:[#allocation16 + $0x3b0] sm:$0xf0]  ;;  %v5779_v24 = vld [vmem:[#allocation16 + $0x620] sm:$0xf] }
 0x130   :  { %3569 = vmatmul.bf16.vlgmr.msrb.gmra.mxu2 %v7354_v4  ;;  %v1391_v0 = vadd.f32 %v1390_v62, %v1377_v58  ;;  %3653 = vmatmul.bf16.vlgmr.msrb.gmra.mxu0 %v7344_v32  ;;  %v5993_v53 = vld [vmem:[#allocation16 + $0x7e4] sm:$0xf0]  ;;  %v5240_v56 = vor.u32 %v6622_v1, %v5239_v45  ;;  %v5219_v58 = vld [vmem:[#allocation16 + $0x1c0] sm:$0xf]  ;;  %v5040_v62 = vor.u32 %v6572_v55, %v5039_v54  ;;  %v6672_v2 = vld [vmem:[#allocation16 + $0x388] sm:$0xf0] }
 0x131   :  { %3673 = vmatpush.bf16.msrb.mxu2 %v6096_v47  ;;  %3701 = vmatpush.bf16.msra.mxu0 %v5140_v48  ;;  %v5060_v47 = vor.u32 %v6577_v43, %v5059_v41  ;;  %v6859_v48 = vld [vmem:[#allocation16 + $0x964] sm:$0xf]  ;;  %v5996_v61 = vor.u32 %v6809_v52, %v5993_v53  ;;  %v5220_v8 = vor.u32 %v6617_v59, %v5219_v58  ;;  %v5759_v40 = vld [vmem:[#allocation16 + $0x5f8] sm:$0xf]  ;;  %v6752_v41 = vld [vmem:[#allocation16 + $0x608] sm:$0xf0] }
 0x132   :  { %v1408_v16 = vmax.f32 %v1391_v0, 0.0  ;;  %v6196_v57 = vor.u32 %v6859_v48, %v6193_v49  ;;  %v6804_v0 = vld [vmem:[#allocation16 + $0x7ac] sm:$0xf]  ;;  %v6136_v43 = vor.u32 %v6844_v33, %v6133_v35  ;;  %v6602_v45 = vld [vmem:[#allocation16 + $0x158] sm:$0xf0]  ;;  %v5440_v48 = vor.u32 %v6672_v2, %v5439_v38 }
 0x133   :  { %3666 = vmatpush.bf16.msrb.mxu1 %v5796_v10  ;;  %v6849_v10 = vld [vmem:[#allocation16 + $0x914] sm:$0xf]  ;;  %v6113_v1 = vld [vmem:[#allocation16 + $0x8d4] sm:$0xf0]  ;;  %v5760_v49 = vor.u32 %v6752_v41, %v5759_v40  ;;  %v5619_v52 = vld [vmem:[#allocation16 + $0x4e0] sm:$0xf] }
 0x134   :  { %v7358_v21 = vpack.c.bf16 %v1408_v16, %v1400_v14  ;;  %v6153_v16 = vld [vmem:[#allocation16 + $0x924] sm:$0xf0]  ;;  %v6717_v53 = vld [vmem:[#allocation16 + $0x4f0] sm:$0xf0]  ;;  %v5419_v55 = vld [vmem:[#allocation16 + $0x350] sm:$0xf] }
 0x135   :  { %3674 = vmatpush.bf16.msrb.mxu2 %v6076_v3  ;;  %3702 = vmatpush.bf16.msra.mxu0 %v5120_v6  ;;  %v5973_v3 = vld [vmem:[#allocation16 + $0x7bc] sm:$0xf0]  ;;  %v5019_v6 = vld [vmem:[#allocation16 + $0x30] sm:$0xf]  ;;  %v6156_v27 = vor.u32 %v6849_v10, %v6153_v16  ;;  %v5920_v10 = vor.u32 %v6792_v5, %v5919_v63  ;;  %v6787_v16 = vld [vmem:[#allocation16 + $0x720] sm:$0xf0] }
 0x136   :  { %3583 = vmatmul.bf16.vlgmr.msrb.gmra.mxu3 %v7358_v21  ;;  %3667 = vmatmul.bf16.vlgmr.msrb.gmra.mxu1 %v7347_v51  ;;  %v5976_v13 = vor.u32 %v6804_v0, %v5973_v3  ;;  %v5020_v14 = vor.u32 %v6567_v7, %v5019_v6  ;;  %v5739_v59 = vld [vmem:[#allocation16 + $0x5d0] sm:$0xf]  ;;  %v5599_v3 = vld [vmem:[#allocation16 + $0x4b8] sm:$0xf]  ;;  %v6712_v6 = vld [vmem:[#allocation16 + $0x4c8] sm:$0xf0] }
 0x137   :  { %3715 = vmatpush.bf16.msra.mxu1 %v5300_v17  ;;  %3687 = vmatpush.bf16.msrb.mxu3 %v6256_v18  ;;  %v6799_v17 = vld [vmem:[#allocation16 + $0x784] sm:$0xf]  ;;  %v5953_v18 = vld [vmem:[#allocation16 + $0x794] sm:$0xf0]  ;;  %v6782_v29 = vld [vmem:[#allocation16 + $0x6f8] sm:$0xf0] }
 0x138   :  { %v6702_v33 = vld [vmem:[#allocation16 + $0x478] sm:$0xf0]  ;;  %v5880_v38 = vor.u32 %v6782_v29, %v5879_v28  ;;  %v6732_v2 = vld [vmem:[#allocation16 + $0x568] sm:$0xf0]  ;;  %v5859_v41 = vld [vmem:[#allocation16 + $0x6c0] sm:$0xf] }
 0x139   :  { %3675 = vmatpush.bf16.msrb.mxu2 %v6056_v22  ;;  %3703 = vmatpush.bf16.msra.mxu0 %v5100_v34  ;;  %v5459_v22 = vld [vmem:[#allocation16 + $0x3a0] sm:$0xf]  ;;  %v5200_v34 = vor.u32 %v6612_v12, %v5199_v11  ;;  %v5719_v11 = vld [vmem:[#allocation16 + $0x5a8] sm:$0xf]  ;;  %v6742_v12 = vld [vmem:[#allocation16 + $0x5b8] sm:$0xf0] }
 0x13a   :  { %v5639_v63 = vld [vmem:[#allocation16 + $0x508] sm:$0xf]  ;;  %v6722_v5 = vld [vmem:[#allocation16 + $0x518] sm:$0xf0] }
 0x13b   :  { %3716 = vmatpush.bf16.msra.mxu1 %v5280_v30  ;;  %3688 = vmatpush.bf16.msrb.mxu3 %v6236_v31  ;;  %v5956_v30 = vor.u32 %v6799_v17, %v5953_v18  ;;  %v5000_v31 = vor.u32 %v6562_v20, %v4999_v19  ;;  %v5579_v18 = vld [vmem:[#allocation16 + $0x490] sm:$0xf]  ;;  %v6707_v19 = vld [vmem:[#allocation16 + $0x4a0] sm:$0xf0]  ;;  %v5720_v20 = vor.u32 %v6742_v12, %v5719_v11  ;;  %v6762_v28 = vld [vmem:[#allocation16 + $0x658] sm:$0xf0] }
 0x13c   :  { %v6767_v11 = vld [vmem:[#allocation16 + $0x680] sm:$0xf0]  ;;  %v6682_v29 = vld [vmem:[#allocation16 + $0x3d8] sm:$0xf0] }
 0x13d   :  { %3676 = vmatpush.bf16.msrb.mxu2 %v6036_v36  ;;  %3704 = vmatpush.bf16.msra.mxu0 %v5080_v37  ;;  %v5460_v36 = vor.u32 %v6677_v23, %v5459_v22  ;;  %v5780_v37 = vor.u32 %v6757_v26, %v5779_v24  ;;  %v5379_v22 = vld [vmem:[#allocation16 + $0x300] sm:$0xf]  ;;  %v6737_v26 = vld [vmem:[#allocation16 + $0x590] sm:$0xf0] }
 0x13e   :  { %v5699_v24 = vld [vmem:[#allocation16 + $0x580] sm:$0xf] }
 0x13f   :  { %3717 = vmatpush.bf16.msra.mxu1 %v5260_v42  ;;  %3689 = vmatpush.bf16.msrb.mxu3 %v6216_v44  ;;  %v6839_v42 = vld [vmem:[#allocation16 + $0x8c4] sm:$0xf]  ;;  %v5159_v44 = vld [vmem:[#allocation16 + $0x148] sm:$0xf]  ;;  %v5700_v35 = vor.u32 %v6737_v26, %v5699_v24 }
 0x140   :  { %3625 = vmatmul.bf16.vlgmr.msra.gmra.mxu2 %v7336_v60  ;;  %v5160_v54 = vor.u32 %v6602_v45, %v5159_v44  ;;  %v5539_v44 = vld [vmem:[#allocation16 + $0x440] sm:$0xf]  ;;  %v6697_v45 = vld [vmem:[#allocation16 + $0x450] sm:$0xf0]  ;;  %v5479_v26 = vld [vmem:[#allocation16 + $0x3c8] sm:$0xf] }
 0x141   :  { %3677 = vmatpush.bf16.msrb.mxu2 %v6016_v46  ;;  %3705 = vmatpush.bf16.msra.mxu0 %v5060_v47  ;;  %v5939_v46 = vld [vmem:[#allocation16 + $0x760] sm:$0xf]  ;;  %v6797_v47 = vld [vmem:[#allocation16 + $0x770] sm:$0xf0] }
 0x142   :  { %v5940_v58 = vor.u32 %v6797_v47, %v5939_v46  ;;  %v5339_v46 = vld [vmem:[#allocation16 + $0x2b0] sm:$0xf]  ;;  %v6647_v47 = vld [vmem:[#allocation16 + $0x2c0] sm:$0xf0] }
 0x143   :  { %3718 = vmatpush.bf16.msra.mxu1 %v5240_v56  ;;  %3690 = vmatpush.bf16.msrb.mxu3 %v6196_v57  ;;  %v6667_v56 = vld [vmem:[#allocation16 + $0x360] sm:$0xf0]  ;;  %v6116_v57 = vor.u32 %v6839_v42, %v6113_v1 }
 0x144   :  { %v5420_v0 = vor.u32 %v6667_v56, %v5419_v55  ;;  %v6772_v55 = vld [vmem:[#allocation16 + $0x6a8] sm:$0xf0]  ;;  %v5340_v56 = vor.u32 %v6647_v47, %v5339_v46  ;;  %v6239_v47 = vld [vmem:[#allocation16 + $0x9b8] sm:$0xf] }
 0x145   :  { %3678 = vmatpush.bf16.msrb.mxu2 %v5996_v61  ;;  %3706 = vmatpush.bf16.msra.mxu0 %v5040_v62  ;;  %v6747_v61 = vld [vmem:[#allocation16 + $0x5e0] sm:$0xf0]  ;;  %v5620_v62 = vor.u32 %v6717_v53, %v5619_v52  ;;  %v5540_v53 = vor.u32 %v6697_v45, %v5539_v44  ;;  %v6630_v45 = vld [vmem:[#allocation16 + $0x23c] sm:$0xf] }
 0x146   :  { %3639 = vmatmul.bf16.vlgmr.msra.gmra.mxu3 %v7339_v25  ;;  %v5740_v7 = vor.u32 %v6747_v61, %v5739_v59  ;;  %v6727_v52 = vld [vmem:[#allocation16 + $0x540] sm:$0xf0]  ;;  %v5319_v59 = vld [vmem:[#allocation16 + $0x288] sm:$0xf] }
 0x147   :  { %3719 = vmatpush.bf16.msra.mxu1 %v5220_v8  ;;  %3691 = vmatpush.bf16.msrb.mxu3 %v6176_v9  ;;  %v5399_v8 = vld [vmem:[#allocation16 + $0x328] sm:$0xf]  ;;  %v6662_v9 = vld [vmem:[#allocation16 + $0x338] sm:$0xf0] }
 0x148   :  { %v5400_v17 = vor.u32 %v6662_v9, %v5399_v8  ;;  %v5141_v9 = vld [vmem:[#allocation16 + $0x134] sm:$0xf0] }
 0x149   :  { %3679 = vmatpush.bf16.msrb.mxu2 %v5976_v13  ;;  %3707 = vmatpush.bf16.msra.mxu0 %v5020_v14  ;;  %v5600_v13 = vor.u32 %v6712_v6, %v5599_v3  ;;  %v5899_v14 = vld [vmem:[#allocation16 + $0x710] sm:$0xf]  ;;  %v6099_v3 = vld [vmem:[#allocation16 + $0x8a0] sm:$0xf]  ;;  %v6837_v6 = vld [vmem:[#allocation16 + $0x8b0] sm:$0xf0] }
 0x14a   :  { %v5900_v23 = vor.u32 %v6787_v16, %v5899_v14  ;;  %v6687_v14 = vld [vmem:[#allocation16 + $0x400] sm:$0xf0]  ;;  %v5640_v16 = vor.u32 %v6722_v5, %v5639_v63 }
 0x14b   :  { %3720 = vmatpush.bf16.msra.mxu1 %v5200_v34  ;;  %3692 = vmatpush.bf16.msrb.mxu3 %v6156_v27  ;;  %v6657_v34 = vld [vmem:[#allocation16 + $0x310] sm:$0xf0]  ;;  %v5580_v27 = vor.u32 %v6707_v19, %v5579_v18  ;;  %v6079_v18 = vld [vmem:[#allocation16 + $0x878] sm:$0xf]  ;;  %v6867_v63 = vld [vmem:[#allocation16 + $0x9a0] sm:$0xf0] }
 0x14d   :  { %3680 = vmatpush.bf16.msrb.mxu2 %v5956_v30  ;;  %3708 = vmatpush.bf16.msra.mxu0 %v5000_v31  ;;  %v5380_v30 = vor.u32 %v6657_v34, %v5379_v22  ;;  %v5559_v31 = vld [vmem:[#allocation16 + $0x468] sm:$0xf]  ;;  %v6832_v22 = vld [vmem:[#allocation16 + $0x888] sm:$0xf0]  ;;  %v6590_v34 = vld [vmem:[#allocation16 + $0xfc] sm:$0xf] }
 0x14e   :  { %v5560_v40 = vor.u32 %v6702_v33, %v5559_v31  ;;  %v5301_v31 = vld [vmem:[#allocation16 + $0x274] sm:$0xf0]  ;;  %v6080_v33 = vor.u32 %v6832_v22, %v6079_v18  ;;  %v6812_v18 = vld [vmem:[#allocation16 + $0x7e8] sm:$0xf0]  ;;  %v5041_v22 = vld [vmem:[#allocation16 + $0x6c] sm:$0xf0] }
 0x14f   :  { %3721 = vmatpush.bf16.msra.mxu1 %v5180_v39  ;;  %3693 = vmatpush.bf16.msrb.mxu3 %v6136_v43  ;;  %v5679_v39 = vld [vmem:[#allocation16 + $0x558] sm:$0xf]  ;;  %v6777_v43 = vld [vmem:[#allocation16 + $0x6d0] sm:$0xf0] }
 0x150   :  { %3709 = vmatmul.bf16.vlgmr.msra.gmra.mxu0 %v7328_v50  ;;  %3681 = vmatmul.bf16.vlgmr.msrb.gmra.mxu2 %v7354_v4  ;;  %v5680_v1 = vor.u32 %v6732_v2, %v5679_v39  ;;  %v6059_v39 = vld [vmem:[#allocation16 + $0x850] sm:$0xf]  ;;  %v6827_v2 = vld [vmem:[#allocation16 + $0x860] sm:$0xf0] }
 0x151   :  { %3729 = vmatpush.bf16.msra.mxu2 %v5460_v36  ;;  %3757 = vmatpush.bf16.msrb.mxu0 %v5780_v37  ;;  %v5359_v36 = vld [vmem:[#allocation16 + $0x2d8] sm:$0xf]  ;;  %v6652_v37 = vld [vmem:[#allocation16 + $0x2e8] sm:$0xf0]  ;;  %v6060_v46 = vor.u32 %v6827_v2, %v6059_v39  ;;  %v5201_v39 = vld [vmem:[#allocation16 + $0x1ac] sm:$0xf0] }
 0x152   :  { %v5360_v42 = vor.u32 %v6652_v37, %v5359_v36  ;;  %v6877_v36 = vld [vmem:[#allocation16 + $0x9f0] sm:$0xf0] }
 0x153   :  { %3722 = vmatpush.bf16.msra.mxu1 %v5160_v54  ;;  %3694 = vmatpush.bf16.msrb.mxu3 %v6116_v57  ;;  %v5839_v54 = vld [vmem:[#allocation16 + $0x698] sm:$0xf] }
 0x154   :  { %v5519_v57 = vld [vmem:[#allocation16 + $0x418] sm:$0xf] }
 0x155   :  { %3730 = vmatpush.bf16.msra.mxu2 %v5440_v48  ;;  %3758 = vmatpush.bf16.msrb.mxu0 %v5760_v49  ;;  %v5860_v48 = vor.u32 %v6777_v43, %v5859_v41  ;;  %v5659_v49 = vld [vmem:[#allocation16 + $0x530] sm:$0xf]  ;;  %v6585_v43 = vld [vmem:[#allocation16 + $0xd4] sm:$0xf] }
 0x156   :  { %3723 = vmatmul.bf16.vlgmr.msra.gmra.mxu1 %v7332_v15  ;;  %3695 = vmatmul.bf16.vlgmr.msrb.gmra.mxu3 %v7358_v21  ;;  %v5660_v61 = vor.u32 %v6727_v52, %v5659_v49  ;;  %v6039_v52 = vld [vmem:[#allocation16 + $0x828] sm:$0xf] }
 0x157   :  { %3771 = vmatpush.bf16.msrb.mxu1 %v5940_v58  ;;  %3743 = vmatpush.bf16.msra.mxu3 %v5620_v62  ;;  %v6692_v58 = vld [vmem:[#allocation16 + $0x428] sm:$0xf0]  ;;  %v6642_v62 = vld [vmem:[#allocation16 + $0x298] sm:$0xf0] }
 0x158   :  { %v5520_v8 = vor.u32 %v6692_v58, %v5519_v57  ;;  %v5320_v12 = vor.u32 %v6642_v62, %v5319_v59  ;;  %v6625_v58 = vld [vmem:[#allocation16 + $0x214] sm:$0xf]  ;;  %v5261_v59 = vld [vmem:[#allocation16 + $0x224] sm:$0xf0]  ;;  %v6219_v62 = vld [vmem:[#allocation16 + $0x990] sm:$0xf] }
 0x159   :  { %3731 = vmatpush.bf16.msra.mxu2 %v5420_v0  ;;  %3759 = vmatpush.bf16.msrb.mxu0 %v5740_v7  ;;  %v5840_v0 = vor.u32 %v6772_v55, %v5839_v54  ;;  %v6595_v7 = vld [vmem:[#allocation16 + $0x124] sm:$0xf]  ;;  %v6580_v55 = vld [vmem:[#allocation16 + $0xac] sm:$0xf] }
 0x15a   :  { %v5144_v19 = vor.u32 %v6595_v7, %v5141_v9  ;;  %v6575_v7 = vld [vmem:[#allocation16 + $0x84] sm:$0xf]  ;;  %v6220_v9 = vor.u32 %v6867_v63, %v6219_v62  ;;  %v6670_v62 = vld [vmem:[#allocation16 + $0x37c] sm:$0xf] }
 0x15b   :  { %3772 = vmatpush.bf16.msrb.mxu1 %v5920_v10  ;;  %3744 = vmatpush.bf16.msra.mxu3 %v5600_v13  ;;  %v5819_v10 = vld [vmem:[#allocation16 + $0x670] sm:$0xf] }
 0x15c   :  { %v5499_v13 = vld [vmem:[#allocation16 + $0x3f0] sm:$0xf] }
 0x15d   :  { %3732 = vmatpush.bf16.msra.mxu2 %v5400_v17  ;;  %3760 = vmatpush.bf16.msrb.mxu0 %v5720_v20  ;;  %v6100_v17 = vor.u32 %v6837_v6, %v6099_v3  ;;  %v5820_v20 = vor.u32 %v6767_v11, %v5819_v10  ;;  %v5500_v24 = vor.u32 %v6687_v14, %v5499_v13  ;;  %v6817_v3 = vld [vmem:[#allocation16 + $0x810] sm:$0xf0]  ;;  %v6620_v10 = vld [vmem:[#allocation16 + $0x1ec] sm:$0xf]  ;;  %v5241_v11 = vld [vmem:[#allocation16 + $0x1fc] sm:$0xf0] }
 0x15e   :  { %v5264_v6 = vor.u32 %v6625_v58, %v5261_v59  ;;  %v6199_v13 = vld [vmem:[#allocation16 + $0x968] sm:$0xf]  ;;  %v6862_v14 = vld [vmem:[#allocation16 + $0x978] sm:$0xf0]  ;;  %v6847_v58 = vld [vmem:[#allocation16 + $0x900] sm:$0xf0] }
 0x15f   :  { %3773 = vmatpush.bf16.msrb.mxu1 %v5900_v23  ;;  %3745 = vmatpush.bf16.msra.mxu3 %v5580_v27  ;;  %v5121_v23 = vld [vmem:[#allocation16 + $0x10c] sm:$0xf0]  ;;  %v5799_v27 = vld [vmem:[#allocation16 + $0x648] sm:$0xf] }
 0x160   :  { %v5124_v37 = vor.u32 %v6590_v34, %v5121_v23  ;;  %v6200_v34 = vor.u32 %v6862_v14, %v6199_v13  ;;  %v6615_v23 = vld [vmem:[#allocation16 + $0x1c4] sm:$0xf]  ;;  %v5941_v13 = vld [vmem:[#allocation16 + $0x774] sm:$0xf0] }
 0x161   :  { %3733 = vmatpush.bf16.msra.mxu2 %v5380_v30  ;;  %3761 = vmatpush.bf16.msrb.mxu0 %v5700_v35  ;;  %v6635_v30 = vld [vmem:[#allocation16 + $0x264] sm:$0xf]  ;;  %v6259_v35 = vld [vmem:[#allocation16 + $0x9e0] sm:$0xf] }
 0x162   :  { %v5304_v41 = vor.u32 %v6635_v30, %v5301_v31  ;;  %v6260_v44 = vor.u32 %v6877_v36, %v6259_v35  ;;  %v5979_v30 = vld [vmem:[#allocation16 + $0x7b0] sm:$0xf]  ;;  %v6807_v31 = vld [vmem:[#allocation16 + $0x7c0] sm:$0xf0]  ;;  %v6565_v35 = vld [vmem:[#allocation16 + $0x34] sm:$0xf] }
 0x163   :  { %3774 = vmatpush.bf16.msrb.mxu1 %v5880_v38  ;;  %3746 = vmatpush.bf16.msra.mxu3 %v5560_v40  ;;  %v5800_v38 = vor.u32 %v6762_v28, %v5799_v27  ;;  %v5480_v40 = vor.u32 %v6682_v29, %v5479_v26  ;;  %v6179_v27 = vld [vmem:[#allocation16 + $0x940] sm:$0xf]  ;;  %v6857_v28 = vld [vmem:[#allocation16 + $0x950] sm:$0xf0]  ;;  %v5021_v36 = vld [vmem:[#allocation16 + $0x44] sm:$0xf0]  ;;  %v5980_v2 = vor.u32 %v6807_v31, %v5979_v30 }
 0x164   :  { %v6710_v31 = vld [vmem:[#allocation16 + $0x4bc] sm:$0xf] }
 0x165   :  { %3734 = vmatpush.bf16.msra.mxu2 %v5360_v42  ;;  %3762 = vmatpush.bf16.msrb.mxu0 %v5680_v1  ;;  %v5101_v42 = vld [vmem:[#allocation16 + $0xe4] sm:$0xf0]  ;;  %v5281_v1 = vld [vmem:[#allocation16 + $0x24c] sm:$0xf0] }
 0x166   :  { %v5104_v49 = vor.u32 %v6585_v43, %v5101_v42  ;;  %v5284_v54 = vor.u32 %v6630_v45, %v5281_v1  ;;  %v5959_v43 = vld [vmem:[#allocation16 + $0x788] sm:$0xf]  ;;  %v5024_v42 = vor.u32 %v6565_v35, %v5021_v36  ;;  %v6560_v45 = vld [vmem:[#allocation16 + $0xc] sm:$0xf]  ;;  %v5001_v1 = vld [vmem:[#allocation16 + $0x1c] sm:$0xf0] }
 0x167   :  { %3775 = vmatpush.bf16.msrb.mxu1 %v5860_v48  ;;  %3747 = vmatpush.bf16.msra.mxu3 %v5540_v53  ;;  %v6872_v48 = vld [vmem:[#allocation16 + $0x9c8] sm:$0xf0]  ;;  %v6822_v53 = vld [vmem:[#allocation16 + $0x838] sm:$0xf0]  ;;  %v5004_v59 = vor.u32 %v6560_v45, %v5001_v1  ;;  %v5581_v45 = vld [vmem:[#allocation16 + $0x4a4] sm:$0xf0] }
 0x168   :  { %v6240_v57 = vor.u32 %v6872_v48, %v6239_v47  ;;  %v6675_v47 = vld [vmem:[#allocation16 + $0x3a4] sm:$0xf]  ;;  %v5461_v48 = vld [vmem:[#allocation16 + $0x3b4] sm:$0xf0]  ;;  %v6660_v36 = vld [vmem:[#allocation16 + $0x32c] sm:$0xf] }
 0x169   :  { %3735 = vmatpush.bf16.msra.mxu2 %v5340_v56  ;;  %3763 = vmatpush.bf16.msrb.mxu0 %v5660_v61  ;;  %v5081_v56 = vld [vmem:[#allocation16 + $0xbc] sm:$0xf0]  ;;  %v6040_v61 = vor.u32 %v6822_v53, %v6039_v52  ;;  %v5781_v53 = vld [vmem:[#allocation16 + $0x634] sm:$0xf0] }
 0x16a   :  { %v5084_v5 = vor.u32 %v6580_v55, %v5081_v56  ;;  %v5181_v55 = vld [vmem:[#allocation16 + $0x184] sm:$0xf0] }
 0x16b   :  { %3776 = vmatpush.bf16.msrb.mxu1 %v5840_v0  ;;  %3748 = vmatpush.bf16.msra.mxu3 %v5520_v8  ;;  %v6019_v0 = vld [vmem:[#allocation16 + $0x800] sm:$0xf]  ;;  %v5061_v8 = vld [vmem:[#allocation16 + $0x94] sm:$0xf0] }
 0x16d   :  { %3736 = vmatpush.bf16.msra.mxu2 %v5320_v12  ;;  %3764 = vmatpush.bf16.msrb.mxu0 %v5640_v16  ;;  %v6020_v12 = vor.u32 %v6817_v3, %v6019_v0  ;;  %v5064_v16 = vor.u32 %v6575_v7, %v5061_v8  ;;  %v5441_v0 = vld [vmem:[#allocation16 + $0x38c] sm:$0xf0]  ;;  %v6750_v3 = vld [vmem:[#allocation16 + $0x5fc] sm:$0xf]  ;;  %v6119_v8 = vld [vmem:[#allocation16 + $0x8c8] sm:$0xf] }
 0x16e   :  { %v5444_v14 = vor.u32 %v6670_v62, %v5441_v0  ;;  %v5361_v62 = vld [vmem:[#allocation16 + $0x2ec] sm:$0xf0] }
 0x16f   :  { %3777 = vmatpush.bf16.msrb.mxu1 %v5820_v20  ;;  %3749 = vmatpush.bf16.msra.mxu3 %v5500_v24  ;;  %v6570_v20 = vld [vmem:[#allocation16 + $0x5c] sm:$0xf]  ;;  %v5221_v24 = vld [vmem:[#allocation16 + $0x1d4] sm:$0xf0]  ;;  %v5681_v0 = vld [vmem:[#allocation16 + $0x56c] sm:$0xf0] }
 0x170   :  { %3737 = vmatmul.bf16.vlgmr.msra.gmra.mxu2 %v7336_v60  ;;  %3765 = vmatmul.bf16.vlgmr.msrb.gmra.mxu0 %v7344_v32  ;;  %v5044_v29 = vor.u32 %v6570_v20, %v5041_v22  ;;  %v6665_v20 = vld [vmem:[#allocation16 + $0x354] sm:$0xf]  ;;  %v5421_v22 = vld [vmem:[#allocation16 + $0x364] sm:$0xf0] }
 0x171   :  { %3785 = vmatpush.bf16.msrb.mxu2 %v6100_v17  ;;  %3813 = vmatpush.bf16.msra.mxu0 %v5144_v19  ;;  %v5999_v17 = vld [vmem:[#allocation16 + $0x7d8] sm:$0xf]  ;;  %v5244_v19 = vor.u32 %v6620_v10, %v5241_v11  ;;  %v5161_v10 = vld [vmem:[#allocation16 + $0x15c] sm:$0xf0]  ;;  %v6842_v11 = vld [vmem:[#allocation16 + $0x8d8] sm:$0xf0]  ;;  %v5424_v30 = vor.u32 %v6665_v20, %v5421_v22 }
 0x172   :  { %v6000_v26 = vor.u32 %v6812_v18, %v5999_v17  ;;  %v5621_v17 = vld [vmem:[#allocation16 + $0x4f4] sm:$0xf0]  ;;  %v5841_v20 = vld [vmem:[#allocation16 + $0x6ac] sm:$0xf0] }
 0x173   :  { %3778 = vmatpush.bf16.msrb.mxu1 %v5800_v38  ;;  %3750 = vmatpush.bf16.msra.mxu3 %v5480_v40  ;;  %v6610_v38 = vld [vmem:[#allocation16 + $0x19c] sm:$0xf]  ;;  %v6159_v40 = vld [vmem:[#allocation16 + $0x918] sm:$0xf] }
 0x175   :  { %3786 = vmatpush.bf16.msrb.mxu2 %v6080_v33  ;;  %3814 = vmatpush.bf16.msra.mxu0 %v5124_v37  ;;  %v5224_v33 = vor.u32 %v6615_v23, %v5221_v24  ;;  %v6180_v37 = vor.u32 %v6857_v28, %v6179_v27  ;;  %v6745_v24 = vld [vmem:[#allocation16 + $0x5d4] sm:$0xf]  ;;  %v6790_v28 = vld [vmem:[#allocation16 + $0x73c] sm:$0xf] }
 0x176   :  { %3779 = vmatmul.bf16.vlgmr.msrb.gmra.mxu1 %v7347_v51  ;;  %3751 = vmatmul.bf16.vlgmr.msra.gmra.mxu3 %v7339_v25 }
 0x177   :  { %3827 = vmatpush.bf16.msra.mxu1 %v5304_v41  ;;  %3799 = vmatpush.bf16.msrb.mxu3 %v6260_v44  ;;  %v6852_v41 = vld [vmem:[#allocation16 + $0x928] sm:$0xf0]  ;;  %v6802_v44 = vld [vmem:[#allocation16 + $0x798] sm:$0xf0] }
 0x178   :  { %v6160_v52 = vor.u32 %v6852_v41, %v6159_v40  ;;  %v5960_v56 = vor.u32 %v6802_v44, %v5959_v43  ;;  %v6785_v41 = vld [vmem:[#allocation16 + $0x714] sm:$0xf]  ;;  %v5901_v43 = vld [vmem:[#allocation16 + $0x724] sm:$0xf0] }
 0x179   :  { %3787 = vmatpush.bf16.msrb.mxu2 %v6060_v46  ;;  %3815 = vmatpush.bf16.msra.mxu0 %v5104_v49  ;;  %v5204_v46 = vor.u32 %v6610_v38, %v5201_v39  ;;  %v6755_v49 = vld [vmem:[#allocation16 + $0x624] sm:$0xf]  ;;  %v6740_v39 = vld [vmem:[#allocation16 + $0x5ac] sm:$0xf]  ;;  %v6705_v44 = vld [vmem:[#allocation16 + $0x494] sm:$0xf] }
 0x17a   :  { %v5784_v63 = vor.u32 %v6755_v49, %v5781_v53  ;;  %v6735_v49 = vld [vmem:[#allocation16 + $0x584] sm:$0xf]  ;;  %v5584_v53 = vor.u32 %v6705_v44, %v5581_v45  ;;  %v6830_v44 = vld [vmem:[#allocation16 + $0x87c] sm:$0xf] }
 0x17b   :  { %3828 = vmatpush.bf16.msra.mxu1 %v5284_v54  ;;  %3800 = vmatpush.bf16.msrb.mxu3 %v6240_v57  ;;  %v6605_v54 = vld [vmem:[#allocation16 + $0x174] sm:$0xf]  ;;  %v6139_v57 = vld [vmem:[#allocation16 + $0x8f0] sm:$0xf] }
 0x17c   :  { %v6140_v7 = vor.u32 %v6847_v58, %v6139_v57  ;;  %v6700_v57 = vld [vmem:[#allocation16 + $0x46c] sm:$0xf]  ;;  %v5561_v58 = vld [vmem:[#allocation16 + $0x47c] sm:$0xf0] }
 0x17d   :  { %3788 = vmatpush.bf16.msrb.mxu2 %v6040_v61  ;;  %3816 = vmatpush.bf16.msra.mxu0 %v5084_v5  ;;  %v5464_v61 = vor.u32 %v6675_v47, %v5461_v48  ;;  %v5184_v5 = vor.u32 %v6605_v54, %v5181_v55  ;;  %v5381_v47 = vld [vmem:[#allocation16 + $0x314] sm:$0xf0]  ;;  %v5904_v48 = vor.u32 %v6785_v41, %v5901_v43  ;;  %v6780_v54 = vld [vmem:[#allocation16 + $0x6ec] sm:$0xf]  ;;  %v5881_v55 = vld [vmem:[#allocation16 + $0x6fc] sm:$0xf0] }
 0x17e   :  { %v5501_v41 = vld [vmem:[#allocation16 + $0x404] sm:$0xf0] }
 0x17f   :  { %3829 = vmatpush.bf16.msra.mxu1 %v5264_v6  ;;  %3801 = vmatpush.bf16.msrb.mxu3 %v6220_v9  ;;  %v5761_v6 = vld [vmem:[#allocation16 + $0x60c] sm:$0xf0]  ;;  %v6600_v9 = vld [vmem:[#allocation16 + $0x14c] sm:$0xf] }
 0x180   :  { %v5764_v18 = vor.u32 %v6750_v3, %v5761_v6  ;;  %v5564_v3 = vor.u32 %v6700_v57, %v5561_v58  ;;  %v6775_v6 = vld [vmem:[#allocation16 + $0x6c4] sm:$0xf]  ;;  %v6638_v57 = vld [vmem:[#allocation16 + $0x278] sm:$0xf0] }
 0x181   :  { %3789 = vmatpush.bf16.msrb.mxu2 %v6020_v12  ;;  %3817 = vmatpush.bf16.msra.mxu0 %v5064_v16  ;;  %v6795_v12 = vld [vmem:[#allocation16 + $0x764] sm:$0xf] }
 0x182   :  { %v6715_v16 = vld [vmem:[#allocation16 + $0x4e4] sm:$0xf]  ;;  %v5944_v23 = vor.u32 %v6795_v12, %v5941_v13  ;;  %v6645_v12 = vld [vmem:[#allocation16 + $0x2b4] sm:$0xf]  ;;  %v5341_v13 = vld [vmem:[#allocation16 + $0x2c4] sm:$0xf0] }
 0x183   :  { %3830 = vmatpush.bf16.msra.mxu1 %v5244_v19  ;;  %3802 = vmatpush.bf16.msrb.mxu3 %v6200_v34  ;;  %v5164_v19 = vor.u32 %v6600_v9, %v5161_v10  ;;  %v6120_v34 = vor.u32 %v6842_v11, %v6119_v8  ;;  %v5624_v27 = vor.u32 %v6715_v16, %v5621_v17  ;;  %v6695_v9 = vld [vmem:[#allocation16 + $0x444] sm:$0xf]  ;;  %v5541_v10 = vld [vmem:[#allocation16 + $0x454] sm:$0xf0]  ;;  %v6725_v16 = vld [vmem:[#allocation16 + $0x534] sm:$0xf] }
 0x184   :  { %v5661_v17 = vld [vmem:[#allocation16 + $0x544] sm:$0xf0]  ;;  %v5344_v22 = vor.u32 %v6645_v12, %v5341_v13  ;;  %v6870_v13 = vld [vmem:[#allocation16 + $0x9bc] sm:$0xf] }
 0x185   :  { %3790 = vmatpush.bf16.msrb.mxu2 %v6000_v26  ;;  %3818 = vmatpush.bf16.msra.mxu0 %v5044_v29  ;;  %v5741_v26 = vld [vmem:[#allocation16 + $0x5e4] sm:$0xf0]  ;;  %v5921_v29 = vld [vmem:[#allocation16 + $0x74c] sm:$0xf0] }
 0x186   :  { %v5744_v35 = vor.u32 %v6745_v24, %v5741_v26  ;;  %v5924_v38 = vor.u32 %v6790_v28, %v5921_v29  ;;  %v6640_v24 = vld [vmem:[#allocation16 + $0x28c] sm:$0xf]  ;;  %v5664_v26 = vor.u32 %v6725_v16, %v5661_v17  ;;  %v5641_v29 = vld [vmem:[#allocation16 + $0x51c] sm:$0xf0] }
 0x187   :  { %3831 = vmatpush.bf16.msra.mxu1 %v5224_v33  ;;  %3803 = vmatpush.bf16.msrb.mxu3 %v6180_v37  ;;  %v5601_v33 = vld [vmem:[#allocation16 + $0x4cc] sm:$0xf0]  ;;  %v5401_v37 = vld [vmem:[#allocation16 + $0x33c] sm:$0xf0]  ;;  %v6720_v28 = vld [vmem:[#allocation16 + $0x50c] sm:$0xf] }
 0x188   :  { %v5604_v40 = vor.u32 %v6710_v31, %v5601_v33  ;;  %v6835_v31 = vld [vmem:[#allocation16 + $0x8a4] sm:$0xf]  ;;  %v6101_v33 = vld [vmem:[#allocation16 + $0x8b4] sm:$0xf0]  ;;  %v5644_v43 = vor.u32 %v6720_v28, %v5641_v29  ;;  %v6820_v17 = vld [vmem:[#allocation16 + $0x82c] sm:$0xf] }
 0x189   :  { %3791 = vmatpush.bf16.msrb.mxu2 %v5980_v2  ;;  %3819 = vmatpush.bf16.msra.mxu0 %v5024_v42  ;;  %v5721_v2 = vld [vmem:[#allocation16 + $0x5bc] sm:$0xf0]  ;;  %v5404_v42 = vor.u32 %v6660_v36, %v5401_v37  ;;  %v6598_v37 = vld [vmem:[#allocation16 + $0x138] sm:$0xf0]  ;;  %v6865_v28 = vld [vmem:[#allocation16 + $0x994] sm:$0xf] }
 0x18a   :  { %v5724_v1 = vor.u32 %v6740_v39, %v5721_v2  ;;  %v5821_v39 = vld [vmem:[#allocation16 + $0x684] sm:$0xf0] }
 0x18b   :  { %3832 = vmatpush.bf16.msra.mxu1 %v5204_v46  ;;  %3804 = vmatpush.bf16.msrb.mxu3 %v6160_v52  ;;  %v6655_v46 = vld [vmem:[#allocation16 + $0x304] sm:$0xf]  ;;  %v5701_v52 = vld [vmem:[#allocation16 + $0x594] sm:$0xf0]  ;;  %v6221_v29 = vld [vmem:[#allocation16 + $0x9a4] sm:$0xf0] }
 0x18d   :  { %3792 = vmatpush.bf16.msrb.mxu2 %v5960_v56  ;;  %3820 = vmatpush.bf16.msra.mxu0 %v5004_v59  ;;  %v5384_v56 = vor.u32 %v6655_v46, %v5381_v47  ;;  %v5704_v59 = vor.u32 %v6735_v49, %v5701_v52  ;;  %v6081_v46 = vld [vmem:[#allocation16 + $0x88c] sm:$0xf0]  ;;  %v5127_v47 = vld [vmem:[#allocation16 + $0x100] sm:$0xf]  ;;  %v6680_v52 = vld [vmem:[#allocation16 + $0x3cc] sm:$0xf] }
 0x18e   :  { %v6084_v58 = vor.u32 %v6830_v44, %v6081_v46  ;;  %v6201_v44 = vld [vmem:[#allocation16 + $0x97c] sm:$0xf0]  ;;  %v6001_v46 = vld [vmem:[#allocation16 + $0x7ec] sm:$0xf0] }
 0x18f   :  { %3833 = vmatpush.bf16.msra.mxu1 %v5184_v5  ;;  %3805 = vmatpush.bf16.msrb.mxu3 %v6140_v7  ;;  %v6730_v5 = vld [vmem:[#allocation16 + $0x55c] sm:$0xf]  ;;  %v5861_v7 = vld [vmem:[#allocation16 + $0x6d4] sm:$0xf0] }
 0x190   :  { %3793 = vmatmul.bf16.vlgmr.msrb.gmra.mxu2 %v7354_v4  ;;  %3821 = vmatmul.bf16.vlgmr.msra.gmra.mxu0 %v7328_v50  ;;  %v5684_v11 = vor.u32 %v6730_v5, %v5681_v0  ;;  %v6825_v5 = vld [vmem:[#allocation16 + $0x854] sm:$0xf]  ;;  %v6061_v0 = vld [vmem:[#allocation16 + $0x864] sm:$0xf0] }
 0x191   :  { %3841 = vmatpush.bf16.msra.mxu2 %v5464_v61  ;;  %3869 = vmatpush.bf16.msrb.mxu0 %v5784_v63  ;;  %v6650_v61 = vld [vmem:[#allocation16 + $0x2dc] sm:$0xf]  ;;  %v5884_v63 = vor.u32 %v6780_v54, %v5881_v55  ;;  %v5801_v54 = vld [vmem:[#allocation16 + $0x65c] sm:$0xf0]  ;;  %v6064_v12 = vor.u32 %v6825_v5, %v6061_v0  ;;  %v5027_v0 = vld [vmem:[#allocation16 + $0x38] sm:$0xf] }
 0x192   :  { %v5364_v8 = vor.u32 %v6650_v61, %v5361_v62  ;;  %v5481_v55 = vld [vmem:[#allocation16 + $0x3dc] sm:$0xf0]  ;;  %v6261_v61 = vld [vmem:[#allocation16 + $0x9f4] sm:$0xf0] }
 0x193   :  { %3834 = vmatpush.bf16.msra.mxu1 %v5164_v19  ;;  %3806 = vmatpush.bf16.msrb.mxu3 %v6120_v34  ;;  %v6770_v19 = vld [vmem:[#allocation16 + $0x69c] sm:$0xf] }
 0x194   :  { %v6690_v34 = vld [vmem:[#allocation16 + $0x41c] sm:$0xf] }
 0x195   :  { %3842 = vmatpush.bf16.msra.mxu2 %v5444_v14  ;;  %3870 = vmatpush.bf16.msrb.mxu0 %v5764_v18  ;;  %v5864_v14 = vor.u32 %v6775_v6, %v5861_v7  ;;  %v5544_v18 = vor.u32 %v6695_v9, %v5541_v10  ;;  %v5107_v7 = vld [vmem:[#allocation16 + $0xd8] sm:$0xf]  ;;  %v5287_v10 = vld [vmem:[#allocation16 + $0x240] sm:$0xf] }
 0x196   :  { %3835 = vmatmul.bf16.vlgmr.msra.gmra.mxu1 %v7332_v15  ;;  %3807 = vmatmul.bf16.vlgmr.msrb.gmra.mxu3 %v7358_v21 }
 0x197   :  { %3883 = vmatpush.bf16.msrb.mxu1 %v5944_v23  ;;  %3855 = vmatpush.bf16.msra.mxu3 %v5624_v27  ;;  %v5521_v23 = vld [vmem:[#allocation16 + $0x42c] sm:$0xf0]  ;;  %v5321_v27 = vld [vmem:[#allocation16 + $0x29c] sm:$0xf0] }
 0x198   :  { %v5524_v36 = vor.u32 %v6690_v34, %v5521_v23  ;;  %v5324_v2 = vor.u32 %v6640_v24, %v5321_v27  ;;  %v7378_v34 = vpop.f32.mrf.mxu0  ;;  %v5267_v24 = vld [vmem:[#allocation16 + $0x218] sm:$0xf] }
 0x199   :  { %3843 = vmatpush.bf16.msra.mxu2 %v5424_v30  ;;  %3871 = vmatpush.bf16.msrb.mxu0 %v5744_v35  ;;  %v5844_v30 = vor.u32 %v6770_v19, %v5841_v20  ;;  %v5147_v35 = vld [vmem:[#allocation16 + $0x128] sm:$0xf]  ;;  %v5087_v20 = vld [vmem:[#allocation16 + $0xb0] sm:$0xf] }
 0x19a   :  { %v5148_v45 = vor.u32 %v6598_v37, %v5147_v35  ;;  %v6578_v37 = vld [vmem:[#allocation16 + $0x98] sm:$0xf0] }
 0x19b   :  { %3884 = vmatpush.bf16.msrb.mxu1 %v5924_v38  ;;  %3856 = vmatpush.bf16.msra.mxu3 %v5604_v40  ;;  %v6765_v38 = vld [vmem:[#allocation16 + $0x674] sm:$0xf] }
 0x19c   :  { %v6685_v40 = vld [vmem:[#allocation16 + $0x3f4] sm:$0xf] }
 0x19d   :  { %3844 = vmatpush.bf16.msra.mxu2 %v5404_v42  ;;  %3872 = vmatpush.bf16.msrb.mxu0 %v5724_v1  ;;  %v6104_v42 = vor.u32 %v6835_v31, %v6101_v33  ;;  %v5824_v1 = vor.u32 %v6765_v38, %v5821_v39  ;;  %v5504_v49 = vor.u32 %v6685_v40, %v5501_v41  ;;  %v6815_v31 = vld [vmem:[#allocation16 + $0x804] sm:$0xf]  ;;  %v6021_v33 = vld [vmem:[#allocation16 + $0x814] sm:$0xf0]  ;;  %v7382_v38 = vpop.f32.mrf.mxu1  ;;  %v7384_v39 = vpop.f32.mrf.mxu2  ;;  %v5247_v40 = vld [vmem:[#allocation16 + $0x1f0] sm:$0xf] }
 0x19e   :  { %v6623_v41 = vld [vmem:[#allocation16 + $0x200] sm:$0xf0] }
 0x19f   :  { %3885 = vmatpush.bf16.msrb.mxu1 %v5904_v48  ;;  %3857 = vmatpush.bf16.msra.mxu3 %v5584_v53  ;;  %v6593_v48 = vld [vmem:[#allocation16 + $0x110] sm:$0xf0]  ;;  %v6760_v53 = vld [vmem:[#allocation16 + $0x64c] sm:$0xf] }
 0x1a0   :  { %v5128_v62 = vor.u32 %v6593_v48, %v5127_v47  ;;  %v7386_v47 = vpop.f32.mrf.mxu3  ;;  %v5248_v48 = vor.u32 %v6623_v41, %v5247_v40  ;;  %v5447_v40 = vld [vmem:[#allocation16 + $0x380] sm:$0xf] }
 0x1a1   :  { %3845 = vmatpush.bf16.msra.mxu2 %v5384_v56  ;;  %3873 = vmatpush.bf16.msrb.mxu0 %v5704_v59  ;;  %v5307_v56 = vld [vmem:[#allocation16 + $0x268] sm:$0xf]  ;;  %v6875_v59 = vld [vmem:[#allocation16 + $0x9e4] sm:$0xf] }
 0x1a2   :  { %v5308_v6 = vor.u32 %v6638_v57, %v5307_v56  ;;  %v6264_v9 = vor.u32 %v6875_v59, %v6261_v61  ;;  %v6855_v57 = vld [vmem:[#allocation16 + $0x944] sm:$0xf]  ;;  %v7388_v59 = vpop.f32.mrf.mxu0 }
 0x1a3   :  { %3886 = vmatpush.bf16.msrb.mxu1 %v5884_v63  ;;  %3858 = vmatpush.bf16.msra.mxu3 %v5564_v3  ;;  %v5804_v63 = vor.u32 %v6760_v53, %v5801_v54  ;;  %v5484_v3 = vor.u32 %v6680_v52, %v5481_v55  ;;  %v6573_v52 = vld [vmem:[#allocation16 + $0x70] sm:$0xf0]  ;;  %v5227_v54 = vld [vmem:[#allocation16 + $0x1c8] sm:$0xf]  ;;  %v6618_v55 = vld [vmem:[#allocation16 + $0x1d8] sm:$0xf0] }
 0x1a4   :  { %v5228_v5 = vor.u32 %v6618_v55, %v5227_v54  ;;  %v6798_v54 = vld [vmem:[#allocation16 + $0x778] sm:$0xf0] }
 0x1a5   :  { %3846 = vmatpush.bf16.msra.mxu2 %v5364_v8  ;;  %3874 = vmatpush.bf16.msrb.mxu0 %v5684_v11  ;;  %v6588_v8 = vld [vmem:[#allocation16 + $0xe8] sm:$0xf0]  ;;  %v6633_v11 = vld [vmem:[#allocation16 + $0x250] sm:$0xf0] }
 0x1a6   :  { %v5108_v16 = vor.u32 %v6588_v8, %v5107_v7  ;;  %v5288_v19 = vor.u32 %v6633_v11, %v5287_v10  ;;  %v5207_v7 = vld [vmem:[#allocation16 + $0x1a0] sm:$0xf]  ;;  %v6613_v8 = vld [vmem:[#allocation16 + $0x1b0] sm:$0xf0]  ;;  %v6850_v10 = vld [vmem:[#allocation16 + $0x91c] sm:$0xf] }
 0x1a7   :  { %3887 = vmatpush.bf16.msrb.mxu1 %v5864_v14  ;;  %3859 = vmatpush.bf16.msra.mxu3 %v5544_v18  ;;  %v6241_v14 = vld [vmem:[#allocation16 + $0x9cc] sm:$0xf0]  ;;  %v6041_v18 = vld [vmem:[#allocation16 + $0x83c] sm:$0xf0] }
 0x1a8   :  { %v6244_v23 = vor.u32 %v6870_v13, %v6241_v14  ;;  %v6044_v27 = vor.u32 %v6820_v17, %v6041_v18  ;;  %v6161_v11 = vld [vmem:[#allocation16 + $0x92c] sm:$0xf0]  ;;  %v7390_v13 = vpop.f32.mrf.mxu1  ;;  %v7392_v14 = vpop.f32.mrf.mxu2  ;;  %v5961_v17 = vld [vmem:[#allocation16 + $0x79c] sm:$0xf0] }
 0x1a9   :  { %3847 = vmatpush.bf16.msra.mxu2 %v5344_v22  ;;  %3875 = vmatpush.bf16.msrb.mxu0 %v5664_v26  ;;  %v6583_v22 = vld [vmem:[#allocation16 + $0xc0] sm:$0xf0]  ;;  %v6628_v26 = vld [vmem:[#allocation16 + $0x228] sm:$0xf0]  ;;  %v5007_v18 = vld [vmem:[#allocation16 + $0x10] sm:$0xf] }
 0x1aa   :  { %v5268_v35 = vor.u32 %v6628_v26, %v5267_v24  ;;  %v5787_v24 = vld [vmem:[#allocation16 + $0x628] sm:$0xf]  ;;  %v6164_v26 = vor.u32 %v6850_v10, %v6161_v11  ;;  %v5927_v11 = vld [vmem:[#allocation16 + $0x740] sm:$0xf] }
 0x1ab   :  { %3888 = vmatpush.bf16.msrb.mxu1 %v5844_v30  ;;  %3860 = vmatpush.bf16.msra.mxu3 %v5524_v36  ;;  %v5088_v30 = vor.u32 %v6583_v22, %v5087_v20  ;;  %v5067_v36 = vld [vmem:[#allocation16 + $0x88] sm:$0xf]  ;;  %v5208_v20 = vor.u32 %v6613_v8, %v5207_v7  ;;  %v5747_v7 = vld [vmem:[#allocation16 + $0x5d8] sm:$0xf]  ;;  %v6748_v8 = vld [vmem:[#allocation16 + $0x5e8] sm:$0xf0] }
 0x1ac   :  { %v5467_v22 = vld [vmem:[#allocation16 + $0x3a8] sm:$0xf] }
 0x1ad   :  { %3848 = vmatpush.bf16.msra.mxu2 %v5324_v2  ;;  %3876 = vmatpush.bf16.msrb.mxu0 %v5644_v43  ;;  %v6224_v2 = vor.u32 %v6865_v28, %v6221_v29  ;;  %v6024_v43 = vor.u32 %v6815_v31, %v6021_v33  ;;  %v5187_v28 = vld [vmem:[#allocation16 + $0x178] sm:$0xf]  ;;  %v6608_v29 = vld [vmem:[#allocation16 + $0x188] sm:$0xf0]  ;;  %v6845_v33 = vld [vmem:[#allocation16 + $0x8f4] sm:$0xf] }
 0x1af   :  { %3889 = vmatpush.bf16.msrb.mxu1 %v5824_v1  ;;  %3861 = vmatpush.bf16.msra.mxu3 %v5504_v49  ;;  %v6810_v1 = vld [vmem:[#allocation16 + $0x7dc] sm:$0xf]  ;;  %v5047_v49 = vld [vmem:[#allocation16 + $0x60] sm:$0xf] }
 0x1b0   :  { %3849 = vmatmul.bf16.vlgmr.msra.gmra.mxu2 %v7336_v60  ;;  %3877 = vmatmul.bf16.vlgmr.msrb.gmra.mxu0 %v7344_v32  ;;  %v6004_v56 = vor.u32 %v6810_v1, %v6001_v46  ;;  %v5048_v61 = vor.u32 %v6573_v52, %v5047_v49  ;;  %v6840_v46 = vld [vmem:[#allocation16 + $0x8cc] sm:$0xf]  ;;  %v6603_v49 = vld [vmem:[#allocation16 + $0x160] sm:$0xf0]  ;;  %v6121_v52 = vld [vmem:[#allocation16 + $0x8dc] sm:$0xf0]  ;;  %v7398_v55 = vpop.f32.mrf.mxu1 }
 0x1b1   :  { %3897 = vmatpush.bf16.msrb.mxu2 %v6104_v42  ;;  %3925 = vmatpush.bf16.msra.mxu0 %v5148_v45  ;;  %v6860_v42 = vld [vmem:[#allocation16 + $0x96c] sm:$0xf]  ;;  %v5068_v45 = vor.u32 %v6578_v37, %v5067_v36  ;;  %v7396_v36 = vpop.f32.mrf.mxu0 }
 0x1b2   :  { %v6204_v53 = vor.u32 %v6860_v42, %v6201_v44  ;;  %v6673_v42 = vld [vmem:[#allocation16 + $0x390] sm:$0xf0]  ;;  %v5767_v44 = vld [vmem:[#allocation16 + $0x600] sm:$0xf] }
 0x1b3   :  { %3890 = vmatpush.bf16.msrb.mxu1 %v5804_v63  ;;  %3862 = vmatpush.bf16.msra.mxu3 %v5484_v3  ;;  %v5981_v63 = vld [vmem:[#allocation16 + $0x7c4] sm:$0xf0]  ;;  %v6568_v3 = vld [vmem:[#allocation16 + $0x48] sm:$0xf0] }
 0x1b5   :  { %3898 = vmatpush.bf16.msrb.mxu2 %v6084_v58  ;;  %3926 = vmatpush.bf16.msra.mxu0 %v5128_v62  ;;  %v6181_v58 = vld [vmem:[#allocation16 + $0x954] sm:$0xf0]  ;;  %v6805_v62 = vld [vmem:[#allocation16 + $0x7b4] sm:$0xf] }
 0x1b6   :  { %3891 = vmatmul.bf16.vlgmr.msrb.gmra.mxu1 %v7347_v51  ;;  %3863 = vmatmul.bf16.vlgmr.msra.gmra.mxu3 %v7339_v25 }
 0x1b7   :  { %3939 = vmatpush.bf16.msra.mxu1 %v5308_v6  ;;  %3911 = vmatpush.bf16.msrb.mxu3 %v6264_v9  ;;  %v6184_v6 = vor.u32 %v6855_v57, %v6181_v58  ;;  %v5984_v9 = vor.u32 %v6805_v62, %v5981_v63  ;;  %v5448_v57 = vor.u32 %v6673_v42, %v5447_v40  ;;  %v5627_v58 = vld [vmem:[#allocation16 + $0x4e8] sm:$0xf]  ;;  %v6658_v40 = vld [vmem:[#allocation16 + $0x318] sm:$0xf0] }
 0x1b9   :  { %3899 = vmatpush.bf16.msrb.mxu2 %v6064_v12  ;;  %3927 = vmatpush.bf16.msra.mxu0 %v5108_v16  ;;  %v6800_v12 = vld [vmem:[#allocation16 + $0x78c] sm:$0xf]  ;;  %v5028_v16 = vor.u32 %v6568_v3, %v5027_v0  ;;  %v6124_v3 = vor.u32 %v6840_v46, %v6121_v52  ;;  %v6783_v46 = vld [vmem:[#allocation16 + $0x700] sm:$0xf0] }
 0x1ba   :  { %v5964_v31 = vor.u32 %v6800_v12, %v5961_v17  ;;  %v6668_v0 = vld [vmem:[#allocation16 + $0x368] sm:$0xf0]  ;;  %v6793_v12 = vld [vmem:[#allocation16 + $0x750] sm:$0xf0]  ;;  %v5607_v17 = vld [vmem:[#allocation16 + $0x4c0] sm:$0xf] }
 0x1bb   :  { %3940 = vmatpush.bf16.msra.mxu1 %v5288_v19  ;;  %3912 = vmatpush.bf16.msrb.mxu3 %v6244_v23  ;;  %v6563_v19 = vld [vmem:[#allocation16 + $0x20] sm:$0xf0]  ;;  %v6678_v23 = vld [vmem:[#allocation16 + $0x3b8] sm:$0xf0] }
 0x1bc   :  { %v5008_v37 = vor.u32 %v6563_v19, %v5007_v18  ;;  %v6713_v18 = vld [vmem:[#allocation16 + $0x4d0] sm:$0xf0]  ;;  %v5748_v19 = vor.u32 %v6748_v8, %v5747_v7  ;;  %v6703_v52 = vld [vmem:[#allocation16 + $0x480] sm:$0xf0]  ;;  %v5547_v8 = vld [vmem:[#allocation16 + $0x448] sm:$0xf] }
 0x1bd   :  { %3900 = vmatpush.bf16.msrb.mxu2 %v6044_v27  ;;  %3928 = vmatpush.bf16.msra.mxu0 %v5088_v30  ;;  %v6758_v27 = vld [vmem:[#allocation16 + $0x638] sm:$0xf0]  ;;  %v7394_v30 = vpop.f32.mrf.mxu3 }
 0x1be   :  { %v5788_v41 = vor.u32 %v6758_v27, %v5787_v24  ;;  %v5928_v24 = vor.u32 %v6793_v12, %v5927_v11  ;;  %v6743_v27 = vld [vmem:[#allocation16 + $0x5c0] sm:$0xf0]  ;;  %v5347_v12 = vld [vmem:[#allocation16 + $0x2b8] sm:$0xf] }
 0x1bf   :  { %3941 = vmatpush.bf16.msra.mxu1 %v5268_v35  ;;  %3913 = vmatpush.bf16.msrb.mxu3 %v6224_v2  ;;  %v6141_v35 = vld [vmem:[#allocation16 + $0x904] sm:$0xf0]  ;;  %v5468_v2 = vor.u32 %v6678_v23, %v5467_v22  ;;  %v6663_v22 = vld [vmem:[#allocation16 + $0x340] sm:$0xf0]  ;;  %v7406_v23 = vpop.f32.mrf.mxu0 }
 0x1c0   :  { %v6144_v1 = vor.u32 %v6845_v33, %v6141_v35  ;;  %v5587_v33 = vld [vmem:[#allocation16 + $0x498] sm:$0xf]  ;;  %v6708_v35 = vld [vmem:[#allocation16 + $0x4a8] sm:$0xf0] }
 0x1c1   :  { %3901 = vmatpush.bf16.msrb.mxu2 %v6024_v43  ;;  %3929 = vmatpush.bf16.msra.mxu0 %v5068_v45  ;;  %v5188_v43 = vor.u32 %v6608_v29, %v5187_v28  ;;  %v6753_v45 = vld [vmem:[#allocation16 + $0x610] sm:$0xf0]  ;;  %v5907_v28 = vld [vmem:[#allocation16 + $0x718] sm:$0xf]  ;;  %v6788_v29 = vld [vmem:[#allocation16 + $0x728] sm:$0xf0] }
 0x1c2   :  { %v5768_v62 = vor.u32 %v6753_v45, %v5767_v44  ;;  %v5908_v42 = vor.u32 %v6788_v29, %v5907_v28  ;;  %v5707_v44 = vld [vmem:[#allocation16 + $0x588] sm:$0xf]  ;;  %v6738_v45 = vld [vmem:[#allocation16 + $0x598] sm:$0xf0]  ;;  %v5527_v28 = vld [vmem:[#allocation16 + $0x420] sm:$0xf] }
 0x1c3   :  { %3942 = vmatpush.bf16.msra.mxu1 %v5248_v48  ;;  %3914 = vmatpush.bf16.msrb.mxu3 %v6204_v53  ;;  %v5167_v48 = vld [vmem:[#allocation16 + $0x150] sm:$0xf]  ;;  %v5947_v53 = vld [vmem:[#allocation16 + $0x768] sm:$0xf]  ;;  %v6693_v29 = vld [vmem:[#allocation16 + $0x430] sm:$0xf0] }
 0x1c4   :  { %v5168_v63 = vor.u32 %v6603_v49, %v5167_v48  ;;  %v5567_v49 = vld [vmem:[#allocation16 + $0x470] sm:$0xf] }
 0x1c5   :  { %3902 = vmatpush.bf16.msrb.mxu2 %v6004_v56  ;;  %3930 = vmatpush.bf16.msra.mxu0 %v5048_v61  ;;  %v7400_v56 = vpop.f32.mrf.mxu2  ;;  %v6718_v61 = vld [vmem:[#allocation16 + $0x4f8] sm:$0xf0] }
 0x1c6   :  { %v5628_v10 = vor.u32 %v6718_v61, %v5627_v58  ;;  %v6653_v58 = vld [vmem:[#allocation16 + $0x2f0] sm:$0xf0] }
 0x1c7   :  { %3943 = vmatpush.bf16.msra.mxu1 %v5228_v5  ;;  %3915 = vmatpush.bf16.msrb.mxu3 %v6184_v6  ;;  %v5427_v5 = vld [vmem:[#allocation16 + $0x358] sm:$0xf]  ;;  %v5948_v6 = vor.u32 %v6798_v54, %v5947_v53  ;;  %v5708_v54 = vor.u32 %v6738_v45, %v5707_v44  ;;  %v6838_v44 = vld [vmem:[#allocation16 + $0x8b8] sm:$0xf0] }
 0x1c9   :  { %3903 = vmatpush.bf16.msrb.mxu2 %v5984_v9  ;;  %3931 = vmatpush.bf16.msra.mxu0 %v5028_v16  ;;  %v7403_v9 = vpop.f32.mrf.mxu3  ;;  %v5428_v16 = vor.u32 %v6668_v0, %v5427_v5  ;;  %v5568_v5 = vor.u32 %v6703_v52, %v5567_v49  ;;  %v5867_v0 = vld [vmem:[#allocation16 + $0x6c8] sm:$0xf]  ;;  %v5507_v49 = vld [vmem:[#allocation16 + $0x3f8] sm:$0xf]  ;;  %v6688_v52 = vld [vmem:[#allocation16 + $0x408] sm:$0xf0] }
 0x1cb   :  { %3944 = vmatpush.bf16.msra.mxu1 %v5208_v20  ;;  %3916 = vmatpush.bf16.msrb.mxu3 %v6164_v26  ;;  %v5407_v20 = vld [vmem:[#allocation16 + $0x330] sm:$0xf] }
 0x1cc   :  { %v5727_v26 = vld [vmem:[#allocation16 + $0x5b0] sm:$0xf] }
 0x1cd   :  { %3904 = vmatpush.bf16.msrb.mxu2 %v5964_v31  ;;  %3932 = vmatpush.bf16.msra.mxu0 %v5008_v37  ;;  %v5408_v31 = vor.u32 %v6663_v22, %v5407_v20  ;;  %v5728_v37 = vor.u32 %v6743_v27, %v5727_v26  ;;  %v5847_v22 = vld [vmem:[#allocation16 + $0x6a0] sm:$0xf] }
 0x1cf   :  { %3945 = vmatpush.bf16.msra.mxu1 %v5188_v43  ;;  %3917 = vmatpush.bf16.msrb.mxu3 %v6144_v1  ;;  %v7412_v43 = vpop.f32.mrf.mxu2  ;;  %v5887_v1 = vld [vmem:[#allocation16 + $0x6f0] sm:$0xf] }
 0x1d0   :  { %3905 = vmatmul.bf16.vlgmr.msrb.gmra.mxu2 %v7354_v4  ;;  %3933 = vmatmul.bf16.vlgmr.msra.gmra.mxu0 %v7328_v50  ;;  %v5608_v50 = vor.u32 %v6713_v18, %v5607_v17  ;;  %v5888_v61 = vor.u32 %v6783_v46, %v5887_v1  ;;  %v5667_v18 = vld [vmem:[#allocation16 + $0x538] sm:$0xf]  ;;  %v6768_v46 = vld [vmem:[#allocation16 + $0x688] sm:$0xf0] }
 0x1d1   :  { %3953 = vmatpush.bf16.msra.mxu2 %v5468_v2  ;;  %3981 = vmatpush.bf16.msrb.mxu0 %v5788_v41  ;;  %v5387_v2 = vld [vmem:[#allocation16 + $0x308] sm:$0xf]  ;;  %v7410_v41 = vpop.f32.mrf.mxu1  ;;  %v7414_v53 = vpop.f32.mrf.mxu3  ;;  %v5827_v1 = vld [vmem:[#allocation16 + $0x678] sm:$0xf] }
 0x1d2   :  { %v5388_v48 = vor.u32 %v6658_v40, %v5387_v2  ;;  %v6723_v40 = vld [vmem:[#allocation16 + $0x520] sm:$0xf0] }
 0x1d3   :  { %3946 = vmatpush.bf16.msra.mxu1 %v5168_v63  ;;  %3918 = vmatpush.bf16.msrb.mxu3 %v6124_v3  ;;  %v6733_v63 = vld [vmem:[#allocation16 + $0x570] sm:$0xf0]  ;;  %v6778_v3 = vld [vmem:[#allocation16 + $0x6d8] sm:$0xf0] }
 0x1d4   :  { %v5868_v17 = vor.u32 %v6778_v3, %v5867_v0  ;;  %v5508_v0 = vor.u32 %v6688_v52, %v5507_v49  ;;  %v5807_v3 = vld [vmem:[#allocation16 + $0x650] sm:$0xf] }
 0x1d5   :  { %3954 = vmatpush.bf16.msra.mxu2 %v5448_v57  ;;  %3982 = vmatpush.bf16.msrb.mxu0 %v5768_v62  ;;  %v5367_v57 = vld [vmem:[#allocation16 + $0x2e0] sm:$0xf] }
 0x1d6   :  { %3947 = vmatmul.bf16.vlgmr.msra.gmra.mxu1 %v7332_v15  ;;  %3919 = vmatmul.bf16.vlgmr.msrb.gmra.mxu3 %v7358_v21  ;;  %v5588_v15 = vor.u32 %v6708_v35, %v5587_v33  ;;  %v5687_v62 = vld [vmem:[#allocation16 + $0x560] sm:$0xf]  ;;  %v5368_v7 = vor.u32 %v6653_v58, %v5367_v57  ;;  %v5327_v33 = vld [vmem:[#allocation16 + $0x290] sm:$0xf]  ;;  %v6643_v35 = vld [vmem:[#allocation16 + $0x2a0] sm:$0xf0] }
 0x1d7   :  { %3995 = vmatpush.bf16.msrb.mxu1 %v5948_v6  ;;  %3967 = vmatpush.bf16.msra.mxu3 %v5628_v10  ;;  %v7416_v6 = vpop.f32.mrf.mxu0  ;;  %v6698_v10 = vld [vmem:[#allocation16 + $0x458] sm:$0xf0]  ;;  %v5688_v11 = vor.u32 %v6733_v63, %v5687_v62  ;;  %v7420_v27 = vpop.f32.mrf.mxu2  ;;  %v5828_v62 = vor.u32 %v6768_v46, %v5827_v1  ;;  %v6087_v63 = vld [vmem:[#allocation16 + $0x880] sm:$0xf] }
 0x1d8   :  { %v5548_v20 = vor.u32 %v6698_v10, %v5547_v8  ;;  %v7424_v8 = vld [vmem:[#allocation17] sm:$0x1f]  ;;  %v5487_v10 = vld [vmem:[#allocation16 + $0x3d0] sm:$0xf] }
 0x1d9   :  { %3955 = vmatpush.bf16.msra.mxu2 %v5428_v16  ;;  %3983 = vmatpush.bf16.msrb.mxu0 %v5748_v19  ;;  %v6648_v16 = vld [vmem:[#allocation16 + $0x2c8] sm:$0xf0]  ;;  %v7418_v26 = vpop.f32.mrf.mxu1  ;;  %v7422_v45 = vpop.f32.mrf.mxu3  ;;  %v1804_v46 = vperm.slane %v7424_v8, 1 }
 0x1da   :  { %v6728_v19 = vld [vmem:[#allocation16 + $0x548] sm:$0xf0] }
 0x1db   :  { %3996 = vmatpush.bf16.msrb.mxu1 %v5928_v24  ;;  %3968 = vmatpush.bf16.msra.mxu3 %v5608_v50  ;;  %v6773_v24 = vld [vmem:[#allocation16 + $0x6b0] sm:$0xf0]  ;;  %v5348_v50 = vor.u32 %v6648_v16, %v5347_v12  ;;  %v6267_v16 = vld [vmem:[#allocation16 + $0x9e8] sm:$0xf] }
 0x1dc   :  { %v5848_v2 = vor.u32 %v6773_v24, %v5847_v22  ;;  %v6067_v24 = vld [vmem:[#allocation16 + $0x858] sm:$0xf] }
 0x1dd   :  { %3956 = vmatpush.bf16.msra.mxu2 %v5408_v31  ;;  %3984 = vmatpush.bf16.msrb.mxu0 %v5728_v37  ;;  %v5668_v31 = vor.u32 %v6728_v19, %v5667_v18  ;;  %v5647_v37 = vld [vmem:[#allocation16 + $0x510] sm:$0xf] }
 0x1df   :  { %3997 = vmatpush.bf16.msrb.mxu1 %v5908_v42  ;;  %3969 = vmatpush.bf16.msra.mxu3 %v5588_v15  ;;  %v6107_v42 = vld [vmem:[#allocation16 + $0x8a8] sm:$0xf]  ;;  %v5528_v15 = vor.u32 %v6693_v29, %v5527_v28  ;;  %v3600_v58 = vpop.f32.mrf.mxu0  ;;  %v3628_v19 = vpop.f32.mrf.mxu2  ;;  %v1803_v28 = vperm.slane %v7424_v8, 0 }
 0x1e0   :  { %v6108_v57 = vor.u32 %v6838_v44, %v6107_v42  ;;  %v6884_v42 = vld [vmem:[#allocation19 + $0x28] sm:$0xff] }
 0x1e1   :  { %3957 = vmatpush.bf16.msra.mxu2 %v5388_v48  ;;  %3985 = vmatpush.bf16.msrb.mxu0 %v5708_v54  ;;  %v5328_v48 = vor.u32 %v6643_v35, %v5327_v33  ;;  %v5648_v54 = vor.u32 %v6723_v40, %v5647_v37  ;;  %v3614_v18 = vpop.f32.mrf.mxu1  ;;  %v3642_v35 = vpop.f32.mrf.mxu3  ;;  %v6873_v40 = vld [vmem:[#allocation16 + $0x9d0] sm:$0xf0]  ;;  %v6047_v44 = vld [vmem:[#allocation16 + $0x830] sm:$0xf]  ;;  %v3489_v1 = vadd.f32 %v7388_v59, %v1803_v28  ;;  %v6883_v59 = vld [vmem:[#allocation19 + $0x20] sm:$0xff] }
 0x1e2   :  { %v3487_v49 = vadd.f32 %v7378_v34, %v1803_v28 }
 0x1e3   :  { %3998 = vmatpush.bf16.msrb.mxu1 %v5888_v61  ;;  %3970 = vmatpush.bf16.msra.mxu3 %v5568_v5  ;;  %v6886_v61 = vld [vmem:[#allocation19 + $0x38] sm:$0xff]  ;;  %v6833_v5 = vld [vmem:[#allocation16 + $0x890] sm:$0xf0] }
 0x1e4   :  { %v6088_v12 = vor.u32 %v6833_v5, %v6087_v63  ;;  %v6818_v63 = vld [vmem:[#allocation16 + $0x818] sm:$0xf0]  ;;  %v3503_v5 = vadd.f32 %v7390_v13, %v3489_v1 }
 0x1e5   :  { %3958 = vmatpush.bf16.msra.mxu2 %v5368_v7  ;;  %3986 = vmatpush.bf16.msrb.mxu0 %v5688_v11  ;;  %v6763_v7 = vld [vmem:[#allocation16 + $0x660] sm:$0xf0] }
 0x1e6   :  { %v6683_v11 = vld [vmem:[#allocation16 + $0x3e0] sm:$0xf0]  ;;  %v5808_v22 = vor.u32 %v6763_v7, %v5807_v3  ;;  %v3599_v3 = vadd.f32 %v7416_v6, %v1804_v46 }
 0x1e7   :  { %3999 = vmatpush.bf16.msrb.mxu1 %v5868_v17  ;;  %3971 = vmatpush.bf16.msra.mxu3 %v5548_v20  ;;  %v6878_v17 = vld [vmem:[#allocation16 + $0x9f8] sm:$0xf0]  ;;  %v5488_v29 = vor.u32 %v6683_v11, %v5487_v10 }
 0x1e8   :  { %v6885_v20 = vld [vmem:[#allocation19 + $0x30] sm:$0xff]  ;;  %v6268_v33 = vor.u32 %v6878_v17, %v6267_v16  ;;  %v6863_v16 = vld [vmem:[#allocation16 + $0x980] sm:$0xf0]  ;;  %v3613_v13 = vadd.f32 %v7418_v26, %v3599_v3 }
 0x1e9   :  { %3959 = vmatpush.bf16.msra.mxu2 %v5348_v50  ;;  %3987 = vmatpush.bf16.msrb.mxu0 %v5668_v31  ;;  %v6828_v50 = vld [vmem:[#allocation16 + $0x868] sm:$0xf0]  ;;  %v6894_v31 = vld [vmem:[#allocation19 + $0x78] sm:$0xff]  ;;  %v7438_v7 = vpop.f32.mrf.mxu1 }
 0x1ea   :  { %v6068_v37 = vor.u32 %v6828_v50, %v6067_v24  ;;  %v6882_v6 = vld [vmem:[#allocation19 + $0x18] sm:$0xff]  ;;  %v7447_v50 = vpop.f32.mrf.mxu3 }
 0x1eb   :  { %4000 = vmatpush.bf16.msrb.mxu1 %v5848_v2  ;;  %3972 = vmatpush.bf16.msra.mxu3 %v5528_v15  ;;  %v6247_v2 = vld [vmem:[#allocation16 + $0x9c0] sm:$0xf]  ;;  %v6823_v15 = vld [vmem:[#allocation16 + $0x840] sm:$0xf0] }
 0x1ec   :  { %v6048_v52 = vor.u32 %v6823_v15, %v6047_v44  ;;  %v6890_v44 = vld [vmem:[#allocation19 + $0x58] sm:$0xff] }
 0x1ed   :  { %3960 = vmatpush.bf16.msra.mxu2 %v5328_v48  ;;  %3988 = vmatpush.bf16.msrb.mxu0 %v5648_v54  ;;  %v7431_v48 = vpop.f32.mrf.mxu0  ;;  %v6227_v54 = vld [vmem:[#allocation16 + $0x998] sm:$0xf] }
 0x1ef   :  { %4001 = vmatpush.bf16.msrb.mxu1 %v5828_v62  ;;  %3973 = vmatpush.bf16.msra.mxu3 %v5508_v0  ;;  %v6027_v62 = vld [vmem:[#allocation16 + $0x808] sm:$0xf]  ;;  %v6892_v0 = vld [vmem:[#allocation19 + $0x68] sm:$0xff] }
 0x1f0   :  { %3961 = vmatmul.bf16.vlgmr.msra.gmra.mxu2 %v7336_v60  ;;  %3989 = vmatmul.bf16.vlgmr.msrb.gmra.mxu0 %v7344_v32  ;;  %v6893_v60 = vld [vmem:[#allocation19 + $0x70] sm:$0xff]  ;;  %v6248_v32 = vor.u32 %v6873_v40, %v6247_v2  ;;  %v6028_v11 = vor.u32 %v6818_v63, %v6027_v62 }
 0x1f1   :  { %4009 = vmatpush.bf16.msrb.mxu2 %v6108_v57  ;;  %4376 = vmatpush.bf16.msra.mxu0 %v6886_v61  ;;  %v6868_v57 = vld [vmem:[#allocation16 + $0x9a8] sm:$0xf0]  ;;  %v3601_v61 = vadd.f32 %v3600_v58, %v1804_v46  ;;  %v3501_v58 = vadd.f32 %v7382_v38, %v3487_v49  ;;  %v6881_v2 = vld [vmem:[#allocation19 + $0x10] sm:$0xff] }
 0x1f2   :  { %v6228_v10 = vor.u32 %v6868_v57, %v6227_v54  ;;  %v6891_v38 = vld [vmem:[#allocation19 + $0x60] sm:$0xff]  ;;  %v5987_v40 = vld [vmem:[#allocation16 + $0x7b8] sm:$0xf]  ;;  %v6853_v46 = vld [vmem:[#allocation16 + $0x930] sm:$0xf0]  ;;  %v3698_v63 = vpop.f32.mrf.mxu3 }
 0x1f3   :  { %4002 = vmatpush.bf16.msrb.mxu1 %v5808_v22  ;;  %3974 = vmatpush.bf16.msra.mxu3 %v5488_v29  ;;  %v3615_v34 = vadd.f32 %v3614_v18, %v3601_v61  ;;  %v6007_v18 = vld [vmem:[#allocation16 + $0x7e0] sm:$0xf]  ;;  %v3515_v22 = vadd.f32 %v7384_v39, %v3501_v58  ;;  %v6803_v54 = vld [vmem:[#allocation16 + $0x7a0] sm:$0xf0] }
 0x1f4   :  { %v6902_v58 = vld [vmem:[#allocation19 + $0xb8] sm:$0xff] }
 0x1f5   :  { %4010 = vmatpush.bf16.msrb.mxu2 %v6088_v12  ;;  %4377 = vmatpush.bf16.msra.mxu0 %v6885_v20  ;;  %v6207_v12 = vld [vmem:[#allocation16 + $0x970] sm:$0xf]  ;;  %v3629_v17 = vadd.f32 %v3628_v19, %v3615_v34  ;;  %v6813_v20 = vld [vmem:[#allocation16 + $0x7f0] sm:$0xf0]  ;;  %v3529_v26 = vadd.f32 %v7386_v47, %v3515_v22  ;;  %v3656_v39 = vpop.f32.mrf.mxu0 }
 0x1f6   :  { %4003 = vmatmul.bf16.vlgmr.msrb.gmra.mxu1 %v7347_v51  ;;  %3975 = vmatmul.bf16.vlgmr.msra.gmra.mxu3 %v7339_v25  ;;  %v7440_v51 = vpop.f32.mrf.mxu2  ;;  %v3517_v25 = vadd.f32 %v7392_v14, %v3503_v5  ;;  %v3627_v14 = vadd.f32 %v7420_v27, %v3613_v13  ;;  %v6208_v29 = vor.u32 %v6863_v16, %v6207_v12  ;;  %v6127_v13 = vld [vmem:[#allocation16 + $0x8d0] sm:$0xf] }
 0x1f7   :  { %4390 = vmatpush.bf16.msra.mxu1 %v6894_v31  ;;  %4023 = vmatpush.bf16.msrb.mxu3 %v6268_v33  ;;  %v3643_v28 = vadd.f32 %v3642_v35, %v3629_v17  ;;  %v6008_v31 = vor.u32 %v6813_v20, %v6007_v18  ;;  %v6187_v33 = vld [vmem:[#allocation16 + $0x948] sm:$0xf]  ;;  %v3543_v27 = vadd.f32 %v7396_v36, %v3529_v26  ;;  %v6880_v36 = vld [vmem:[#allocation19 + $0x8] sm:$0xff]  ;;  %v6843_v17 = vld [vmem:[#allocation16 + $0x8e0] sm:$0xf0] }
 0x1f8   :  { %v3531_v24 = vadd.f32 %v7394_v30, %v3517_v25  ;;  %v3641_v30 = vadd.f32 %v7422_v45, %v3627_v14  ;;  %v6167_v45 = vld [vmem:[#allocation16 + $0x920] sm:$0xf]  ;;  %v6888_v25 = vld [vmem:[#allocation19 + $0x48] sm:$0xff]  ;;  %v6901_v20 = vld [vmem:[#allocation19 + $0xb0] sm:$0xff] }
 0x1f9   :  { %4011 = vmatpush.bf16.msrb.mxu2 %v6068_v37  ;;  %4378 = vmatpush.bf16.msra.mxu0 %v6884_v42  ;;  %v6858_v37 = vld [vmem:[#allocation16 + $0x958] sm:$0xf0]  ;;  %v6808_v42 = vld [vmem:[#allocation16 + $0x7c8] sm:$0xf0]  ;;  %v3657_v47 = vadd.f32 %v3656_v39, %v3643_v28  ;;  %v3557_v15 = vadd.f32 %v7398_v55, %v3543_v27 }
 0x1fa   :  { %v3545_v19 = vadd.f32 %v7406_v23, %v3531_v24  ;;  %v6188_v23 = vor.u32 %v6858_v37, %v6187_v33  ;;  %v3655_v49 = vadd.f32 %v7431_v48, %v3641_v30  ;;  %v6889_v55 = vld [vmem:[#allocation19 + $0x50] sm:$0xff]  ;;  %v6887_v24 = vld [vmem:[#allocation19 + $0x40] sm:$0xff]  ;;  %v6900_v28 = vld [vmem:[#allocation19 + $0xa8] sm:$0xff] }
 0x1fb   :  { %4391 = vmatpush.bf16.msra.mxu1 %v6893_v60  ;;  %4024 = vmatpush.bf16.msrb.mxu3 %v6248_v32  ;;  %v5988_v60 = vor.u32 %v6808_v42, %v5987_v40  ;;  %v3670_v32 = vpop.f32.mrf.mxu1  ;;  %v3571_v57 = vadd.f32 %v7400_v56, %v3557_v15  ;;  %v6147_v48 = vld [vmem:[#allocation16 + $0x8f8] sm:$0xf]  ;;  %v6879_v56 = vld [vmem:[#allocation19] sm:$0xff] }
 0x1fc   :  { %v3559_v35 = vadd.f32 %v7410_v41, %v3545_v19  ;;  %v5967_v41 = vld [vmem:[#allocation16 + $0x790] sm:$0xf]  ;;  %v3669_v34 = vadd.f32 %v7438_v7, %v3655_v49  ;;  %v6899_v19 = vld [vmem:[#allocation19 + $0xa0] sm:$0xff]  ;;  %v6897_v27 = vld [vmem:[#allocation19 + $0x90] sm:$0xff] }
 0x1fd   :  { %4012 = vmatpush.bf16.msrb.mxu2 %v6048_v52  ;;  %4379 = vmatpush.bf16.msra.mxu0 %v6883_v59  ;;  %v3671_v59 = vadd.f32 %v3670_v32, %v3657_v47  ;;  %v3585_v62 = vadd.f32 %v7403_v9, %v3571_v57  ;;  %v5968_v5 = vor.u32 %v6803_v54, %v5967_v41  ;;  %v3710_v3 = vpop.f32.mrf.mxu0  ;;  %v6895_v49 = vld [vmem:[#allocation19 + $0x80] sm:$0xff] }
 0x1fe   :  { %v3573_v1 = vadd.f32 %v7412_v43, %v3559_v35  ;;  %v3684_v52 = vpop.f32.mrf.mxu2  ;;  %v6168_v43 = vor.u32 %v6853_v46, %v6167_v45 }
 0x1ff   :  { %4392 = vmatpush.bf16.msra.mxu1 %v6892_v0  ;;  %4025 = vmatpush.bf16.msrb.mxu3 %v6228_v10  ;;  %v6848_v0 = vld [vmem:[#allocation16 + $0x908] sm:$0xf0]  ;;  %v3685_v10 = vadd.f32 %v3684_v52, %v3671_v59  ;;  %v4037_v16 = vmax.f32 %v3585_v62, 0.0  ;;  %v6910_v62 = vld [vmem:[#allocation19 + $0xf8] sm:$0xff] }
 0x200   :  { %v3587_v61 = vadd.f32 %v7414_v53, %v3573_v1  ;;  %v6148_v9 = vor.u32 %v6848_v0, %v6147_v48 }
 0x201   :  { %4013 = vmatpush.bf16.msrb.mxu2 %v6028_v11  ;;  %4380 = vmatpush.bf16.msra.mxu0 %v6882_v6  ;;  %v3683_v11 = vadd.f32 %v7440_v51, %v3669_v34  ;;  %v3699_v12 = vadd.f32 %v3698_v63, %v3685_v10  ;;  %v6128_v51 = vor.u32 %v6843_v17, %v6127_v13  ;;  %v6908_v34 = vld [vmem:[#allocation19 + $0xe8] sm:$0xff]  ;;  %v6907_v10 = vld [vmem:[#allocation19 + $0xe0] sm:$0xff]  ;;  %v1806_v17 = vperm.slane %v7424_v8, 3 }
 0x202   :  { %v4042_v53 = vmax.f32 %v3587_v61, 0.0 }
 0x203   :  { %4393 = vmatpush.bf16.msra.mxu1 %v6891_v38  ;;  %4026 = vmatpush.bf16.msrb.mxu3 %v6208_v29  ;;  %v3724_v6 = vpop.f32.mrf.mxu1  ;;  %v3697_v18 = vadd.f32 %v7447_v50, %v3683_v11  ;;  %v4043_v38 = vmax.f32 %v3699_v12, 0.0  ;;  %v3752_v50 = vpop.f32.mrf.mxu3  ;;  %v6904_v12 = vld [vmem:[#allocation19 + $0xc8] sm:$0xff] }
 0x204   :  { %v4047_v22 = vpack.c.bf16 %v4042_v53, %v4037_v16 }
 0x205   :  { %4014 = vmatpush.bf16.msrb.mxu2 %v6008_v31  ;;  %4381 = vmatpush.bf16.msra.mxu0 %v6881_v2  ;;  %v4038_v14 = vmax.f32 %v3697_v18, 0.0  ;;  %v3712_v29 = vpop.f32.mrf.mxu0  ;;  %v1805_v31 = vperm.slane %v7424_v8, 2 }
 0x206   :  { %v3738_v7 = vpop.f32.mrf.mxu2 }
 0x207   :  { %4394 = vmatpush.bf16.msra.mxu1 %v6890_v44  ;;  %4027 = vmatpush.bf16.msrb.mxu3 %v6188_v23  ;;  %v4048_v26 = vpack.c.bf16 %v4043_v38, %v4038_v14  ;;  %v3711_v39 = vadd.f32 %v3710_v3, %v1805_v31  ;;  %v3713_v40 = vadd.f32 %v3712_v29, %v1805_v31  ;;  %v6909_v3 = vld [vmem:[#allocation19 + $0xf0] sm:$0xff] }
 0x209   :  { %4015 = vmatpush.bf16.msrb.mxu2 %v5988_v60  ;;  %4382 = vmatpush.bf16.msra.mxu0 %v6880_v36  ;;  %v3725_v2 = vadd.f32 %v3724_v6, %v3711_v39  ;;  %v6896_v60 = vld [vmem:[#allocation19 + $0x88] sm:$0xff] }
 0x20b   :  { %4395 = vmatpush.bf16.msra.mxu1 %v6889_v55  ;;  %4028 = vmatpush.bf16.msrb.mxu3 %v6168_v43  ;;  %v3726_v33 = vpop.f32.mrf.mxu1  ;;  %v3754_v42 = vpop.f32.mrf.mxu3  ;;  %v3739_v44 = vadd.f32 %v3738_v7, %v3725_v2 }
 0x20c   :  { %v3727_v35 = vadd.f32 %v3726_v33, %v3713_v40 }
 0x20d   :  { %4016 = vmatpush.bf16.msrb.mxu2 %v5968_v5  ;;  %4383 = vmatpush.bf16.msra.mxu0 %v6879_v56  ;;  %v3766_v30 = vpop.f32.mrf.mxu0  ;;  %v3753_v15 = vadd.f32 %v3752_v50, %v3739_v44  ;;  %v6906_v56 = vld [vmem:[#allocation19 + $0xd8] sm:$0xff] }
 0x20e   :  { %v3740_v37 = vpop.f32.mrf.mxu2 }
 0x20f   :  { %4396 = vmatpush.bf16.msra.mxu1 %v6888_v25  ;;  %4029 = vmatpush.bf16.msrb.mxu3 %v6148_v9  ;;  %v3741_v1 = vadd.f32 %v3740_v37, %v3727_v35  ;;  %v3767_v45 = vadd.f32 %v3766_v30, %v3753_v15  ;;  %v6903_v9 = vld [vmem:[#allocation19 + $0xc0] sm:$0xff] }
 0x210   :  { %4017 = vmatmul.bf16.vlgmr.msrb.gmra.mxu2 %v7354_v4  ;;  %4384 = vmatmul.bf16.vlgmr.msra.gmra.mxu0 %v4047_v22  ;;  %v6898_v4 = vld [vmem:[#allocation19 + $0x98] sm:$0xff] }
 0x211   :  { %4404 = vmatpush.bf16.msra.mxu2 %v6902_v58  ;;  %v6905_v58 = vld [vmem:[#allocation19 + $0xd0] sm:$0xff] }
 0x213   :  { %4397 = vmatpush.bf16.msra.mxu1 %v6887_v24  ;;  %4030 = vmatpush.bf16.msrb.mxu3 %v6128_v51  ;;  %v3780_v47 = vpop.f32.mrf.mxu1 }
 0x214   :  { %v3781_v36 = vadd.f32 %v3780_v47, %v3767_v45  ;;  %v6918_v47 = vld [vmem:[#allocation19 + $0x138] sm:$0xff]  ;;  %v6916_v45 = vld [vmem:[#allocation19 + $0x128] sm:$0xff] }
 0x215   :  { %4405 = vmatpush.bf16.msra.mxu2 %v6901_v20  ;;  %v3768_v46 = vpop.f32.mrf.mxu0  ;;  %4432 = vmatpush.bf16.msrb.mxu0 %v6918_v47 }
 0x216   :  { %4398 = vmatmul.bf16.vlgmr.msra.gmra.mxu1 %v4048_v26  ;;  %4031 = vmatmul.bf16.vlgmr.msrb.gmra.mxu3 %v7358_v21  ;;  %v3794_v23 = vpop.f32.mrf.mxu2  ;;  %v3755_v21 = vadd.f32 %v3754_v42, %v3741_v1 }
 0x217   :  { %v3795_v57 = vadd.f32 %v3794_v23, %v3781_v36  ;;  %4418 = vmatpush.bf16.msra.mxu3 %v6910_v62 }
 0x218   :  { %v3769_v52 = vadd.f32 %v3768_v46, %v3755_v21  ;;  %v6917_v21 = vld [vmem:[#allocation19 + $0x130] sm:$0xff]  ;;  %v6915_v46 = vld [vmem:[#allocation19 + $0x120] sm:$0xff] }
 0x219   :  { %4406 = vmatpush.bf16.msra.mxu2 %v6900_v28  ;;  %v3808_v32 = vpop.f32.mrf.mxu3  ;;  %4433 = vmatpush.bf16.msrb.mxu0 %v6917_v21 }
 0x21a   :  { %v3809_v55 = vadd.f32 %v3808_v32, %v3795_v57  ;;  %v6914_v32 = vld [vmem:[#allocation19 + $0x118] sm:$0xff]  ;;  %v6911_v57 = vld [vmem:[#allocation19 + $0x100] sm:$0xff] }
 0x21b   :  { %v3782_v41 = vpop.f32.mrf.mxu1  ;;  %4419 = vmatpush.bf16.msra.mxu3 %v6909_v3 }
 0x21c   :  { %v3783_v61 = vadd.f32 %v3782_v41, %v3769_v52  ;;  %v4039_v5 = vmax.f32 %v3809_v55, 0.0 }
 0x21d   :  { %4407 = vmatpush.bf16.msra.mxu2 %v6899_v19  ;;  %v3822_v53 = vpop.f32.mrf.mxu0  ;;  %4434 = vmatpush.bf16.msrb.mxu0 %v6916_v45 }
 0x21e   :  { %v3796_v54 = vpop.f32.mrf.mxu2  ;;  %v3823_v7 = vadd.f32 %v3822_v53, %v1806_v17 }
 0x21f   :  { %v3797_v59 = vadd.f32 %v3796_v54, %v3783_v61  ;;  %4420 = vmatpush.bf16.msra.mxu3 %v6908_v34  ;;  %v6912_v54 = vld [vmem:[#allocation19 + $0x108] sm:$0xff] }
 0x221   :  { %4408 = vmatpush.bf16.msra.mxu2 %v6898_v4  ;;  %v3810_v43 = vpop.f32.mrf.mxu3  ;;  %4435 = vmatpush.bf16.msrb.mxu0 %v6915_v46 }
 0x222   :  { %v3811_v63 = vadd.f32 %v3810_v43, %v3797_v59  ;;  %v1807_v59 = vperm.slane %v7424_v8, 4 }
 0x223   :  { %4421 = vmatpush.bf16.msra.mxu3 %v6907_v10  ;;  %v3836_v25 = vpop.f32.mrf.mxu1 }
 0x224   :  { %v4044_v48 = vmax.f32 %v3811_v63, 0.0  ;;  %v3837_v22 = vadd.f32 %v3836_v25, %v3823_v7 }
 0x225   :  { %4409 = vmatpush.bf16.msra.mxu2 %v6897_v27  ;;  %v3824_v16 = vpop.f32.mrf.mxu0  ;;  %4436 = vmatpush.bf16.msrb.mxu0 %v6914_v32 }
 0x226   :  { %v4049_v0 = vpack.c.bf16 %v4044_v48, %v4039_v5  ;;  %v3825_v24 = vadd.f32 %v3824_v16, %v1806_v17 }
 0x227   :  { %4422 = vmatpush.bf16.msra.mxu3 %v6906_v56 }
 0x229   :  { %4410 = vmatpush.bf16.msra.mxu2 %v6896_v60 }
 0x22b   :  { %4423 = vmatpush.bf16.msra.mxu3 %v6905_v58  ;;  %v3838_v6 = vpop.f32.mrf.mxu1 }
 0x22c   :  { %v3839_v51 = vadd.f32 %v3838_v6, %v3825_v24 }
 0x22d   :  { %4411 = vmatpush.bf16.msra.mxu2 %v6895_v49  ;;  %v3878_v20 = vpop.f32.mrf.mxu0  ;;  %v6913_v49 = vld [vmem:[#allocation19 + $0x110] sm:$0xff] }
 0x22e   :  { %4437 = vmatpush.bf16.msrb.mxu0 %v6913_v49 }
 0x22f   :  { %4424 = vmatpush.bf16.msra.mxu3 %v6904_v12 }
 0x230   :  { %4412 = vmatmul.bf16.vlgmr.msra.gmra.mxu2 %v4049_v0 }
 0x232   :  { %4438 = vmatpush.bf16.msrb.mxu0 %v6912_v54 }
 0x233   :  { %v3850_v11 = vpop.f32.mrf.mxu2  ;;  %4425 = vmatpush.bf16.msra.mxu3 %v6903_v9  ;;  %v3892_v28 = vpop.f32.mrf.mxu1 }
 0x234   :  { %v3851_v14 = vadd.f32 %v3850_v11, %v3837_v22 }
 0x235   :  { %v3880_v33 = vpop.f32.mrf.mxu0 }
 0x236   :  { %4439 = vmatpush.bf16.msrb.mxu0 %v6911_v57 }
 0x239   :  { %v3864_v13 = vpop.f32.mrf.mxu3 }
 0x23a   :  { %v3865_v26 = vadd.f32 %v3864_v13, %v3851_v14 }
 0x23b   :  { %v3852_v18 = vpop.f32.mrf.mxu2  ;;  %v3894_v30 = vpop.f32.mrf.mxu1 }
 0x23c   :  { %v3853_v50 = vadd.f32 %v3852_v18, %v3839_v51  ;;  %v3879_v31 = vadd.f32 %v3878_v20, %v3865_v26 }
 0x23e   :  { %v3893_v39 = vadd.f32 %v3892_v28, %v3879_v31 }
 0x241   :  { %v3866_v38 = vpop.f32.mrf.mxu3 }
 0x242   :  { %v3867_v19 = vadd.f32 %v3866_v38, %v3853_v50 }
 0x244   :  { %v3881_v4 = vadd.f32 %v3880_v33, %v3867_v19  ;;  %v6936_v33 = vld [vmem:[#allocation20] ss:$0 sm:$0xff] }
 0x246   :  { %v3895_v42 = vadd.f32 %v3894_v30, %v3881_v4 }
 0x24d   :  { %v3934_v52 = vpop.f32.mrf.mxu0 }
 0x24e   :  { %v3935_v63 = vadd.f32 %v3934_v52, %v1807_v59 }
 0x253   :  { %v3906_v29 = vpop.f32.mrf.mxu2  ;;  %v3948_v36 = vpop.f32.mrf.mxu1 }
 0x254   :  { %v3907_v40 = vadd.f32 %v3906_v29, %v3893_v39  ;;  %v3949_v48 = vadd.f32 %v3948_v36, %v3935_v63 }
 0x255   :  { %v3936_v61 = vpop.f32.mrf.mxu0 }
 0x256   :  { %v3937_v0 = vadd.f32 %v3936_v61, %v1807_v59 }
 0x259   :  { %v3920_v37 = vpop.f32.mrf.mxu3 }
 0x25a   :  { %v3921_v27 = vadd.f32 %v3920_v37, %v3907_v40 }
 0x25b   :  { %v3908_v2 = vpop.f32.mrf.mxu2  ;;  %v3950_v43 = vpop.f32.mrf.mxu1 }
 0x25c   :  { %v3909_v35 = vadd.f32 %v3908_v2, %v3895_v42  ;;  %v4040_v15 = vmax.f32 %v3921_v27, 0.0  ;;  %v3951_v34 = vadd.f32 %v3950_v43, %v3937_v0 }
 0x261   :  { %v3922_v44 = vpop.f32.mrf.mxu3 }
 0x262   :  { %v3923_v23 = vadd.f32 %v3922_v44, %v3909_v35 }
 0x264   :  { %v4045_v1 = vmax.f32 %v3923_v23, 0.0 }
 0x266   :  { %v4050_v60 = vpack.c.bf16 %v4045_v1, %v4040_v15 }
 0x268   :  { %4426 = vmatmul.bf16.vlgmr.msra.gmra.mxu3 %v4050_v60 }
 0x26d   :  { %v3990_v5 = vpop.f32.mrf.mxu0 }
 0x273   :  { %v3962_v41 = vpop.f32.mrf.mxu2  ;;  %v4004_v56 = vpop.f32.mrf.mxu1 }
 0x274   :  { %v3963_v10 = vadd.f32 %v3962_v41, %v3949_v48 }
 0x275   :  { %v3992_v9 = vpop.f32.mrf.mxu0 }
 0x279   :  { %v3976_v55 = vpop.f32.mrf.mxu3 }
 0x27a   :  { %v3977_v53 = vadd.f32 %v3976_v55, %v3963_v10 }
 0x27b   :  { %v3964_v62 = vpop.f32.mrf.mxu2  ;;  %v4006_v8 = vpop.f32.mrf.mxu1 }
 0x27c   :  { %v3965_v25 = vadd.f32 %v3964_v62, %v3951_v34  ;;  %v3991_v12 = vadd.f32 %v3990_v5, %v3977_v53 }
 0x27e   :  { %v4005_v17 = vadd.f32 %v4004_v56, %v3991_v12 }
 0x281   :  { %v3978_v3 = vpop.f32.mrf.mxu3 }
 0x282   :  { %v3979_v11 = vadd.f32 %v3978_v3, %v3965_v25 }
 0x284   :  { %v3993_v13 = vadd.f32 %v3992_v9, %v3979_v11 }
 0x286   :  { %v4007_v7 = vadd.f32 %v4006_v8, %v3993_v13 }
 0x28d   :  { %v4385_v29 = vpop.f32.mrf.mxu0 }
 0x28e   :  { %v4386_v39 = vadd.f32 %v6936_v33, %v4385_v29 }
 0x293   :  { %v4018_v58 = vpop.f32.mrf.mxu2  ;;  %v4399_v26 = vpop.f32.mrf.mxu1 }
 0x294   :  { %v4019_v18 = vadd.f32 %v4018_v58, %v4005_v17  ;;  %v4400_v40 = vadd.f32 %v4399_v26, %v4386_v39 }
 0x295   :  { %v4387_v50 = vpop.f32.mrf.mxu0 }
 0x296   :  { %v4388_v30 = vadd.f32 %v6936_v33, %v4387_v50 }
 0x299   :  { %v4032_v16 = vpop.f32.mrf.mxu3 }
 0x29a   :  { %v4033_v20 = vadd.f32 %v4032_v16, %v4019_v18 }
 0x29b   :  { %v4020_v6 = vpop.f32.mrf.mxu2  ;;  %v4401_v37 = vpop.f32.mrf.mxu1 }
 0x29c   :  { %v4021_v22 = vadd.f32 %v4020_v6, %v4007_v7  ;;  %v4041_v51 = vmax.f32 %v4033_v20, 0.0  ;;  %v4402_v42 = vadd.f32 %v4401_v37, %v4388_v30 }
 0x2a1   :  { %v4034_v24 = vpop.f32.mrf.mxu3 }
 0x2a2   :  { %v4035_v38 = vadd.f32 %v4034_v24, %v4021_v22 }
 0x2a4   :  { %v4046_v14 = vmax.f32 %v4035_v38, 0.0 }
 0x2a6   :  { %v4051_v28 = vpack.c.bf16 %v4046_v14, %v4041_v51 }
 0x2a8   :  { %4440 = vmatmul.bf16.vlgmr.msrb.gmra.mxu0 %v4051_v28 }
 0x2b3   :  { %v4413_v19 = vpop.f32.mrf.mxu2 }
 0x2b4   :  { %v4414_v35 = vadd.f32 %v4413_v19, %v4400_v40 }
 0x2bb   :  { %v4415_v2 = vpop.f32.mrf.mxu2 }
 0x2bc   :  { %v4416_v44 = vadd.f32 %v4415_v2, %v4402_v42 }
 0x2eb   :  { %v4427_v31 = vpop.f32.mrf.mxu3 }
 0x2ec   :  { %v4428_v47 = vadd.f32 %v4427_v31, %v4414_v35 }
 0x2f3   :  { %v4429_v27 = vpop.f32.mrf.mxu3 }
 0x2f4   :  { %v4430_v23 = vadd.f32 %v4429_v27, %v4416_v44 }
 0x325   :  { %v4441_v4 = vpop.f32.mrf.mxu0 }
 0x326   :  { %v4442_v1 = vadd.f32 %v4441_v4, %v4428_v47 }
 0x32d   :  { %v4443_v15 = vpop.f32.mrf.mxu0 }
 0x32e   :  { %v4444_v60 = vadd.f32 %v4443_v15, %v4430_v23 }
 0x330   :  { %v6922_v21 = vpack.c.bf16 %v4444_v60, %v4442_v1 }
 0x332   :  { %6923 = vst [vmem:[%s7484_s12] sm:$0xff] %v6922_v21  }
 0x333   :  { %4454 = vsyncpa [#allocation13], 1 }
 0x334   :  { %4455 = vsyncpa [#allocation15], 1 }
 0x335   :  { %4456 = vsyncpa [#allocation18], 1 }
 0x336   :  { %4457 = vsyncpa [#allocation21], 1 }

</bundles_post_ra>
